<compile_context>
chip_gen: v6e
topology: v6e:2x2x1
jax: 0.10.0
libtpu: 0.0.40
codegen_flags: <defaults>
</compile_context>

<pallas_src>
import functools

import jax
import jax.numpy as jnp
from jax.experimental import pallas as pl
from jax.experimental.pallas import tpu as pltpu


def _resblock_kernel(x_ref, w1_ref, b1_ref, w2_ref, b2_ref, o_ref,
                     pad_ref, col_ref, *, H, W, C, K, res_scale):
    """One grid step == one batch sample.

    x_ref  : (1, H, W, C)   f32 input sample (also the residual)
    w*_ref : (K*K*C, C)     bf16 conv weights, im2col layout (dy, dx, cin) x cout
    b*_ref : (1, C)         f32 conv bias
    o_ref  : (1, H, W, C)   output sample
    pad_ref: VMEM (H+2p, W+2p, C) f32 — shared zero-halo scratch (holds x, then y1)
    col_ref: VMEM (H*W, K*K*C) bf16  — im2col patch matrix (shared by both convs)
    """
    f32 = jnp.float32
    p = K // 2
    Hp, Wp = H + 2 * p, W + 2 * p
    taps = [(dy, dx) for dy in range(K) for dx in range(K)]

    # Zero only the thin halo border (interior is fully overwritten below).
    pad_ref[:p, :, :] = jnp.zeros((p, Wp, C), f32)
    pad_ref[p + H:, :, :] = jnp.zeros((p, Wp, C), f32)
    pad_ref[:, :p, :] = jnp.zeros((Hp, p, C), f32)
    pad_ref[:, p + W:, :] = jnp.zeros((Hp, p, C), f32)

    def im2col():
        # Gather the K*K shifted patches into one (H*W, K*K*C) bf16 matrix so the
        # conv becomes a single MXU matmul with contraction depth K*K*C.
        for t, (dy, dx) in enumerate(taps):
            patch = pad_ref[dy:dy + H, dx:dx + W, :].reshape(H * W, C)
            col_ref[:, t * C:(t + 1) * C] = patch.astype(col_ref.dtype)

    # ---- conv1: im2col + one bf16 MXU matmul; bias + ReLU fused in f32 ----
    pad_ref[p:p + H, p:p + W, :] = x_ref[0]
    im2col()
    acc1 = jnp.dot(col_ref[...], w1_ref[...], preferred_element_type=f32)
    y1 = jnp.maximum(acc1 + b1_ref[...], 0.0)                      # (H*W, C) f32

    # ---- conv2: overwrite the scratch interior with y1 and repeat ----
    pad_ref[p:p + H, p:p + W, :] = y1.reshape(H, W, C)
    im2col()
    acc2 = jnp.dot(col_ref[...], w2_ref[...], preferred_element_type=f32)
    y2 = acc2 + b2_ref[...]                                        # (H*W, C) f32

    # ---- residual scale + add (f32 elementwise) ----
    if res_scale != 1.0:
        y2 = y2 * res_scale
    res = y2.reshape(H, W, C) + x_ref[0]
    o_ref[...] = res[None].astype(o_ref.dtype)


def resblock_pallas(x_nhwc, w1, b1, w2, b2, *, res_scale=1.0):
    """x_nhwc: (N, H, W, C) f32; w*: (K, K, C, C) HWIO; b*: (C,) or (1, C)."""
    N, H, W, C = x_nhwc.shape
    K = w1.shape[0]
    p = K // 2
    Hp, Wp = H + 2 * p, W + 2 * p
    KKC = K * K * C

    # im2col weight layout: rows ordered (dy, dx, cin); bf16 for the MXU.
    w1m = w1.reshape(KKC, C).astype(jnp.bfloat16)
    w2m = w2.reshape(KKC, C).astype(jnp.bfloat16)
    b1m = b1.reshape(1, C).astype(jnp.float32)
    b2m = b2.reshape(1, C).astype(jnp.float32)

    kernel = functools.partial(_resblock_kernel, H=H, W=W, C=C, K=K,
                               res_scale=float(res_scale))

    return pl.pallas_call(
        kernel,
        out_shape=jax.ShapeDtypeStruct((N, H, W, C), x_nhwc.dtype),
        grid_spec=pltpu.PrefetchScalarGridSpec(
            num_scalar_prefetch=0,
            grid=(N,),
            in_specs=[
                pl.BlockSpec((1, H, W, C), lambda n: (n, 0, 0, 0)),   # x
                pl.BlockSpec((KKC, C), lambda n: (0, 0)),             # w1 (im2col)
                pl.BlockSpec((1, C), lambda n: (0, 0)),               # b1
                pl.BlockSpec((KKC, C), lambda n: (0, 0)),             # w2 (im2col)
                pl.BlockSpec((1, C), lambda n: (0, 0)),               # b2
            ],
            out_specs=pl.BlockSpec((1, H, W, C), lambda n: (n, 0, 0, 0)),
            scratch_shapes=[
                pltpu.VMEM((Hp, Wp, C), jnp.float32),      # zero-halo pad (x / y1)
                pltpu.VMEM((H * W, KKC), jnp.bfloat16),    # im2col matrix
            ],
        ),
        compiler_params=pltpu.CompilerParams(
            dimension_semantics=("parallel",),
            vmem_limit_bytes=32 * 1024 * 1024),
    )(x_nhwc, w1m, b1m, w2m, b2m)


def resblock_ref(x, w1, b1, w2, b2, res_scale=1.0):
    """Pure-JAX f32 reference (same semantics as the PyTorch ResBlock, NHWC)."""
    dn = ('NHWC', 'HWIO', 'NHWC')
    y = jax.lax.conv_general_dilated(x, w1, (1, 1), 'SAME', dimension_numbers=dn) + b1
    y = jnp.maximum(y, 0.0)
    y = jax.lax.conv_general_dilated(y, w2, (1, 1), 'SAME', dimension_numbers=dn) + b2
    return y * res_scale + x


if __name__ == "__main__":
    # Small shapes consistent with the module: n_feat=4 channels, kernel_size=3.
    N, C, H, W, K = 2, 4, 16, 16, 3
    res_scale = 1.0  # module default

    key = jax.random.PRNGKey(0)
    kx, kw1, kb1, kw2, kb2 = jax.random.split(key, 5)

    x = jax.random.normal(kx, (N, H, W, C), dtype=jnp.float32)          # NHWC
    w1 = 0.1 * jax.random.normal(kw1, (K, K, C, C), dtype=jnp.float32)  # HWIO
    b1 = 0.1 * jax.random.normal(kb1, (C,), dtype=jnp.float32)
    w2 = 0.1 * jax.random.normal(kw2, (K, K, C, C), dtype=jnp.float32)
    b2 = 0.1 * jax.random.normal(kb2, (C,), dtype=jnp.float32)

    out = resblock_pallas(x, w1, b1, w2, b2, res_scale=res_scale)
    out = jax.block_until_ready(out)

    expected = resblock_ref(x, w1, b1, w2, b2, res_scale=res_scale)
    assert out.shape == (N, H, W, C)
    # bf16 MXU inputs -> slightly looser tolerance than a pure-f32 path.
    max_err = float(jnp.max(jnp.abs(out - expected)))
    assert jnp.allclose(out, expected, atol=5e-2, rtol=5e-2), max_err

    print("KERNEL_OK")
</pallas_src>

<mosaic_0001>
module attributes {stable_mosaic.version = 11 : i64} {
  func.func @_resblock_kernel(%arg0: i32, %arg1: memref<1x16x16x4xf32, #tpu.memory_space<vmem>>, %arg2: memref<36x4xbf16, #tpu.memory_space<vmem>>, %arg3: memref<1x4xf32, #tpu.memory_space<vmem>>, %arg4: memref<36x4xbf16, #tpu.memory_space<vmem>>, %arg5: memref<1x4xf32, #tpu.memory_space<vmem>>, %arg6: memref<1x16x16x4xf32, #tpu.memory_space<vmem>>, %arg7: memref<18x18x4xf32, #tpu.memory_space<vmem>>, %arg8: memref<256x36xbf16, #tpu.memory_space<vmem>>) attributes {dimension_semantics = [#tpu.dimension_semantics<parallel>], iteration_bounds = array<i64: 2>, scalar_prefetch = 0 : i64, scratch_operands = 2 : i64, tpu.core_type = #tpu.core_type<tc>, window_params = [{transform_indices = @transform_0, window_bounds = array<i64: 1, 16, 16, 4>}, {pipeline_mode = #tpu.pipeline_mode<synchronous>, transform_indices = @transform_1, window_bounds = array<i64: 36, 4>}, {pipeline_mode = #tpu.pipeline_mode<synchronous>, transform_indices = @transform_2, window_bounds = array<i64: 1, 4>}, {pipeline_mode = #tpu.pipeline_mode<synchronous>, transform_indices = @transform_3, window_bounds = array<i64: 36, 4>}, {pipeline_mode = #tpu.pipeline_mode<synchronous>, transform_indices = @transform_4, window_bounds = array<i64: 1, 4>}, {transform_indices = @transform_5, window_bounds = array<i64: 1, 16, 16, 4>}]} {
    %cst = arith.constant 0.000000e+00 : f32
    %0 = vector.broadcast %cst : f32 to vector<1x18x4xf32>
    %c0 = arith.constant 0 : index
    %c0_0 = arith.constant 0 : index
    %c0_1 = arith.constant 0 : index
    %1 = vector.load %arg7[%c0, %c0_0, %c0_1] : memref<18x18x4xf32, #tpu.memory_space<vmem>>, vector<1x18x4xf32>
    tpu.vector_store %arg7[%c0, %c0_0, %c0_1], %0 {strides = array<i32>} : memref<18x18x4xf32, #tpu.memory_space<vmem>>, vector<1x18x4xf32>,
    %cst_2 = arith.constant 0.000000e+00 : f32
    %2 = vector.broadcast %cst_2 : f32 to vector<1x18x4xf32>
    %c17 = arith.constant 17 : index
    %c0_3 = arith.constant 0 : index
    %c0_4 = arith.constant 0 : index
    %3 = vector.load %arg7[%c17, %c0_3, %c0_4] : memref<18x18x4xf32, #tpu.memory_space<vmem>>, vector<1x18x4xf32>
    tpu.vector_store %arg7[%c17, %c0_3, %c0_4], %2 {strides = array<i32>} : memref<18x18x4xf32, #tpu.memory_space<vmem>>, vector<1x18x4xf32>,
    %cst_5 = arith.constant 0.000000e+00 : f32
    %4 = vector.broadcast %cst_5 : f32 to vector<18x1x4xf32>
    %c0_6 = arith.constant 0 : index
    %c0_7 = arith.constant 0 : index
    %c0_8 = arith.constant 0 : index
    %5 = vector.load %arg7[%c0_6, %c0_7, %c0_8] : memref<18x18x4xf32, #tpu.memory_space<vmem>>, vector<18x1x4xf32>
    tpu.vector_store %arg7[%c0_6, %c0_7, %c0_8], %4 {strides = array<i32>} : memref<18x18x4xf32, #tpu.memory_space<vmem>>, vector<18x1x4xf32>,
    %cst_9 = arith.constant 0.000000e+00 : f32
    %6 = vector.broadcast %cst_9 : f32 to vector<18x1x4xf32>
    %c0_10 = arith.constant 0 : index
    %c17_11 = arith.constant 17 : index
    %c0_12 = arith.constant 0 : index
    %7 = vector.load %arg7[%c0_10, %c17_11, %c0_12] : memref<18x18x4xf32, #tpu.memory_space<vmem>>, vector<18x1x4xf32>
    tpu.vector_store %arg7[%c0_10, %c17_11, %c0_12], %6 {strides = array<i32>} : memref<18x18x4xf32, #tpu.memory_space<vmem>>, vector<18x1x4xf32>,
    %c0_13 = arith.constant 0 : index
    %c0_14 = arith.constant 0 : index
    %c0_15 = arith.constant 0 : index
    %c0_16 = arith.constant 0 : index
    %8 = vector.load %arg1[%c0_13, %c0_14, %c0_15, %c0_16] : memref<1x16x16x4xf32, #tpu.memory_space<vmem>>, vector<1x16x16x4xf32>
    %9 = vector.shape_cast %8 : vector<1x16x16x4xf32> to vector<16x16x4xf32>
    %c1 = arith.constant 1 : index
    %c1_17 = arith.constant 1 : index
    %c0_18 = arith.constant 0 : index
    %10 = vector.load %arg7[%c1, %c1_17, %c0_18] : memref<18x18x4xf32, #tpu.memory_space<vmem>>, vector<16x16x4xf32>
    tpu.vector_store %arg7[%c1, %c1_17, %c0_18], %9 {strides = array<i32>} : memref<18x18x4xf32, #tpu.memory_space<vmem>>, vector<16x16x4xf32>,
    %c0_19 = arith.constant 0 : index
    %c0_20 = arith.constant 0 : index
    %c0_21 = arith.constant 0 : index
    %11 = vector.load %arg7[%c0_19, %c0_20, %c0_21] : memref<18x18x4xf32, #tpu.memory_space<vmem>>, vector<16x16x4xf32>
    %12 = vector.shape_cast %11 : vector<16x16x4xf32> to vector<256x4xf32>
    %13 = arith.truncf %12 : vector<256x4xf32> to vector<256x4xbf16>
    %c0_22 = arith.constant 0 : index
    %c0_23 = arith.constant 0 : index
    %14 = vector.load %arg8[%c0_22, %c0_23] : memref<256x36xbf16, #tpu.memory_space<vmem>>, vector<256x4xbf16>
    tpu.vector_store %arg8[%c0_22, %c0_23], %13 {strides = array<i32>} : memref<256x36xbf16, #tpu.memory_space<vmem>>, vector<256x4xbf16>,
    %c0_24 = arith.constant 0 : index
    %c1_25 = arith.constant 1 : index
    %c0_26 = arith.constant 0 : index
    %15 = vector.load %arg7[%c0_24, %c1_25, %c0_26] : memref<18x18x4xf32, #tpu.memory_space<vmem>>, vector<16x16x4xf32>
    %16 = vector.shape_cast %15 : vector<16x16x4xf32> to vector<256x4xf32>
    %17 = arith.truncf %16 : vector<256x4xf32> to vector<256x4xbf16>
    %c0_27 = arith.constant 0 : index
    %c4 = arith.constant 4 : index
    %18 = vector.load %arg8[%c0_27, %c4] : memref<256x36xbf16, #tpu.memory_space<vmem>>, vector<256x4xbf16>
    tpu.vector_store %arg8[%c0_27, %c4], %17 {strides = array<i32>} : memref<256x36xbf16, #tpu.memory_space<vmem>>, vector<256x4xbf16>,
    %c0_28 = arith.constant 0 : index
    %c2 = arith.constant 2 : index
    %c0_29 = arith.constant 0 : index
    %19 = vector.load %arg7[%c0_28, %c2, %c0_29] : memref<18x18x4xf32, #tpu.memory_space<vmem>>, vector<16x16x4xf32>
    %20 = vector.shape_cast %19 : vector<16x16x4xf32> to vector<256x4xf32>
    %21 = arith.truncf %20 : vector<256x4xf32> to vector<256x4xbf16>
    %c0_30 = arith.constant 0 : index
    %c8 = arith.constant 8 : index
    %22 = vector.load %arg8[%c0_30, %c8] : memref<256x36xbf16, #tpu.memory_space<vmem>>, vector<256x4xbf16>
    tpu.vector_store %arg8[%c0_30, %c8], %21 {strides = array<i32>} : memref<256x36xbf16, #tpu.memory_space<vmem>>, vector<256x4xbf16>,
    %c1_31 = arith.constant 1 : index
    %c0_32 = arith.constant 0 : index
    %c0_33 = arith.constant 0 : index
    %23 = vector.load %arg7[%c1_31, %c0_32, %c0_33] : memref<18x18x4xf32, #tpu.memory_space<vmem>>, vector<16x16x4xf32>
    %24 = vector.shape_cast %23 : vector<16x16x4xf32> to vector<256x4xf32>
    %25 = arith.truncf %24 : vector<256x4xf32> to vector<256x4xbf16>
    %c0_34 = arith.constant 0 : index
    %c12 = arith.constant 12 : index
    %26 = vector.load %arg8[%c0_34, %c12] : memref<256x36xbf16, #tpu.memory_space<vmem>>, vector<256x4xbf16>
    tpu.vector_store %arg8[%c0_34, %c12], %25 {strides = array<i32>} : memref<256x36xbf16, #tpu.memory_space<vmem>>, vector<256x4xbf16>,
    %c1_35 = arith.constant 1 : index
    %c1_36 = arith.constant 1 : index
    %c0_37 = arith.constant 0 : index
    %27 = vector.load %arg7[%c1_35, %c1_36, %c0_37] : memref<18x18x4xf32, #tpu.memory_space<vmem>>, vector<16x16x4xf32>
    %28 = vector.shape_cast %27 : vector<16x16x4xf32> to vector<256x4xf32>
    %29 = arith.truncf %28 : vector<256x4xf32> to vector<256x4xbf16>
    %c0_38 = arith.constant 0 : index
    %c16 = arith.constant 16 : index
    %30 = vector.load %arg8[%c0_38, %c16] : memref<256x36xbf16, #tpu.memory_space<vmem>>, vector<256x4xbf16>
    tpu.vector_store %arg8[%c0_38, %c16], %29 {strides = array<i32>} : memref<256x36xbf16, #tpu.memory_space<vmem>>, vector<256x4xbf16>,
    %c1_39 = arith.constant 1 : index
    %c2_40 = arith.constant 2 : index
    %c0_41 = arith.constant 0 : index
    %31 = vector.load %arg7[%c1_39, %c2_40, %c0_41] : memref<18x18x4xf32, #tpu.memory_space<vmem>>, vector<16x16x4xf32>
    %32 = vector.shape_cast %31 : vector<16x16x4xf32> to vector<256x4xf32>
    %33 = arith.truncf %32 : vector<256x4xf32> to vector<256x4xbf16>
    %c0_42 = arith.constant 0 : index
    %c20 = arith.constant 20 : index
    %34 = vector.load %arg8[%c0_42, %c20] : memref<256x36xbf16, #tpu.memory_space<vmem>>, vector<256x4xbf16>
    tpu.vector_store %arg8[%c0_42, %c20], %33 {strides = array<i32>} : memref<256x36xbf16, #tpu.memory_space<vmem>>, vector<256x4xbf16>,
    %c2_43 = arith.constant 2 : index
    %c0_44 = arith.constant 0 : index
    %c0_45 = arith.constant 0 : index
    %35 = vector.load %arg7[%c2_43, %c0_44, %c0_45] : memref<18x18x4xf32, #tpu.memory_space<vmem>>, vector<16x16x4xf32>
    %36 = vector.shape_cast %35 : vector<16x16x4xf32> to vector<256x4xf32>
    %37 = arith.truncf %36 : vector<256x4xf32> to vector<256x4xbf16>
    %c0_46 = arith.constant 0 : index
    %c24 = arith.constant 24 : index
    %38 = vector.load %arg8[%c0_46, %c24] : memref<256x36xbf16, #tpu.memory_space<vmem>>, vector<256x4xbf16>
    tpu.vector_store %arg8[%c0_46, %c24], %37 {strides = array<i32>} : memref<256x36xbf16, #tpu.memory_space<vmem>>, vector<256x4xbf16>,
    %c2_47 = arith.constant 2 : index
    %c1_48 = arith.constant 1 : index
    %c0_49 = arith.constant 0 : index
    %39 = vector.load %arg7[%c2_47, %c1_48, %c0_49] : memref<18x18x4xf32, #tpu.memory_space<vmem>>, vector<16x16x4xf32>
    %40 = vector.shape_cast %39 : vector<16x16x4xf32> to vector<256x4xf32>
    %41 = arith.truncf %40 : vector<256x4xf32> to vector<256x4xbf16>
    %c0_50 = arith.constant 0 : index
    %c28 = arith.constant 28 : index
    %42 = vector.load %arg8[%c0_50, %c28] : memref<256x36xbf16, #tpu.memory_space<vmem>>, vector<256x4xbf16>
    tpu.vector_store %arg8[%c0_50, %c28], %41 {strides = array<i32>} : memref<256x36xbf16, #tpu.memory_space<vmem>>, vector<256x4xbf16>,
    %c2_51 = arith.constant 2 : index
    %c2_52 = arith.constant 2 : index
    %c0_53 = arith.constant 0 : index
    %43 = vector.load %arg7[%c2_51, %c2_52, %c0_53] : memref<18x18x4xf32, #tpu.memory_space<vmem>>, vector<16x16x4xf32>
    %44 = vector.shape_cast %43 : vector<16x16x4xf32> to vector<256x4xf32>
    %45 = arith.truncf %44 : vector<256x4xf32> to vector<256x4xbf16>
    %c0_54 = arith.constant 0 : index
    %c32 = arith.constant 32 : index
    %46 = vector.load %arg8[%c0_54, %c32] : memref<256x36xbf16, #tpu.memory_space<vmem>>, vector<256x4xbf16>
    tpu.vector_store %arg8[%c0_54, %c32], %45 {strides = array<i32>} : memref<256x36xbf16, #tpu.memory_space<vmem>>, vector<256x4xbf16>,
    %c0_55 = arith.constant 0 : index
    %c0_56 = arith.constant 0 : index
    %47 = vector.load %arg8[%c0_55, %c0_56] : memref<256x36xbf16, #tpu.memory_space<vmem>>, vector<256x36xbf16>
    %c0_57 = arith.constant 0 : index
    %c0_58 = arith.constant 0 : index
    %48 = vector.load %arg2[%c0_57, %c0_58] : memref<36x4xbf16, #tpu.memory_space<vmem>>, vector<36x4xbf16>
    %cst_59 = arith.constant dense<0.000000e+00> : vector<256x4xf32>
    %49 = tpu.matmul %47, %48, %cst_59 {dimension_numbers = #tpu.dot_dimension_numbers<[1], [0], [0], [1], [0, 0, 1, 1], [], []>} : vector<256x36xbf16>, vector<36x4xbf16>, vector<256x4xf32> -> vector<256x4xf32>
    %c0_60 = arith.constant 0 : index
    %c0_61 = arith.constant 0 : index
    %50 = vector.load %arg3[%c0_60, %c0_61] : memref<1x4xf32, #tpu.memory_space<vmem>>, vector<1x4xf32>
    %51 = vector.broadcast %50 : vector<1x4xf32> to vector<256x4xf32>
    %52 = arith.addf %49, %51 : vector<256x4xf32>
    %cst_62 = arith.constant 0.000000e+00 : f32
    %53 = vector.broadcast %cst_62 : f32 to vector<256x4xf32>
    %54 = arith.maximumf %52, %53 : vector<256x4xf32>
    %55 = vector.shape_cast %54 : vector<256x4xf32> to vector<16x16x4xf32>
    %c1_63 = arith.constant 1 : index
    %c1_64 = arith.constant 1 : index
    %c0_65 = arith.constant 0 : index
    %56 = vector.load %arg7[%c1_63, %c1_64, %c0_65] : memref<18x18x4xf32, #tpu.memory_space<vmem>>, vector<16x16x4xf32>
    tpu.vector_store %arg7[%c1_63, %c1_64, %c0_65], %55 {strides = array<i32>} : memref<18x18x4xf32, #tpu.memory_space<vmem>>, vector<16x16x4xf32>,
    %c0_66 = arith.constant 0 : index
    %c0_67 = arith.constant 0 : index
    %c0_68 = arith.constant 0 : index
    %57 = vector.load %arg7[%c0_66, %c0_67, %c0_68] : memref<18x18x4xf32, #tpu.memory_space<vmem>>, vector<16x16x4xf32>
    %58 = vector.shape_cast %57 : vector<16x16x4xf32> to vector<256x4xf32>
    %59 = arith.truncf %58 : vector<256x4xf32> to vector<256x4xbf16>
    %c0_69 = arith.constant 0 : index
    %c0_70 = arith.constant 0 : index
    %60 = vector.load %arg8[%c0_69, %c0_70] : memref<256x36xbf16, #tpu.memory_space<vmem>>, vector<256x4xbf16>
    tpu.vector_store %arg8[%c0_69, %c0_70], %59 {strides = array<i32>} : memref<256x36xbf16, #tpu.memory_space<vmem>>, vector<256x4xbf16>,
    %c0_71 = arith.constant 0 : index
    %c1_72 = arith.constant 1 : index
    %c0_73 = arith.constant 0 : index
    %61 = vector.load %arg7[%c0_71, %c1_72, %c0_73] : memref<18x18x4xf32, #tpu.memory_space<vmem>>, vector<16x16x4xf32>
    %62 = vector.shape_cast %61 : vector<16x16x4xf32> to vector<256x4xf32>
    %63 = arith.truncf %62 : vector<256x4xf32> to vector<256x4xbf16>
    %c0_74 = arith.constant 0 : index
    %c4_75 = arith.constant 4 : index
    %64 = vector.load %arg8[%c0_74, %c4_75] : memref<256x36xbf16, #tpu.memory_space<vmem>>, vector<256x4xbf16>
    tpu.vector_store %arg8[%c0_74, %c4_75], %63 {strides = array<i32>} : memref<256x36xbf16, #tpu.memory_space<vmem>>, vector<256x4xbf16>,
    %c0_76 = arith.constant 0 : index
    %c2_77 = arith.constant 2 : index
    %c0_78 = arith.constant 0 : index
    %65 = vector.load %arg7[%c0_76, %c2_77, %c0_78] : memref<18x18x4xf32, #tpu.memory_space<vmem>>, vector<16x16x4xf32>
    %66 = vector.shape_cast %65 : vector<16x16x4xf32> to vector<256x4xf32>
    %67 = arith.truncf %66 : vector<256x4xf32> to vector<256x4xbf16>
    %c0_79 = arith.constant 0 : index
    %c8_80 = arith.constant 8 : index
    %68 = vector.load %arg8[%c0_79, %c8_80] : memref<256x36xbf16, #tpu.memory_space<vmem>>, vector<256x4xbf16>
    tpu.vector_store %arg8[%c0_79, %c8_80], %67 {strides = array<i32>} : memref<256x36xbf16, #tpu.memory_space<vmem>>, vector<256x4xbf16>,
    %c1_81 = arith.constant 1 : index
    %c0_82 = arith.constant 0 : index
    %c0_83 = arith.constant 0 : index
    %69 = vector.load %arg7[%c1_81, %c0_82, %c0_83] : memref<18x18x4xf32, #tpu.memory_space<vmem>>, vector<16x16x4xf32>
    %70 = vector.shape_cast %69 : vector<16x16x4xf32> to vector<256x4xf32>
    %71 = arith.truncf %70 : vector<256x4xf32> to vector<256x4xbf16>
    %c0_84 = arith.constant 0 : index
    %c12_85 = arith.constant 12 : index
    %72 = vector.load %arg8[%c0_84, %c12_85] : memref<256x36xbf16, #tpu.memory_space<vmem>>, vector<256x4xbf16>
    tpu.vector_store %arg8[%c0_84, %c12_85], %71 {strides = array<i32>} : memref<256x36xbf16, #tpu.memory_space<vmem>>, vector<256x4xbf16>,
    %c1_86 = arith.constant 1 : index
    %c1_87 = arith.constant 1 : index
    %c0_88 = arith.constant 0 : index
    %73 = vector.load %arg7[%c1_86, %c1_87, %c0_88] : memref<18x18x4xf32, #tpu.memory_space<vmem>>, vector<16x16x4xf32>
    %74 = vector.shape_cast %73 : vector<16x16x4xf32> to vector<256x4xf32>
    %75 = arith.truncf %74 : vector<256x4xf32> to vector<256x4xbf16>
    %c0_89 = arith.constant 0 : index
    %c16_90 = arith.constant 16 : index
    %76 = vector.load %arg8[%c0_89, %c16_90] : memref<256x36xbf16, #tpu.memory_space<vmem>>, vector<256x4xbf16>
    tpu.vector_store %arg8[%c0_89, %c16_90], %75 {strides = array<i32>} : memref<256x36xbf16, #tpu.memory_space<vmem>>, vector<256x4xbf16>,
    %c1_91 = arith.constant 1 : index
    %c2_92 = arith.constant 2 : index
    %c0_93 = arith.constant 0 : index
    %77 = vector.load %arg7[%c1_91, %c2_92, %c0_93] : memref<18x18x4xf32, #tpu.memory_space<vmem>>, vector<16x16x4xf32>
    %78 = vector.shape_cast %77 : vector<16x16x4xf32> to vector<256x4xf32>
    %79 = arith.truncf %78 : vector<256x4xf32> to vector<256x4xbf16>
    %c0_94 = arith.constant 0 : index
    %c20_95 = arith.constant 20 : index
    %80 = vector.load %arg8[%c0_94, %c20_95] : memref<256x36xbf16, #tpu.memory_space<vmem>>, vector<256x4xbf16>
    tpu.vector_store %arg8[%c0_94, %c20_95], %79 {strides = array<i32>} : memref<256x36xbf16, #tpu.memory_space<vmem>>, vector<256x4xbf16>,
    %c2_96 = arith.constant 2 : index
    %c0_97 = arith.constant 0 : index
    %c0_98 = arith.constant 0 : index
    %81 = vector.load %arg7[%c2_96, %c0_97, %c0_98] : memref<18x18x4xf32, #tpu.memory_space<vmem>>, vector<16x16x4xf32>
    %82 = vector.shape_cast %81 : vector<16x16x4xf32> to vector<256x4xf32>
    %83 = arith.truncf %82 : vector<256x4xf32> to vector<256x4xbf16>
    %c0_99 = arith.constant 0 : index
    %c24_100 = arith.constant 24 : index
    %84 = vector.load %arg8[%c0_99, %c24_100] : memref<256x36xbf16, #tpu.memory_space<vmem>>, vector<256x4xbf16>
    tpu.vector_store %arg8[%c0_99, %c24_100], %83 {strides = array<i32>} : memref<256x36xbf16, #tpu.memory_space<vmem>>, vector<256x4xbf16>,
    %c2_101 = arith.constant 2 : index
    %c1_102 = arith.constant 1 : index
    %c0_103 = arith.constant 0 : index
    %85 = vector.load %arg7[%c2_101, %c1_102, %c0_103] : memref<18x18x4xf32, #tpu.memory_space<vmem>>, vector<16x16x4xf32>
    %86 = vector.shape_cast %85 : vector<16x16x4xf32> to vector<256x4xf32>
    %87 = arith.truncf %86 : vector<256x4xf32> to vector<256x4xbf16>
    %c0_104 = arith.constant 0 : index
    %c28_105 = arith.constant 28 : index
    %88 = vector.load %arg8[%c0_104, %c28_105] : memref<256x36xbf16, #tpu.memory_space<vmem>>, vector<256x4xbf16>
    tpu.vector_store %arg8[%c0_104, %c28_105], %87 {strides = array<i32>} : memref<256x36xbf16, #tpu.memory_space<vmem>>, vector<256x4xbf16>,
    %c2_106 = arith.constant 2 : index
    %c2_107 = arith.constant 2 : index
    %c0_108 = arith.constant 0 : index
    %89 = vector.load %arg7[%c2_106, %c2_107, %c0_108] : memref<18x18x4xf32, #tpu.memory_space<vmem>>, vector<16x16x4xf32>
    %90 = vector.shape_cast %89 : vector<16x16x4xf32> to vector<256x4xf32>
    %91 = arith.truncf %90 : vector<256x4xf32> to vector<256x4xbf16>
    %c0_109 = arith.constant 0 : index
    %c32_110 = arith.constant 32 : index
    %92 = vector.load %arg8[%c0_109, %c32_110] : memref<256x36xbf16, #tpu.memory_space<vmem>>, vector<256x4xbf16>
    tpu.vector_store %arg8[%c0_109, %c32_110], %91 {strides = array<i32>} : memref<256x36xbf16, #tpu.memory_space<vmem>>, vector<256x4xbf16>,
    %c0_111 = arith.constant 0 : index
    %c0_112 = arith.constant 0 : index
    %93 = vector.load %arg8[%c0_111, %c0_112] : memref<256x36xbf16, #tpu.memory_space<vmem>>, vector<256x36xbf16>
    %c0_113 = arith.constant 0 : index
    %c0_114 = arith.constant 0 : index
    %94 = vector.load %arg4[%c0_113, %c0_114] : memref<36x4xbf16, #tpu.memory_space<vmem>>, vector<36x4xbf16>
    %cst_115 = arith.constant dense<0.000000e+00> : vector<256x4xf32>
    %95 = tpu.matmul %93, %94, %cst_115 {dimension_numbers = #tpu.dot_dimension_numbers<[1], [0], [0], [1], [0, 0, 1, 1], [], []>} : vector<256x36xbf16>, vector<36x4xbf16>, vector<256x4xf32> -> vector<256x4xf32>
    %c0_116 = arith.constant 0 : index
    %c0_117 = arith.constant 0 : index
    %96 = vector.load %arg5[%c0_116, %c0_117] : memref<1x4xf32, #tpu.memory_space<vmem>>, vector<1x4xf32>
    %97 = vector.broadcast %96 : vector<1x4xf32> to vector<256x4xf32>
    %98 = arith.addf %95, %97 : vector<256x4xf32>
    %99 = vector.shape_cast %98 : vector<256x4xf32> to vector<16x16x4xf32>
    %c0_118 = arith.constant 0 : index
    %c0_119 = arith.constant 0 : index
    %c0_120 = arith.constant 0 : index
    %c0_121 = arith.constant 0 : index
    %100 = vector.load %arg1[%c0_118, %c0_119, %c0_120, %c0_121] : memref<1x16x16x4xf32, #tpu.memory_space<vmem>>, vector<1x16x16x4xf32>
    %101 = vector.shape_cast %100 : vector<1x16x16x4xf32> to vector<16x16x4xf32>
    %102 = arith.addf %99, %101 : vector<16x16x4xf32>
    %103 = vector.shape_cast %102 : vector<16x16x4xf32> to vector<1x16x16x4xf32>
    %c0_122 = arith.constant 0 : index
    %c0_123 = arith.constant 0 : index
    %c0_124 = arith.constant 0 : index
    %c0_125 = arith.constant 0 : index
    %104 = vector.load %arg6[%c0_122, %c0_123, %c0_124, %c0_125] : memref<1x16x16x4xf32, #tpu.memory_space<vmem>>, vector<1x16x16x4xf32>
    tpu.vector_store %arg6[%c0_122, %c0_123, %c0_124, %c0_125], %103 {strides = array<i32>} : memref<1x16x16x4xf32, #tpu.memory_space<vmem>>, vector<1x16x16x4xf32>,
    return
  }
  func.func @transform_0(%arg0: i32) -> (i32, i32, i32, i32) {
    %c0_i32 = arith.constant 0 : i32
    %c0_i32_0 = arith.constant 0 : i32
    %c0_i32_1 = arith.constant 0 : i32
    %c0_i32_2 = arith.constant 0 : i32
    return %arg0, %c0_i32, %c0_i32_0, %c0_i32_1 : i32, i32, i32, i32
  }
  func.func @transform_1(%arg0: i32) -> (i32, i32) {
    %c0_i32 = arith.constant 0 : i32
    %c0_i32_0 = arith.constant 0 : i32
    %c0_i32_1 = arith.constant 0 : i32
    return %c0_i32, %c0_i32_0 : i32, i32
  }
  func.func @transform_2(%arg0: i32) -> (i32, i32) {
    %c0_i32 = arith.constant 0 : i32
    %c0_i32_0 = arith.constant 0 : i32
    %c0_i32_1 = arith.constant 0 : i32
    return %c0_i32, %c0_i32_0 : i32, i32
  }
  func.func @transform_3(%arg0: i32) -> (i32, i32) {
    %c0_i32 = arith.constant 0 : i32
    %c0_i32_0 = arith.constant 0 : i32
    %c0_i32_1 = arith.constant 0 : i32
    return %c0_i32, %c0_i32_0 : i32, i32
  }
  func.func @transform_4(%arg0: i32) -> (i32, i32) {
    %c0_i32 = arith.constant 0 : i32
    %c0_i32_0 = arith.constant 0 : i32
    %c0_i32_1 = arith.constant 0 : i32
    return %c0_i32, %c0_i32_0 : i32, i32
  }
  func.func @transform_5(%arg0: i32) -> (i32, i32, i32, i32) {
    %c0_i32 = arith.constant 0 : i32
    %c0_i32_0 = arith.constant 0 : i32
    %c0_i32_1 = arith.constant 0 : i32
    %c0_i32_2 = arith.constant 0 : i32
    return %arg0, %c0_i32, %c0_i32_0, %c0_i32_1 : i32, i32, i32, i32
  }
}

</mosaic_0001>

<bundles_post_ra>
// kernel: tpu_custom_call.1
= control target key start
LH: loop header
LB: loop body
LE: loop exit
PB: predicated region body
PF: predicated region fallthrough
CT: control target
= control target key end

     0   :  { %s7200_s18 = smov 0   ;;  %s9166_s0 = inlined_call_operand.vmem [shape: f32[2,16,16,4], index: 0, kind: input, shape index: {}]   ;;  %s9167_s1 = inlined_call_operand.vmem [shape: bf16[36,4], index: 1, kind: input, shape index: {}]   ;;  %s9168_s2 = inlined_call_operand.vmem [shape: f32[1,4], index: 2, kind: input, shape index: {}]   ;;  %s9169_s3 = inlined_call_operand.vmem [shape: bf16[36,4], index: 3, kind: input, shape index: {}]   ;;  %s9170_s4 = inlined_call_operand.vmem [shape: f32[1,4], index: 4, kind: input, shape index: {}]   ;;  %s9171_s5 = inlined_call_operand.vmem [shape: f32[2,16,16,4], index: 5, kind: output, shape index: {}]  }
   0x1 LB: > { %s5746_s19 = sadd.s32 4294967295, %s7159_s18   ;;  %p5750_p0 = scmp.ge.s32.totalorder %s7159_s18, 1  ;;  %s7159_s18 = sphi %s7200_s18, %s15_s18  }
   0x2   : > { %p187_p1 = scmp.lt.s32.totalorder %s7159_s18, 3 }
   0x4   : > { %p188_p2 = pnand %p5750_p0, %p187_p1 }
   0x5   : > { %p7210_p3 = scmp.lt.s32.totalorder (!%p188_p2), %s5746_s19, 1  ;;  %s7162_s25 = smov (!%p188_p2), 4  }
   0x6   : > { %191 = sbr.rel (%p188_p2) target bundleno = 1662 (0x67e), region = 40  ;;  %s7163_s26 = smov (!%p188_p2), 8  }
   0x7   : > { %s7164_s27 = smov (!%p188_p2), 12   ;;  %s7165_s28 = smov (!%p188_p2), 16  }
   0x8   : > { %s7166_s29 = smov (!%p188_p2), 20   ;;  %s7167_s30 = smov (!%p188_p2), 24  }
   0x9   : > { %s7168_s6 = smov (!%p188_p2), 28   ;;  %s7169_s13 = smov (!%p188_p2), 32  }
   0xb   : > { %vm226_vm0 = vcmask 31744   ;;  %vm229_vm1 = vcmask 25600   ;;  %vm235_vm2 = vcmask 24576   ;;  %v7161_v0 = vmov 0.0   ;;  %s9174_s19 = smov (!%p7210_p3, %s5746_s19), 1 }
   0xc   : > { %227 = vst.msk [vmem:[#allocation2] sm:$0xff] %vm226_vm0, %v7161_v0  ;;  %228 = vst.msk [vmem:[#allocation2 + $0x8] sm:$0xff] %vm226_vm0, %v7161_v0  ;;  %s6405_s21 = sshll.u32 %s9174_s19, 8  ;;  %vm497_vm3 = vcmask 27648   ;;  %vm754_vm4 = vcmask 60448   ;;  %vm1011_vm5 = vcmask 93248  }
   0xd   : > { %232 = vst.msk [vmem:[#allocation2 + $0x198] sm:$0xff] %vm226_vm0, %v7161_v0  ;;  %233 = vst.msk [vmem:[#allocation2 + $0x1a0] sm:$0xff] %vm226_vm0, %v7161_v0  ;;  %s7266_s24 = scalar_lea.vmem %s9166_s0, %s6405_s21  ;;  %vm1268_vm6 = vcmask 126048   ;;  %vm1525_vm7 = vcmask 158848   ;;  %vm1782_vm8 = vcmask 191648   ;;  %vm2775_vm9 = vcmask 1041408  }
   0xe   : > { %230 = vst.msk [vmem:[#allocation2 + $0x10] sm:$0x3] %vm229_vm1, %v7161_v0  ;;  %234 = vst.msk [vmem:[#allocation2 + $0x1a8] sm:$0x3] %vm229_vm1, %v7161_v0  ;;  %v272_v1 = vld [vmem:[%s7266_s24] sm:$0xff]  ;;  %v274_v2 = vld [vmem:[%s7266_s24 + $0x10] sm:$0xff] }
   0xf   : > { %237 = vst.msk [vmem:[#allocation2 + $0x18] sm:$0x1] %vm235_vm2, %v7161_v0  ;;  %238 = vst.msk [vmem:[#allocation2 + $0x30] sm:$0x1] %vm235_vm2, %v7161_v0  ;;  %v273_v3 = vld [vmem:[%s7266_s24 + $0x8] sm:$0xff]  ;;  %v276_v4 = vld [vmem:[%s7266_s24 + $0x20] sm:$0xff] }
  0x10   : > { %239 = vst.msk [vmem:[#allocation2 + $0x48] sm:$0x1] %vm235_vm2, %v7161_v0  ;;  %240 = vst.msk [vmem:[#allocation2 + $0x60] sm:$0x1] %vm235_vm2, %v7161_v0  ;;  %v275_v5 = vld [vmem:[%s7266_s24 + $0x18] sm:$0xff]  ;;  %v278_v6 = vld [vmem:[%s7266_s24 + $0x30] sm:$0xff] }
  0x11   : > { %241 = vst.msk [vmem:[#allocation2 + $0x78] sm:$0x1] %vm235_vm2, %v7161_v0  ;;  %242 = vst.msk [vmem:[#allocation2 + $0x90] sm:$0x1] %vm235_vm2, %v7161_v0  ;;  %v277_v9 = vld [vmem:[%s7266_s24 + $0x28] sm:$0xff]  ;;  %v280_v11 = vld [vmem:[%s7266_s24 + $0x40] sm:$0xff] }
  0x12   : > { %243 = vst.msk [vmem:[#allocation2 + $0xa8] sm:$0x1] %vm235_vm2, %v7161_v0  ;;  %244 = vst.msk [vmem:[#allocation2 + $0xc0] sm:$0x1] %vm235_vm2, %v7161_v0  ;;  %v279_v12 = vld [vmem:[%s7266_s24 + $0x38] sm:$0xff]  ;;  %v282_v13 = vld [vmem:[%s7266_s24 + $0x50] sm:$0xff] }
  0x13   : > { %245 = vst.msk [vmem:[#allocation2 + $0xd8] sm:$0x1] %vm235_vm2, %v7161_v0  ;;  %246 = vst.msk [vmem:[#allocation2 + $0xf0] sm:$0x1] %vm235_vm2, %v7161_v0  ;;  %v530_v7 = vld [vmem:[#allocation2 + $0x1] sm:$0xff]  ;;  %v283_v16 = vld [vmem:[%s7266_s24 + $0x58] sm:$0xff] }
  0x14   : > { %247 = vst.msk [vmem:[#allocation2 + $0x108] sm:$0x1] %vm235_vm2, %v7161_v0  ;;  %248 = vst.msk [vmem:[#allocation2 + $0x120] sm:$0x1] %vm235_vm2, %v7161_v0  ;;  %v6439_v10 = vpack.c.bf16 %v530_v7, %v530_v7  ;;  %v281_v14 = vld [vmem:[%s7266_s24 + $0x48] sm:$0xff]  ;;  %v284_v15 = vld [vmem:[%s7266_s24 + $0x60] sm:$0xff] }
  0x15   : > { %249 = vst.msk [vmem:[#allocation2 + $0x138] sm:$0x1] %vm235_vm2, %v7161_v0  ;;  %250 = vst.msk [vmem:[#allocation2 + $0x150] sm:$0x1] %vm235_vm2, %v7161_v0  ;;  %v531_v8 = vld [vmem:[#allocation2 + $0x9] sm:$0xff]  ;;  %v288_v20 = vld [vmem:[%s7266_s24 + $0x80] sm:$0xff] }
  0x16   : > { %251 = vst.msk [vmem:[#allocation2 + $0x168] sm:$0x1] %vm235_vm2, %v7161_v0  ;;  %252 = vst.msk [vmem:[#allocation2 + $0x180] sm:$0x1] %vm235_vm2, %v7161_v0  ;;  %658 = vrot.lane.b32.xlu0 %v6439_v10, %s7162_s25  ;;  %v6440_v17 = vpack.c.bf16 %v531_v8, %v531_v8  ;;  %v286_v18 = vld [vmem:[%s7266_s24 + $0x70] sm:$0xff]  ;;  %v285_v19 = vld [vmem:[%s7266_s24 + $0x68] sm:$0xff] }
  0x17   : > { %255 = vst.msk [vmem:[#allocation2 + $0x29] sm:$0x1] %vm235_vm2, %v7161_v0  ;;  %256 = vst.msk [vmem:[#allocation2 + $0x41] sm:$0x1] %vm235_vm2, %v7161_v0  ;;  %v287_v21 = vld [vmem:[%s7266_s24 + $0x78] sm:$0xff]  ;;  %v290_v22 = vld [vmem:[%s7266_s24 + $0x90] sm:$0xff] }
  0x18   : > { %257 = vst.msk [vmem:[#allocation2 + $0x59] sm:$0x1] %vm235_vm2, %v7161_v0  ;;  %258 = vst.msk [vmem:[#allocation2 + $0x71] sm:$0x1] %vm235_vm2, %v7161_v0  ;;  %v289_v23 = vld [vmem:[%s7266_s24 + $0x88] sm:$0xff]  ;;  %v292_v24 = vld [vmem:[%s7266_s24 + $0xa0] sm:$0xff] }
  0x19   : > { %259 = vst.msk [vmem:[#allocation2 + $0x89] sm:$0x1] %vm235_vm2, %v7161_v0  ;;  %260 = vst.msk [vmem:[#allocation2 + $0xa1] sm:$0x1] %vm235_vm2, %v7161_v0  ;;  %v291_v25 = vld [vmem:[%s7266_s24 + $0x98] sm:$0xff]  ;;  %v294_v26 = vld [vmem:[%s7266_s24 + $0xb0] sm:$0xff] }
  0x1a   : > { %261 = vst.msk [vmem:[#allocation2 + $0xb9] sm:$0x1] %vm235_vm2, %v7161_v0  ;;  %262 = vst.msk [vmem:[#allocation2 + $0xd1] sm:$0x1] %vm235_vm2, %v7161_v0  ;;  %660 = vrot.lane.b32.xlu0 %v6440_v17, %s7162_s25  ;;  %v293_v33 = vld [vmem:[%s7266_s24 + $0xa8] sm:$0xff]  ;;  %v296_v34 = vld [vmem:[%s7266_s24 + $0xc0] sm:$0xff] }
  0x1b   : > { %263 = vst.msk [vmem:[#allocation2 + $0xe9] sm:$0x1] %vm235_vm2, %v7161_v0  ;;  %264 = vst.msk [vmem:[#allocation2 + $0x101] sm:$0x1] %vm235_vm2, %v7161_v0  ;;  %v295_v41 = vld [vmem:[%s7266_s24 + $0xb8] sm:$0xff]  ;;  %v298_v42 = vld [vmem:[%s7266_s24 + $0xd0] sm:$0xff] }
  0x1c   : > { %265 = vst.msk [vmem:[#allocation2 + $0x119] sm:$0x1] %vm235_vm2, %v7161_v0  ;;  %266 = vst.msk [vmem:[#allocation2 + $0x131] sm:$0x1] %vm235_vm2, %v7161_v0  ;;  %v297_v43 = vld [vmem:[%s7266_s24 + $0xc8] sm:$0xff]  ;;  %v300_v45 = vld [vmem:[%s7266_s24 + $0xe0] sm:$0xff] }
  0x1d   : > { %267 = vst.msk [vmem:[#allocation2 + $0x149] sm:$0x1] %vm235_vm2, %v7161_v0  ;;  %268 = vst.msk [vmem:[#allocation2 + $0x161] sm:$0x1] %vm235_vm2, %v7161_v0  ;;  %v299_v46 = vld [vmem:[%s7266_s24 + $0xd8] sm:$0xff]  ;;  %v301_v48 = vld [vmem:[%s7266_s24 + $0xe8] sm:$0xff] }
  0x1e   : > { %269 = vst.msk [vmem:[#allocation2 + $0x179] sm:$0x1] %vm235_vm2, %v7161_v0  ;;  %270 = vst.msk [vmem:[#allocation2 + $0x191] sm:$0x1] %vm235_vm2, %v7161_v0  ;;  %v338_v63 = vld [vmem:[#allocation2 + $0x8] sm:$0xff]  ;;  %vm2040_vm10 = vcmask 224448  }
  0x1f   : > { %254 = vst.msk [vmem:[#allocation2 + $0x11] sm:$0x1] %vm235_vm2, %v7161_v0  ;;  %236 = vst.msk [vmem:[#allocation2] sm:$0x1] %vm235_vm2, %v7161_v0  ;;  %vm2297_vm11 = vcmask 257248   ;;  %vm2554_vm12 = vcmask 290048  }
  0x20   : > { %253 = vst.msk [vmem:[#allocation2 + $0x198] sm:$0x1] %vm235_vm2, %v7161_v0  ;;  %271 = vst.msk [vmem:[#allocation2 + $0x1a9] sm:$0x1] %vm235_vm2, %v7161_v0  ;;  %vm2726_vm13 = vcmask 293888  }
  0x21   : > { %305 = vst.msk [vmem:[#allocation2 + $0x19] sm:$0xff] %vm226_vm0, %v272_v1  ;;  %307 = vst.msk [vmem:[#allocation2 + $0x31] sm:$0xff] %vm226_vm0, %v274_v2  ;;  %v6408_v2 = vpack.c.bf16 %v338_v63, %v338_v63 }
  0x22   : > { %306 = vst.msk [vmem:[#allocation2 + $0x21] sm:$0xff] %vm226_vm0, %v273_v3  ;;  %309 = vst.msk [vmem:[#allocation2 + $0x49] sm:$0xff] %vm226_vm0, %v276_v4 }
  0x23   : > { %308 = vst.msk [vmem:[#allocation2 + $0x39] sm:$0xff] %vm226_vm0, %v275_v5  ;;  %311 = vst.msk [vmem:[#allocation2 + $0x61] sm:$0xff] %vm226_vm0, %v278_v6 }
  0x24   : > { %310 = vst.msk [vmem:[#allocation2 + $0x51] sm:$0xff] %vm226_vm0, %v277_v9  ;;  %313 = vst.msk [vmem:[#allocation2 + $0x79] sm:$0xff] %vm226_vm0, %v280_v11 }
  0x25   : > { %312 = vst.msk [vmem:[#allocation2 + $0x69] sm:$0xff] %vm226_vm0, %v279_v12  ;;  %315 = vst.msk [vmem:[#allocation2 + $0x91] sm:$0xff] %vm226_vm0, %v282_v13 }
  0x26   : > { %314 = vst.msk [vmem:[#allocation2 + $0x81] sm:$0xff] %vm226_vm0, %v281_v14  ;;  %317 = vst.msk [vmem:[#allocation2 + $0xa9] sm:$0xff] %vm226_vm0, %v284_v15  ;;  %v337_v60 = vld [vmem:[#allocation2] sm:$0xff] }
  0x27   : > { %316 = vst.msk [vmem:[#allocation2 + $0x99] sm:$0xff] %vm226_vm0, %v283_v16  ;;  %319 = vst.msk [vmem:[#allocation2 + $0xc1] sm:$0xff] %vm226_vm0, %v286_v18  ;;  %v6407_v62 = vpack.c.bf16 %v337_v60, %v337_v60 }
  0x28   : > { %318 = vst.msk [vmem:[#allocation2 + $0xb1] sm:$0xff] %vm226_vm0, %v285_v19  ;;  %321 = vst.msk [vmem:[#allocation2 + $0xd9] sm:$0xff] %vm226_vm0, %v288_v20  ;;  %v532_v27 = vld [vmem:[#allocation2 + $0x19] sm:$0xff]  ;;  %v534_v28 = vld [vmem:[#allocation2 + $0x31] sm:$0xff] }
  0x29   : > { %320 = vst.msk [vmem:[#allocation2 + $0xc9] sm:$0xff] %vm226_vm0, %v287_v21  ;;  %323 = vst.msk [vmem:[#allocation2 + $0xf1] sm:$0xff] %vm226_vm0, %v290_v22  ;;  %v533_v29 = vld [vmem:[#allocation2 + $0x21] sm:$0xff]  ;;  %v6441_v30 = vpack.c.bf16 %v532_v27, %v532_v27  ;;  %v6443_v31 = vpack.c.bf16 %v534_v28, %v534_v28  ;;  %v536_v32 = vld [vmem:[#allocation2 + $0x49] sm:$0xff] }
  0x2a   : > { %322 = vst.msk [vmem:[#allocation2 + $0xe1] sm:$0xff] %vm226_vm0, %v289_v23  ;;  %325 = vst.msk [vmem:[#allocation2 + $0x109] sm:$0xff] %vm226_vm0, %v292_v24  ;;  %v6442_v35 = vpack.c.bf16 %v533_v29, %v533_v29  ;;  %v535_v36 = vld [vmem:[#allocation2 + $0x39] sm:$0xff]  ;;  %v6445_v37 = vpack.c.bf16 %v536_v32, %v536_v32  ;;  %v538_v38 = vld [vmem:[#allocation2 + $0x61] sm:$0xff] }
  0x2b   : > { %324 = vst.msk [vmem:[#allocation2 + $0xf9] sm:$0xff] %vm226_vm0, %v291_v25  ;;  %327 = vst.msk [vmem:[#allocation2 + $0x121] sm:$0xff] %vm226_vm0, %v294_v26  ;;  %662 = vrot.lane.b32.xlu1 %v6441_v30, %s7162_s25  ;;  %666 = vrot.lane.b32.xlu0 %v6443_v31, %s7162_s25  ;;  %v6444_v39 = vpack.c.bf16 %v535_v36, %v535_v36  ;;  %v537_v40 = vld [vmem:[#allocation2 + $0x51] sm:$0xff]  ;;  %v6447_v44 = vpack.c.bf16 %v538_v38, %v538_v38  ;;  %v540_v47 = vld [vmem:[#allocation2 + $0x79] sm:$0xff] }
  0x2c   : > { %326 = vst.msk [vmem:[#allocation2 + $0x111] sm:$0xff] %vm226_vm0, %v293_v33  ;;  %329 = vst.msk [vmem:[#allocation2 + $0x139] sm:$0xff] %vm226_vm0, %v296_v34  ;;  %v6446_v49 = vpack.c.bf16 %v537_v40, %v537_v40  ;;  %v539_v50 = vld [vmem:[#allocation2 + $0x69] sm:$0xff]  ;;  %v6449_v51 = vpack.c.bf16 %v540_v47, %v540_v47  ;;  %v542_v52 = vld [vmem:[#allocation2 + $0x91] sm:$0xff] }
  0x2d   : > { %328 = vst.msk [vmem:[#allocation2 + $0x129] sm:$0xff] %vm226_vm0, %v295_v41  ;;  %331 = vst.msk [vmem:[#allocation2 + $0x151] sm:$0xff] %vm226_vm0, %v298_v42  ;;  %v6448_v53 = vpack.c.bf16 %v539_v50, %v539_v50  ;;  %v541_v54 = vld [vmem:[#allocation2 + $0x81] sm:$0xff]  ;;  %v6451_v55 = vpack.c.bf16 %v542_v52, %v542_v52  ;;  %v544_v56 = vld [vmem:[#allocation2 + $0xa9] sm:$0xff] }
  0x2e   : > { %330 = vst.msk [vmem:[#allocation2 + $0x141] sm:$0xff] %vm226_vm0, %v297_v43  ;;  %333 = vst.msk [vmem:[#allocation2 + $0x169] sm:$0xff] %vm226_vm0, %v300_v45  ;;  %v6450_v57 = vpack.c.bf16 %v541_v54, %v541_v54  ;;  %v543_v58 = vld [vmem:[#allocation2 + $0x99] sm:$0xff]  ;;  %v6453_v59 = vpack.c.bf16 %v544_v56, %v544_v56  ;;  %v546_v61 = vld [vmem:[#allocation2 + $0xc1] sm:$0xff] }
  0x2f   : > { %664 = vrot.lane.b32.xlu1 %v6442_v35, %s7162_s25  ;;  %670 = vrot.lane.b32.xlu0 %v6445_v37, %s7162_s25  ;;  %332 = vst.msk [vmem:[#allocation2 + $0x159] sm:$0xff] %vm226_vm0, %v299_v46  ;;  %334 = vst.msk [vmem:[#allocation2 + $0x171] sm:$0xff] %vm226_vm0, %v301_v48  ;;  %v339_v0 = vld [vmem:[#allocation2 + $0x18] sm:$0xff]  ;;  %v6452_v1 = vpack.c.bf16 %v543_v58, %v543_v58  ;;  %v341_v4 = vld [vmem:[#allocation2 + $0x30] sm:$0xff]  ;;  %v6455_v10 = vpack.c.bf16 %v546_v61, %v546_v61 }
  0x30   : > { %v7341_v3 = vpack.c.bf16 %v339_v0, %v339_v0  ;;  %v340_v5 = vld [vmem:[#allocation2 + $0x20] sm:$0xff]  ;;  %v545_v6 = vld [vmem:[#allocation2 + $0xb1] sm:$0xff]  ;;  %498 = vst.msk [vmem:[#allocation3] sm:$0xf] %vm497_vm3, %v6407_v62  ;;  %v7344_v7 = vpack.c.bf16 %v341_v4, %v341_v4  ;;  %v343_v9 = vld [vmem:[#allocation2 + $0x48] sm:$0xff] }
  0x31   : > { %v7346_v8 = vpack.c.bf16 %v340_v5, %v340_v5  ;;  %v7349_v11 = vld [vmem:[#allocation2 + $0xd9] sm:$0xff]  ;;  %499 = vst.msk [vmem:[#allocation3 + $0x4] sm:$0xf] %vm497_vm3, %v6408_v2  ;;  %v7354_v12 = vpack.c.bf16 %v343_v9, %v343_v9  ;;  %v7356_v15 = vld [vmem:[#allocation2 + $0xc9] sm:$0xff]  ;;  %v6454_v21 = vpack.c.bf16 %v545_v6, %v545_v6  ;;  %v550_v28 = vld [vmem:[#allocation2 + $0xf1] sm:$0xff] }
  0x32   : > { %500 = vst.msk [vmem:[#allocation3 + $0x8] sm:$0xf] %vm497_vm3, %v7341_v3  ;;  %v342_v13 = vld [vmem:[#allocation2 + $0x38] sm:$0xff]  ;;  %v345_v14 = vld [vmem:[#allocation2 + $0x60] sm:$0xff]  ;;  %502 = vst.msk [vmem:[#allocation3 + $0x10] sm:$0xf] %vm497_vm3, %v7344_v7  ;;  %v6457_v35 = vpack.c.bf16 %v7349_v11, %v7349_v11  ;;  %v6456_v48 = vpack.c.bf16 %v7356_v15, %v7356_v15 }
  0x33   : > { %668 = vrot.lane.b32.xlu1 %v6444_v39, %s7162_s25  ;;  %674 = vrot.lane.b32.xlu0 %v6447_v44, %s7162_s25  ;;  %501 = vst.msk [vmem:[#allocation3 + $0xc] sm:$0xf] %vm497_vm3, %v7346_v8  ;;  %v7362_v16 = vpack.c.bf16 %v342_v13, %v342_v13  ;;  %v7364_v17 = vpack.c.bf16 %v345_v14, %v345_v14  ;;  %v344_v18 = vld [vmem:[#allocation2 + $0x50] sm:$0xff]  ;;  %v347_v19 = vld [vmem:[#allocation2 + $0x78] sm:$0xff]  ;;  %v346_v20 = vld [vmem:[#allocation2 + $0x68] sm:$0xff] }
  0x34   : > { %504 = vst.msk [vmem:[#allocation3 + $0x18] sm:$0xf] %vm497_vm3, %v7354_v12  ;;  %v7369_v22 = vpack.c.bf16 %v344_v18, %v344_v18  ;;  %v7371_v23 = vpack.c.bf16 %v347_v19, %v347_v19  ;;  %v7373_v24 = vpack.c.bf16 %v346_v20, %v346_v20  ;;  %v349_v25 = vld [vmem:[#allocation2 + $0x90] sm:$0xff]  ;;  %v348_v26 = vld [vmem:[#allocation2 + $0x80] sm:$0xff]  ;;  %v351_v27 = vld [vmem:[#allocation2 + $0xa8] sm:$0xff] }
  0x35   : > { %503 = vst.msk [vmem:[#allocation3 + $0x14] sm:$0xf] %vm497_vm3, %v7362_v16  ;;  %506 = vst.msk [vmem:[#allocation3 + $0x20] sm:$0xf] %vm497_vm3, %v7364_v17  ;;  %v7379_v29 = vpack.c.bf16 %v349_v25, %v349_v25  ;;  %v7381_v30 = vpack.c.bf16 %v348_v26, %v348_v26  ;;  %v7383_v31 = vpack.c.bf16 %v351_v27, %v351_v27  ;;  %v350_v32 = vld [vmem:[#allocation2 + $0x98] sm:$0xff]  ;;  %v353_v33 = vld [vmem:[#allocation2 + $0xc0] sm:$0xff] }
  0x36   : > { %v352_v34 = vld [vmem:[#allocation2 + $0xb0] sm:$0xff]  ;;  %505 = vst.msk [vmem:[#allocation3 + $0x1c] sm:$0xf] %vm497_vm3, %v7369_v22  ;;  %508 = vst.msk [vmem:[#allocation3 + $0x28] sm:$0xf] %vm497_vm3, %v7371_v23  ;;  %v7394_v36 = vpack.c.bf16 %v350_v32, %v350_v32  ;;  %v7396_v37 = vpack.c.bf16 %v353_v33, %v353_v33  ;;  %v355_v39 = vld [vmem:[#allocation2 + $0xd8] sm:$0xff] }
  0x37   : > { %672 = vrot.lane.b32.xlu1 %v6446_v49, %s7162_s25  ;;  %678 = vrot.lane.b32.xlu0 %v6449_v51, %s7162_s25  ;;  %507 = vst.msk [vmem:[#allocation3 + $0x24] sm:$0xf] %vm497_vm3, %v7373_v24  ;;  %v7398_v38 = vpack.c.bf16 %v352_v34, %v352_v34  ;;  %v354_v40 = vld [vmem:[#allocation2 + $0xc8] sm:$0xff]  ;;  %v357_v41 = vld [vmem:[#allocation2 + $0xf0] sm:$0xff]  ;;  %510 = vst.msk [vmem:[#allocation3 + $0x30] sm:$0xf] %vm497_vm3, %v7379_v29  ;;  %v7406_v42 = vpack.c.bf16 %v355_v39, %v355_v39 }
  0x38   : > { %509 = vst.msk [vmem:[#allocation3 + $0x2c] sm:$0xf] %vm497_vm3, %v7381_v30  ;;  %512 = vst.msk [vmem:[#allocation3 + $0x38] sm:$0xf] %vm497_vm3, %v7383_v31  ;;  %v7408_v43 = vpack.c.bf16 %v354_v40, %v354_v40  ;;  %v7410_v44 = vpack.c.bf16 %v357_v41, %v357_v41  ;;  %v356_v45 = vld [vmem:[#allocation2 + $0xe0] sm:$0xff]  ;;  %v359_v46 = vld [vmem:[#allocation2 + $0x108] sm:$0xff] }
  0x39   : > { %v358_v47 = vld [vmem:[#allocation2 + $0xf8] sm:$0xff]  ;;  %511 = vst.msk [vmem:[#allocation3 + $0x34] sm:$0xf] %vm497_vm3, %v7394_v36  ;;  %514 = vst.msk [vmem:[#allocation3 + $0x40] sm:$0xf] %vm497_vm3, %v7396_v37  ;;  %v7421_v49 = vpack.c.bf16 %v356_v45, %v356_v45  ;;  %v7423_v50 = vpack.c.bf16 %v359_v46, %v359_v46  ;;  %v361_v52 = vld [vmem:[#allocation2 + $0x120] sm:$0xff] }
  0x3a   : > { %513 = vst.msk [vmem:[#allocation3 + $0x3c] sm:$0xf] %vm497_vm3, %v7398_v38  ;;  %v7425_v51 = vpack.c.bf16 %v358_v47, %v358_v47  ;;  %v549_v54 = vld [vmem:[#allocation2 + $0xe1] sm:$0xff]  ;;  %516 = vst.msk [vmem:[#allocation3 + $0x48] sm:$0xf] %vm497_vm3, %v7406_v42  ;;  %v552_v58 = vld [vmem:[#allocation2 + $0x109] sm:$0xff] }
  0x3b   : > { %676 = vrot.lane.b32.xlu1 %v6448_v53, %s7162_s25  ;;  %682 = vrot.lane.b32.xlu0 %v6451_v55, %s7162_s25  ;;  %v360_v53 = vld [vmem:[#allocation2 + $0x110] sm:$0xff]  ;;  %515 = vst.msk [vmem:[#allocation3 + $0x44] sm:$0xf] %vm497_vm3, %v7408_v43  ;;  %518 = vst.msk [vmem:[#allocation3 + $0x50] sm:$0xf] %vm497_vm3, %v7410_v44  ;;  %v7433_v55 = vpack.c.bf16 %v361_v52, %v361_v52  ;;  %v6458_v60 = vpack.c.bf16 %v549_v54, %v549_v54  ;;  %v363_v61 = vld [vmem:[#allocation2 + $0x138] sm:$0xff] }
  0x3c   : > { %v7435_v56 = vpack.c.bf16 %v360_v53, %v360_v53  ;;  %517 = vst.msk [vmem:[#allocation3 + $0x4c] sm:$0xf] %vm497_vm3, %v7421_v49  ;;  %520 = vst.msk [vmem:[#allocation3 + $0x58] sm:$0xf] %vm497_vm3, %v7423_v50  ;;  %v551_v63 = vld [vmem:[#allocation2 + $0xf9] sm:$0xff]  ;;  %v7451_v0 = vpack.c.bf16 %v363_v61, %v363_v61  ;;  %v554_v2 = vld [vmem:[#allocation2 + $0x121] sm:$0xff] }
  0x3d   : > { %519 = vst.msk [vmem:[#allocation3 + $0x54] sm:$0xf] %vm497_vm3, %v7425_v51  ;;  %522 = vst.msk [vmem:[#allocation3 + $0x60] sm:$0xf] %vm497_vm3, %v7433_v55  ;;  %v364_v4 = vld [vmem:[#allocation2 + $0x140] sm:$0xff]  ;;  %v6460_v5 = vpack.c.bf16 %v551_v63, %v551_v63  ;;  %v365_v6 = vld [vmem:[#allocation2 + $0x150] sm:$0xff]  ;;  %v6463_v13 = vpack.c.bf16 %v554_v2, %v554_v2 }
  0x3e   : > { %521 = vst.msk [vmem:[#allocation3 + $0x5c] sm:$0xf] %vm497_vm3, %v7435_v56  ;;  %524 = vst.msk [vmem:[#allocation3 + $0x68] sm:$0xf] %vm497_vm3, %v7451_v0  ;;  %v7459_v9 = vpack.c.bf16 %v364_v4, %v364_v4  ;;  %v7461_v11 = vpack.c.bf16 %v365_v6, %v365_v6  ;;  %v556_v14 = vld [vmem:[#allocation2 + $0x139] sm:$0xff]  ;;  %v367_v19 = vld [vmem:[#allocation2 + $0x168] sm:$0xff] }
  0x3f   : > { %680 = vrot.lane.b32.xlu1 %v6450_v57, %s7162_s25  ;;  %686 = vrot.lane.b32.xlu0 %v6453_v59, %s7162_s25  ;;  %v6459_v57 = vpack.c.bf16 %v550_v28, %v550_v28  ;;  %v362_v59 = vld [vmem:[#allocation2 + $0x128] sm:$0xff]  ;;  %v366_v15 = vld [vmem:[#allocation2 + $0x158] sm:$0xff]  ;;  %v7471_v25 = vpack.c.bf16 %v367_v19, %v367_v19  ;;  %v6465_v26 = vpack.c.bf16 %v556_v14, %v556_v14  ;;  %v368_v28 = vld [vmem:[#allocation2 + $0x170] sm:$0xff] }
  0x40   : > { %v7449_v62 = vpack.c.bf16 %v362_v59, %v362_v59  ;;  %525 = vst.msk [vmem:[#allocation3 + $0x6c] sm:$0xf] %vm497_vm3, %v7459_v9  ;;  %526 = vst.msk [vmem:[#allocation3 + $0x70] sm:$0xf] %vm497_vm3, %v7461_v11  ;;  %v7469_v20 = vpack.c.bf16 %v366_v15, %v366_v15  ;;  %v558_v27 = vld [vmem:[#allocation2 + $0x151] sm:$0xff]  ;;  %v7479_v33 = vpack.c.bf16 %v368_v28, %v368_v28  ;;  %v557_v34 = vld [vmem:[#allocation2 + $0x141] sm:$0xff] }
  0x41   : > { %528 = vst.msk [vmem:[#allocation3 + $0x78] sm:$0xf] %vm497_vm3, %v7471_v25  ;;  %v6467_v39 = vpack.c.bf16 %v558_v27, %v558_v27  ;;  %v560_v40 = vld [vmem:[#allocation2 + $0x169] sm:$0xff]  ;;  %v6466_v41 = vpack.c.bf16 %v557_v34, %v557_v34  ;;  %v559_v45 = vld [vmem:[#allocation2 + $0x159] sm:$0xff]  ;;  %v561_v53 = vld [vmem:[#allocation2 + $0x171] sm:$0xff] }
  0x42   : > { %523 = vst.msk [vmem:[#allocation3 + $0x64] sm:$0xf] %vm497_vm3, %v7449_v62  ;;  %527 = vst.msk [vmem:[#allocation3 + $0x74] sm:$0xf] %vm497_vm3, %v7469_v20  ;;  %v303_v46 = vld [vmem:[%s7266_s24 + $0xf8] sm:$0xff]  ;;  %v6469_v47 = vpack.c.bf16 %v560_v40, %v560_v40  ;;  %v6468_v52 = vpack.c.bf16 %v559_v45, %v559_v45  ;;  %v788_v59 = vld [vmem:[#allocation2 + $0xa] sm:$0xff] }
  0x43   : > { %684 = vrot.lane.b32.xlu1 %v6452_v1, %s7162_s25  ;;  %690 = vrot.lane.b32.xlu0 %v6455_v10, %s7162_s25  ;;  %v6461_v1 = vpack.c.bf16 %v552_v58, %v552_v58  ;;  %v553_v10 = vld [vmem:[#allocation2 + $0x111] sm:$0xff]  ;;  %529 = vst.msk [vmem:[#allocation3 + $0x7c] sm:$0xf] %vm497_vm3, %v7479_v33  ;;  %v6470_v58 = vpack.c.bf16 %v561_v53, %v561_v53  ;;  %v792_v6 = vld [vmem:[#allocation2 + $0x3a] sm:$0xff]  ;;  %v798_v34 = vld [vmem:[#allocation2 + $0x82] sm:$0xff] }
  0x44   : > { %v6462_v18 = vpack.c.bf16 %v553_v10, %v553_v10  ;;  %336 = vst.msk [vmem:[#allocation2 + $0x189] sm:$0xff] %vm226_vm0, %v303_v46  ;;  %v791_v61 = vld [vmem:[#allocation2 + $0x32] sm:$0xff]  ;;  %v6472_v63 = vpack.c.bf16 %v788_v59, %v788_v59  ;;  %v793_v4 = vld [vmem:[#allocation2 + $0x4a] sm:$0xff]  ;;  %v6476_v14 = vpack.c.bf16 %v792_v6, %v792_v6  ;;  %v797_v19 = vld [vmem:[#allocation2 + $0x7a] sm:$0xff]  ;;  %v6482_v40 = vpack.c.bf16 %v798_v34, %v798_v34 }
  0x45   : > { %v6475_v2 = vpack.c.bf16 %v791_v61, %v791_v61  ;;  %v6477_v10 = vpack.c.bf16 %v793_v4, %v793_v4  ;;  %v794_v15 = vld [vmem:[#allocation2 + $0x52] sm:$0xff]  ;;  %v6481_v27 = vpack.c.bf16 %v797_v19, %v797_v19  ;;  %v803_v46 = vld [vmem:[#allocation2 + $0xc2] sm:$0xff]  ;;  %v805_v53 = vld [vmem:[#allocation2 + $0xda] sm:$0xff] }
  0x46   : > { %v799_v28 = vld [vmem:[#allocation2 + $0x92] sm:$0xff]  ;;  %v806_v61 = vld [vmem:[#allocation2 + $0xe2] sm:$0xff]  ;;  %v808_v4 = vld [vmem:[#allocation2 + $0xfa] sm:$0xff] }
  0x47   : > { %688 = vrot.lane.b32.xlu1 %v6454_v21, %s7162_s25  ;;  %694 = vrot.lane.b32.xlu0 %v6457_v35, %s7162_s25  ;;  %v555_v21 = vld [vmem:[#allocation2 + $0x129] sm:$0xff]  ;;  %v807_v59 = vld [vmem:[#allocation2 + $0xf2] sm:$0xff] }
  0x48   : > { %v6464_v32 = vpack.c.bf16 %v555_v21, %v555_v21  ;;  %v302_v35 = vld [vmem:[%s7266_s24 + $0xf0] sm:$0xff]  ;;  %v6478_v21 = vpack.c.bf16 %v794_v15, %v794_v15  ;;  %v811_v6 = vld [vmem:[#allocation2 + $0x122] sm:$0xff]  ;;  %v813_v15 = vld [vmem:[#allocation2 + $0x13a] sm:$0xff] }
  0x49   : > { %335 = vst.msk [vmem:[#allocation2 + $0x181] sm:$0xff] %vm226_vm0, %v302_v35  ;;  %v6483_v35 = vpack.c.bf16 %v799_v28, %v799_v28  ;;  %v812_v19 = vld [vmem:[#allocation2 + $0x12a] sm:$0xff] }
  0x4a   : > { %v6496_v28 = vpack.c.bf16 %v812_v19, %v812_v19 }
  0x4b   : > { %692 = vrot.lane.b32.xlu1 %v6456_v48, %s7162_s25  ;;  %698 = vrot.lane.b32.xlu0 %v6459_v57, %s7162_s25  ;;  %v787_v48 = vld [vmem:[#allocation2 + $0x2] sm:$0xff]  ;;  %v789_v57 = vld [vmem:[#allocation2 + $0x1a] sm:$0xff] }
  0x4c   : > { %v6471_v54 = vpack.c.bf16 %v787_v48, %v787_v48  ;;  %v802_v48 = vld [vmem:[#allocation2 + $0xb2] sm:$0xff] }
  0x4f   : > { %696 = vrot.lane.b32.xlu1 %v6458_v60, %s7162_s25  ;;  %702 = vrot.lane.b32.xlu0 %v6461_v1, %s7162_s25  ;;  %v6473_v60 = vpack.c.bf16 %v789_v57, %v789_v57  ;;  %v790_v1 = vld [vmem:[#allocation2 + $0x22] sm:$0xff]  ;;  %v804_v57 = vld [vmem:[#allocation2 + $0xca] sm:$0xff] }
  0x53   : > { %700 = vrot.lane.b32.xlu1 %v6460_v5, %s7162_s25  ;;  %706 = vrot.lane.b32.xlu0 %v6463_v13, %s7162_s25  ;;  %v6474_v5 = vpack.c.bf16 %v790_v1, %v790_v1  ;;  %v795_v13 = vld [vmem:[#allocation2 + $0x62] sm:$0xff]  ;;  %v809_v1 = vld [vmem:[#allocation2 + $0x10a] sm:$0xff] }
  0x57   : > { %704 = vrot.lane.b32.xlu1 %v6462_v18, %s7162_s25  ;;  %710 = vrot.lane.b32.xlu0 %v6465_v26, %s7162_s25  ;;  %v6479_v18 = vpack.c.bf16 %v795_v13, %v795_v13  ;;  %v796_v26 = vld [vmem:[#allocation2 + $0x6a] sm:$0xff]  ;;  %v810_v13 = vld [vmem:[#allocation2 + $0x112] sm:$0xff] }
  0x5b   : > { %708 = vrot.lane.b32.xlu1 %v6464_v32, %s7162_s25  ;;  %714 = vrot.lane.b32.xlu0 %v6467_v39, %s7162_s25  ;;  %v6480_v32 = vpack.c.bf16 %v796_v26, %v796_v26  ;;  %v801_v39 = vld [vmem:[#allocation2 + $0xaa] sm:$0xff]  ;;  %v815_v26 = vld [vmem:[#allocation2 + $0x152] sm:$0xff] }
  0x5c   : > { %v6485_v45 = vpack.c.bf16 %v801_v39, %v801_v39  ;;  %v6499_v34 = vpack.c.bf16 %v815_v26, %v815_v26  ;;  %v1304_v26 = vld [vmem:[#allocation2 + $0x39] sm:$0xff] }
  0x5f   : > { %712 = vrot.lane.b32.xlu1 %v6466_v41, %s7162_s25  ;;  %718 = vrot.lane.b32.xlu0 %v6469_v47, %s7162_s25  ;;  %v800_v41 = vld [vmem:[#allocation2 + $0x9a] sm:$0xff] }
  0x60   : > { %v6484_v47 = vpack.c.bf16 %v800_v41, %v800_v41  ;;  %v816_v41 = vld [vmem:[#allocation2 + $0x15a] sm:$0xff] }
  0x63   : > { %716 = vrot.lane.b32.xlu1 %v6468_v52, %s7162_s25  ;;  %915 = vrot.lane.b32.xlu0 %v6471_v54, %s7163_s26  ;;  %v6487_v52 = vpack.c.bf16 %v803_v46, %v803_v46  ;;  %v6486_v54 = vpack.c.bf16 %v802_v48, %v802_v48  ;;  %v6500_v48 = vpack.c.bf16 %v816_v41, %v816_v41 }
  0x67   : > { %720 = vrot.lane.b32.xlu1 %v6470_v58, %s7162_s25  ;;  %919 = vrot.lane.b32.xlu0 %v6473_v60, %s7163_s26  ;;  %v6489_v58 = vpack.c.bf16 %v805_v53, %v805_v53  ;;  %v6488_v60 = vpack.c.bf16 %v804_v57, %v804_v57 }
  0x6b   : > { %917 = vrot.lane.b32.xlu1 %v6472_v63, %s7163_s26  ;;  %923 = vrot.lane.b32.xlu0 %v6475_v2, %s7163_s26  ;;  %v6491_v63 = vpack.c.bf16 %v807_v59, %v807_v59  ;;  %v6490_v2 = vpack.c.bf16 %v806_v61, %v806_v61 }
  0x6f   : > { %921 = vrot.lane.b32.xlu1 %v6474_v5, %s7163_s26  ;;  %927 = vrot.lane.b32.xlu0 %v6477_v10, %s7163_s26  ;;  %v6493_v5 = vpack.c.bf16 %v809_v1, %v809_v1  ;;  %v6492_v10 = vpack.c.bf16 %v808_v4, %v808_v4  ;;  %v1075_v4 = vld [vmem:[#allocation2 + $0x188] sm:$0xff] }
  0x73   : > { %925 = vrot.lane.b32.xlu1 %v6476_v14, %s7163_s26  ;;  %931 = vrot.lane.b32.xlu0 %v6479_v18, %s7163_s26  ;;  %v6495_v14 = vpack.c.bf16 %v811_v6, %v811_v6  ;;  %v6494_v18 = vpack.c.bf16 %v810_v13, %v810_v13  ;;  %v1302_v13 = vld [vmem:[#allocation2 + $0x21] sm:$0xff] }
  0x77   : > { %929 = vrot.lane.b32.xlu1 %v6478_v21, %s7163_s26  ;;  %935 = vrot.lane.b32.xlu0 %v6481_v27, %s7163_s26  ;;  %v6497_v21 = vpack.c.bf16 %v813_v15, %v813_v15 }
  0x7b   : > { %933 = vrot.lane.b32.xlu1 %v6480_v32, %s7163_s26  ;;  %939 = vrot.lane.b32.xlu0 %v6483_v35, %s7163_s26  ;;  %v814_v32 = vld [vmem:[#allocation2 + $0x142] sm:$0xff]  ;;  %v817_v35 = vld [vmem:[#allocation2 + $0x16a] sm:$0xff] }
  0x7c   : > { %v6501_v46 = vpack.c.bf16 %v817_v35, %v817_v35  ;;  %v7643_v35 = vpack.c.bf16 %v1304_v26, %v1304_v26 }
  0x7f   : > { %937 = vrot.lane.b32.xlu1 %v6482_v40, %s7163_s26  ;;  %943 = vrot.lane.b32.xlu0 %v6485_v45, %s7163_s26  ;;  %v6498_v40 = vpack.c.bf16 %v814_v32, %v814_v32  ;;  %v1307_v32 = vld [vmem:[#allocation2 + $0x61] sm:$0xff] }
  0x80   : > { %v7648_v41 = vpack.c.bf16 %v1307_v32, %v1307_v32 }
  0x83   : > { %941 = vrot.lane.b32.xlu1 %v6484_v47, %s7163_s26  ;;  %947 = vrot.lane.b32.xlu0 %v6487_v52, %s7163_s26  ;;  %v818_v52 = vld [vmem:[#allocation2 + $0x172] sm:$0xff] }
  0x84   : > { %v6502_v57 = vpack.c.bf16 %v818_v52, %v818_v52 }
  0x87   : > { %945 = vrot.lane.b32.xlu1 %v6486_v54, %s7163_s26  ;;  %951 = vrot.lane.b32.xlu0 %v6489_v58, %s7163_s26 }
  0x88   : > { %v659_v27 = vpop.permute.xlu0 %658 }
  0x89   : > { %755 = vst.msk [vmem:[#allocation3] sm:$0xf] %vm754_vm4, %v659_v27 }
  0x8b   : > { %949 = vrot.lane.b32.xlu1 %v6488_v60, %s7163_s26  ;;  %955 = vrot.lane.b32.xlu0 %v6491_v63, %s7163_s26 }
  0x8c   : > { %v661_v39 = vpop.permute.xlu0 %660 }
  0x8d   : > { %756 = vst.msk [vmem:[#allocation3 + $0x4] sm:$0xf] %vm754_vm4, %v661_v39  ;;  %v1306_v39 = vld [vmem:[#allocation2 + $0x51] sm:$0xff] }
  0x8f   : > { %953 = vrot.lane.b32.xlu1 %v6490_v2, %s7163_s26  ;;  %959 = vrot.lane.b32.xlu0 %v6493_v5, %s7163_s26  ;;  %v1301_v2 = vld [vmem:[#allocation2 + $0x19] sm:$0xff] }
  0x90   : > { %v6535_v5 = vpack.c.bf16 %v1301_v2, %v1301_v2 }
  0x93   : > { %957 = vrot.lane.b32.xlu1 %v6492_v10, %s7163_s26  ;;  %963 = vrot.lane.b32.xlu0 %v6495_v14, %s7163_s26  ;;  %v7627_v10 = vpack.c.bf16 %v1075_v4, %v1075_v4 }
  0x97   : > { %961 = vrot.lane.b32.xlu1 %v6494_v18, %s7163_s26  ;;  %967 = vrot.lane.b32.xlu0 %v6497_v21, %s7163_s26  ;;  %v1305_v18 = vld [vmem:[#allocation2 + $0x49] sm:$0xff]  ;;  %v6536_v21 = vpack.c.bf16 %v1302_v13, %v1302_v13  ;;  %v1322_v13 = vld [vmem:[#allocation2 + $0x111] sm:$0xff] }
  0x98   : > { %v6556_v26 = vpack.c.bf16 %v1322_v13, %v1322_v13 }
  0x9b   : > { %965 = vrot.lane.b32.xlu1 %v6496_v28, %s7163_s26  ;;  %971 = vrot.lane.b32.xlu0 %v6499_v34, %s7163_s26  ;;  %v7639_v28 = vpack.c.bf16 %v1305_v18, %v1305_v18 }
  0x9d   : > { %v663_v45 = vpop.permute.xlu1 %662  ;;  %v667_v47 = vpop.permute.xlu0 %666 }
  0x9e   : > { %757 = vst.msk [vmem:[#allocation3 + $0x8] sm:$0xf] %vm754_vm4, %v663_v45  ;;  %759 = vst.msk [vmem:[#allocation3 + $0x10] sm:$0xf] %vm754_vm4, %v667_v47  ;;  %v1309_v45 = vld [vmem:[#allocation2 + $0x79] sm:$0xff]  ;;  %v7653_v47 = vpack.c.bf16 %v1306_v39, %v1306_v39  ;;  %v1327_v39 = vld [vmem:[#allocation2 + $0x151] sm:$0xff] }
  0x9f   : > { %969 = vrot.lane.b32.xlu1 %v6498_v40, %s7163_s26  ;;  %975 = vrot.lane.b32.xlu0 %v6501_v46, %s7163_s26 }
  0xa1   : > { %v665_v53 = vpop.permute.xlu1 %664  ;;  %v671_v54 = vpop.permute.xlu0 %670 }
  0xa2   : > { %758 = vst.msk [vmem:[#allocation3 + $0xc] sm:$0xf] %vm754_vm4, %v665_v53  ;;  %761 = vst.msk [vmem:[#allocation3 + $0x18] sm:$0xf] %vm754_vm4, %v671_v54  ;;  %v7658_v53 = vpack.c.bf16 %v1309_v45, %v1309_v45  ;;  %v1311_v54 = vld [vmem:[#allocation2 + $0x91] sm:$0xff] }
  0xa3   : > { %973 = vrot.lane.b32.xlu1 %v6500_v48, %s7163_s26  ;;  %1172 = vrot.lane.b32.xlu0 %v7341_v3, %s7164_s27  ;;  %v1308_v48 = vld [vmem:[#allocation2 + $0x69] sm:$0xff] }
  0xa5   : > { %v669_v58 = vpop.permute.xlu1 %668  ;;  %v675_v59 = vpop.permute.xlu0 %674 }
  0xa6   : > { %760 = vst.msk [vmem:[#allocation3 + $0x14] sm:$0xf] %vm754_vm4, %v669_v58  ;;  %763 = vst.msk [vmem:[#allocation3 + $0x20] sm:$0xf] %vm754_vm4, %v675_v59  ;;  %v7663_v58 = vpack.c.bf16 %v1308_v48, %v1308_v48  ;;  %v1310_v59 = vld [vmem:[#allocation2 + $0x81] sm:$0xff] }
  0xa7   : > { %977 = vrot.lane.b32.xlu1 %v6502_v57, %s7163_s26  ;;  %1176 = vrot.lane.b32.xlu0 %v7344_v7, %s7164_s27 }
  0xa9   : > { %v673_v60 = vpop.permute.xlu1 %672  ;;  %v679_v61 = vpop.permute.xlu0 %678 }
  0xaa   : > { %762 = vst.msk [vmem:[#allocation3 + $0x1c] sm:$0xf] %vm754_vm4, %v673_v60  ;;  %765 = vst.msk [vmem:[#allocation3 + $0x28] sm:$0xf] %vm754_vm4, %v679_v61  ;;  %v7668_v61 = vpack.c.bf16 %v1311_v54, %v1311_v54  ;;  %v1329_v54 = vld [vmem:[#allocation2 + $0x169] sm:$0xff] }
  0xab   : > { %1174 = vrot.lane.b32.xlu1 %v7346_v8, %s7164_s27  ;;  %1180 = vrot.lane.b32.xlu0 %v7354_v12, %s7164_s27 }
  0xad   : > { %v677_v3 = vpop.permute.xlu1 %676  ;;  %v683_v63 = vpop.permute.xlu0 %682 }
  0xae   : > { %764 = vst.msk [vmem:[#allocation3 + $0x24] sm:$0xf] %vm754_vm4, %v677_v3  ;;  %767 = vst.msk [vmem:[#allocation3 + $0x30] sm:$0xf] %vm754_vm4, %v683_v63  ;;  %v1313_v3 = vld [vmem:[#allocation2 + $0xa9] sm:$0xff] }
  0xaf   : > { %1178 = vrot.lane.b32.xlu1 %v7362_v16, %s7164_s27  ;;  %1184 = vrot.lane.b32.xlu0 %v7364_v17, %s7164_s27 }
  0xb1   : > { %v681_v7 = vpop.permute.xlu1 %680  ;;  %v687_v8 = vpop.permute.xlu0 %686 }
  0xb2   : > { %766 = vst.msk [vmem:[#allocation3 + $0x2c] sm:$0xf] %vm754_vm4, %v681_v7  ;;  %769 = vst.msk [vmem:[#allocation3 + $0x38] sm:$0xf] %vm754_vm4, %v687_v8  ;;  %v7673_v7 = vpack.c.bf16 %v1310_v59, %v1310_v59  ;;  %v1312_v8 = vld [vmem:[#allocation2 + $0x99] sm:$0xff] }
  0xb3   : > { %1182 = vrot.lane.b32.xlu1 %v7369_v22, %s7164_s27  ;;  %1188 = vrot.lane.b32.xlu0 %v7371_v23, %s7164_s27 }
  0xb5   : > { %v685_v12 = vpop.permute.xlu1 %684  ;;  %v691_v16 = vpop.permute.xlu0 %690 }
  0xb6   : > { %768 = vst.msk [vmem:[#allocation3 + $0x34] sm:$0xf] %vm754_vm4, %v685_v12  ;;  %771 = vst.msk [vmem:[#allocation3 + $0x40] sm:$0xf] %vm754_vm4, %v691_v16  ;;  %v7678_v16 = vpack.c.bf16 %v1313_v3, %v1313_v3 }
  0xb7   : > { %1186 = vrot.lane.b32.xlu1 %v7373_v24, %s7164_s27  ;;  %1192 = vrot.lane.b32.xlu0 %v7379_v29, %s7164_s27 }
  0xb9   : > { %v689_v17 = vpop.permute.xlu1 %688  ;;  %v695_v22 = vpop.permute.xlu0 %694 }
  0xba   : > { %770 = vst.msk [vmem:[#allocation3 + $0x3c] sm:$0xf] %vm754_vm4, %v689_v17  ;;  %773 = vst.msk [vmem:[#allocation3 + $0x48] sm:$0xf] %vm754_vm4, %v695_v22  ;;  %v1315_v17 = vld [vmem:[#allocation2 + $0xc1] sm:$0xff] }
  0xbb   : > { %1190 = vrot.lane.b32.xlu1 %v7381_v30, %s7164_s27  ;;  %1196 = vrot.lane.b32.xlu0 %v7383_v31, %s7164_s27 }
  0xbd   : > { %v693_v23 = vpop.permute.xlu1 %692  ;;  %v699_v24 = vpop.permute.xlu0 %698 }
  0xbe   : > { %772 = vst.msk [vmem:[#allocation3 + $0x44] sm:$0xf] %vm754_vm4, %v693_v23  ;;  %775 = vst.msk [vmem:[#allocation3 + $0x50] sm:$0xf] %vm754_vm4, %v699_v24  ;;  %v7683_v23 = vpack.c.bf16 %v1312_v8, %v1312_v8  ;;  %v1314_v24 = vld [vmem:[#allocation2 + $0xb1] sm:$0xff]  ;;  %v1331_v8 = vld [vmem:[#allocation2 + $0x181] sm:$0xff] }
  0xbf   : > { %1194 = vrot.lane.b32.xlu1 %v7394_v36, %s7164_s27  ;;  %1200 = vrot.lane.b32.xlu0 %v7396_v37, %s7164_s27 }
  0xc1   : > { %v697_v29 = vpop.permute.xlu1 %696  ;;  %v703_v30 = vpop.permute.xlu0 %702 }
  0xc2   : > { %774 = vst.msk [vmem:[#allocation3 + $0x4c] sm:$0xf] %vm754_vm4, %v697_v29  ;;  %777 = vst.msk [vmem:[#allocation3 + $0x58] sm:$0xf] %vm754_vm4, %v703_v30  ;;  %v6549_v30 = vpack.c.bf16 %v1315_v17, %v1315_v17 }
  0xc3   : > { %1198 = vrot.lane.b32.xlu1 %v7398_v38, %s7164_s27  ;;  %1204 = vrot.lane.b32.xlu0 %v7406_v42, %s7164_s27 }
  0xc5   : > { %v701_v31 = vpop.permute.xlu1 %700  ;;  %v707_v36 = vpop.permute.xlu0 %706 }
  0xc6   : > { %776 = vst.msk [vmem:[#allocation3 + $0x54] sm:$0xf] %vm754_vm4, %v701_v31  ;;  %779 = vst.msk [vmem:[#allocation3 + $0x60] sm:$0xf] %vm754_vm4, %v707_v36  ;;  %v1317_v31 = vld [vmem:[#allocation2 + $0xd9] sm:$0xff] }
  0xc7   : > { %1202 = vrot.lane.b32.xlu1 %v7408_v43, %s7164_s27  ;;  %1208 = vrot.lane.b32.xlu0 %v7410_v44, %s7164_s27 }
  0xc9   : > { %v705_v37 = vpop.permute.xlu1 %704  ;;  %v711_v38 = vpop.permute.xlu0 %710 }
  0xca   : > { %778 = vst.msk [vmem:[#allocation3 + $0x5c] sm:$0xf] %vm754_vm4, %v705_v37  ;;  %781 = vst.msk [vmem:[#allocation3 + $0x68] sm:$0xf] %vm754_vm4, %v711_v38  ;;  %v6548_v37 = vpack.c.bf16 %v1314_v24, %v1314_v24  ;;  %v1316_v38 = vld [vmem:[#allocation2 + $0xc9] sm:$0xff] }
  0xcb   : > { %1206 = vrot.lane.b32.xlu1 %v7421_v49, %s7164_s27  ;;  %1212 = vrot.lane.b32.xlu0 %v7423_v50, %s7164_s27 }
  0xcd   : > { %v709_v42 = vpop.permute.xlu1 %708  ;;  %v715_v43 = vpop.permute.xlu0 %714 }
  0xce   : > { %780 = vst.msk [vmem:[#allocation3 + $0x64] sm:$0xf] %vm754_vm4, %v709_v42  ;;  %783 = vst.msk [vmem:[#allocation3 + $0x70] sm:$0xf] %vm754_vm4, %v715_v43  ;;  %v6551_v43 = vpack.c.bf16 %v1317_v31, %v1317_v31 }
  0xcf   : > { %1210 = vrot.lane.b32.xlu1 %v7425_v51, %s7164_s27  ;;  %1216 = vrot.lane.b32.xlu0 %v7433_v55, %s7164_s27 }
  0xd1   : > { %v713_v44 = vpop.permute.xlu1 %712  ;;  %v719_v49 = vpop.permute.xlu0 %718 }
  0xd2   : > { %782 = vst.msk [vmem:[#allocation3 + $0x6c] sm:$0xf] %vm754_vm4, %v713_v44  ;;  %785 = vst.msk [vmem:[#allocation3 + $0x78] sm:$0xf] %vm754_vm4, %v719_v49  ;;  %v1319_v44 = vld [vmem:[#allocation2 + $0xf1] sm:$0xff] }
  0xd3   : > { %1214 = vrot.lane.b32.xlu1 %v7435_v56, %s7164_s27  ;;  %1220 = vrot.lane.b32.xlu0 %v7451_v0, %s7164_s27  ;;  %v1074_v56 = vld [vmem:[#allocation2 + $0x180] sm:$0xff] }
  0xd5   : > { %v717_v50 = vpop.permute.xlu1 %716  ;;  %v916_v51 = vpop.permute.xlu0 %915 }
  0xd6   : > { %784 = vst.msk [vmem:[#allocation3 + $0x74] sm:$0xf] %vm754_vm4, %v717_v50  ;;  %v6550_v50 = vpack.c.bf16 %v1316_v38, %v1316_v38 }
  0xd7   : > { %1218 = vrot.lane.b32.xlu1 %v7449_v62, %s7164_s27  ;;  %1012 = vst.msk [vmem:[#allocation3] sm:$0xf] %vm1011_vm5, %v916_v51  ;;  %1224 = vrot.lane.b32.xlu0 %v7461_v11, %s7164_s27  ;;  %v7616_v62 = vpack.c.bf16 %v1074_v56, %v1074_v56  ;;  %v1318_v51 = vld [vmem:[#allocation2 + $0xe1] sm:$0xff]  ;;  %v6553_v56 = vpack.c.bf16 %v1319_v44, %v1319_v44 }
  0xd8   : > { %v6552_v2 = vpack.c.bf16 %v1318_v51, %v1318_v51 }
  0xd9   : > { %v721_v55 = vpop.permute.xlu1 %720  ;;  %v920_v0 = vpop.permute.xlu0 %919 }
  0xda   : > { %786 = vst.msk [vmem:[#allocation3 + $0x7c] sm:$0xf] %vm754_vm4, %v721_v55 }
  0xdb   : > { %1222 = vrot.lane.b32.xlu1 %v7459_v9, %s7164_s27  ;;  %1014 = vst.msk [vmem:[#allocation3 + $0x8] sm:$0xf] %vm1011_vm5, %v920_v0  ;;  %1228 = vrot.lane.b32.xlu0 %v7471_v25, %s7164_s27  ;;  %v1303_v25 = vld [vmem:[#allocation2 + $0x31] sm:$0xff]  ;;  %v1321_v0 = vld [vmem:[#allocation2 + $0x109] sm:$0xff] }
  0xdc   : > { %v7631_v15 = vpack.c.bf16 %v1303_v25, %v1303_v25 }
  0xdd   : > { %v918_v1 = vpop.permute.xlu1 %917  ;;  %v924_v11 = vpop.permute.xlu0 %923 }
  0xde   : > { %1013 = vst.msk [vmem:[#allocation3 + $0x4] sm:$0xf] %vm1011_vm5, %v918_v1  ;;  %1016 = vst.msk [vmem:[#allocation3 + $0x10] sm:$0xf] %vm1011_vm5, %v924_v11  ;;  %v1320_v11 = vld [vmem:[#allocation2 + $0xf9] sm:$0xff] }
  0xdf   : > { %1226 = vrot.lane.b32.xlu1 %v7469_v20, %s7164_s27  ;;  %1232 = vrot.lane.b32.xlu0 %v7616_v62, %s7164_s27 }
  0xe1   : > { %v922_v9 = vpop.permute.xlu1 %921  ;;  %v928_v6 = vpop.permute.xlu0 %927 }
  0xe2   : > { %1015 = vst.msk [vmem:[#allocation3 + $0xc] sm:$0xf] %vm1011_vm5, %v922_v9  ;;  %1018 = vst.msk [vmem:[#allocation3 + $0x18] sm:$0xf] %vm1011_vm5, %v928_v6  ;;  %v6555_v9 = vpack.c.bf16 %v1321_v0, %v1321_v0  ;;  %v6554_v6 = vpack.c.bf16 %v1320_v11, %v1320_v11 }
  0xe3   : > { %1230 = vrot.lane.b32.xlu1 %v7479_v33, %s7164_s27  ;;  %1429 = vrot.lane.b32.xlu0 %v6535_v5, %s7165_s28  ;;  %v1323_v5 = vld [vmem:[#allocation2 + $0x121] sm:$0xff] }
  0xe4   : > { %v6557_v18 = vpack.c.bf16 %v1323_v5, %v1323_v5 }
  0xe5   : > { %v926_v14 = vpop.permute.xlu1 %925  ;;  %v932_v19 = vpop.permute.xlu0 %931 }
  0xe6   : > { %1017 = vst.msk [vmem:[#allocation3 + $0x14] sm:$0xf] %vm1011_vm5, %v926_v14  ;;  %1020 = vst.msk [vmem:[#allocation3 + $0x20] sm:$0xf] %vm1011_vm5, %v932_v19  ;;  %v1325_v19 = vld [vmem:[#allocation2 + $0x139] sm:$0xff] }
  0xe7   : > { %1234 = vrot.lane.b32.xlu1 %v7627_v10, %s7164_s27  ;;  %1433 = vrot.lane.b32.xlu0 %v7631_v15, %s7165_s28 }
  0xe9   : > { %v930_v27 = vpop.permute.xlu1 %929  ;;  %v936_v34 = vpop.permute.xlu0 %935 }
  0xea   : > { %1019 = vst.msk [vmem:[#allocation3 + $0x1c] sm:$0xf] %vm1011_vm5, %v930_v27  ;;  %1022 = vst.msk [vmem:[#allocation3 + $0x28] sm:$0xf] %vm1011_vm5, %v936_v34  ;;  %v1324_v27 = vld [vmem:[#allocation2 + $0x129] sm:$0xff]  ;;  %v6559_v34 = vpack.c.bf16 %v1325_v19, %v1325_v19 }
  0xeb   : > { %1431 = vrot.lane.b32.xlu1 %v6536_v21, %s7165_s28  ;;  %1437 = vrot.lane.b32.xlu0 %v7639_v28, %s7165_s28  ;;  %v6558_v45 = vpack.c.bf16 %v1324_v27, %v1324_v27 }
  0xed   : > { %v934_v40 = vpop.permute.xlu1 %933  ;;  %v940_v46 = vpop.permute.xlu0 %939 }
  0xee   : > { %1021 = vst.msk [vmem:[#allocation3 + $0x24] sm:$0xf] %vm1011_vm5, %v934_v40  ;;  %1024 = vst.msk [vmem:[#allocation3 + $0x30] sm:$0xf] %vm1011_vm5, %v940_v46  ;;  %v1326_v46 = vld [vmem:[#allocation2 + $0x141] sm:$0xff] }
  0xef   : > { %1435 = vrot.lane.b32.xlu1 %v7643_v35, %s7165_s28  ;;  %1441 = vrot.lane.b32.xlu0 %v7648_v41, %s7165_s28  ;;  %v6560_v59 = vpack.c.bf16 %v1326_v46, %v1326_v46 }
  0xf1   : > { %v938_v52 = vpop.permute.xlu1 %937  ;;  %v944_v57 = vpop.permute.xlu0 %943 }
  0xf2   : > { %1023 = vst.msk [vmem:[#allocation3 + $0x2c] sm:$0xf] %vm1011_vm5, %v938_v52  ;;  %1026 = vst.msk [vmem:[#allocation3 + $0x38] sm:$0xf] %vm1011_vm5, %v944_v57  ;;  %v6561_v52 = vpack.c.bf16 %v1327_v39, %v1327_v39 }
  0xf3   : > { %1439 = vrot.lane.b32.xlu1 %v7653_v47, %s7165_s28  ;;  %1445 = vrot.lane.b32.xlu0 %v7658_v53, %s7165_s28 }
  0xf5   : > { %v942_v60 = vpop.permute.xlu1 %941  ;;  %v948_v63 = vpop.permute.xlu0 %947 }
  0xf6   : > { %1025 = vst.msk [vmem:[#allocation3 + $0x34] sm:$0xf] %vm1011_vm5, %v942_v60  ;;  %1028 = vst.msk [vmem:[#allocation3 + $0x40] sm:$0xf] %vm1011_vm5, %v948_v63  ;;  %v1328_v60 = vld [vmem:[#allocation2 + $0x159] sm:$0xff]  ;;  %v6563_v63 = vpack.c.bf16 %v1329_v54, %v1329_v54 }
  0xf7   : > { %1443 = vrot.lane.b32.xlu1 %v7663_v58, %s7165_s28  ;;  %1449 = vrot.lane.b32.xlu0 %v7668_v61, %s7165_s28  ;;  %v6562_v17 = vpack.c.bf16 %v1328_v60, %v1328_v60 }
  0xf9   : > { %v946_v12 = vpop.permute.xlu1 %945  ;;  %v952_v22 = vpop.permute.xlu0 %951 }
  0xfa   : > { %1027 = vst.msk [vmem:[#allocation3 + $0x3c] sm:$0xf] %vm1011_vm5, %v946_v12  ;;  %1030 = vst.msk [vmem:[#allocation3 + $0x48] sm:$0xf] %vm1011_vm5, %v952_v22  ;;  %v1330_v22 = vld [vmem:[#allocation2 + $0x171] sm:$0xff] }
  0xfb   : > { %1447 = vrot.lane.b32.xlu1 %v7673_v7, %s7165_s28  ;;  %1453 = vrot.lane.b32.xlu0 %v7678_v16, %s7165_s28 }
  0xfd   : > { %v950_v29 = vpop.permute.xlu1 %949  ;;  %v956_v36 = vpop.permute.xlu0 %955 }
  0xfe   : > { %1029 = vst.msk [vmem:[#allocation3 + $0x44] sm:$0xf] %vm1011_vm5, %v950_v29  ;;  %1032 = vst.msk [vmem:[#allocation3 + $0x50] sm:$0xf] %vm1011_vm5, %v956_v36  ;;  %v6565_v29 = vpack.c.bf16 %v1331_v8, %v1331_v8  ;;  %v6564_v36 = vpack.c.bf16 %v1330_v22, %v1330_v22 }
  0xff   : > { %1451 = vrot.lane.b32.xlu1 %v7683_v23, %s7165_s28  ;;  %1457 = vrot.lane.b32.xlu0 %v6549_v30, %s7165_s28  ;;  %v1558_v30 = vld [vmem:[#allocation2 + $0x1a] sm:$0xff] }
 0x101   : > { %v954_v42 = vpop.permute.xlu1 %953  ;;  %v960_v49 = vpop.permute.xlu0 %959 }
 0x102   : > { %1031 = vst.msk [vmem:[#allocation3 + $0x4c] sm:$0xf] %vm1011_vm5, %v954_v42  ;;  %1034 = vst.msk [vmem:[#allocation3 + $0x58] sm:$0xf] %vm1011_vm5, %v960_v49  ;;  %v6567_v42 = vpack.c.bf16 %v1558_v30, %v1558_v30 }
 0x103   : > { %1455 = vrot.lane.b32.xlu1 %v6548_v37, %s7165_s28  ;;  %1461 = vrot.lane.b32.xlu0 %v6551_v43, %s7165_s28  ;;  %v1332_v37 = vld [vmem:[#allocation2 + $0x189] sm:$0xff]  ;;  %v1560_v43 = vld [vmem:[#allocation2 + $0x32] sm:$0xff] }
 0x104   : > { %v6566_v49 = vpack.c.bf16 %v1332_v37, %v1332_v37 }
 0x105   : > { %v958_v55 = vpop.permute.xlu1 %957  ;;  %v964_v1 = vpop.permute.xlu0 %963 }
 0x106   : > { %1033 = vst.msk [vmem:[#allocation3 + $0x54] sm:$0xf] %vm1011_vm5, %v958_v55  ;;  %1036 = vst.msk [vmem:[#allocation3 + $0x60] sm:$0xf] %vm1011_vm5, %v964_v1  ;;  %v7729_v55 = vpack.c.bf16 %v1560_v43, %v1560_v43 }
 0x107   : > { %1459 = vrot.lane.b32.xlu1 %v6550_v50, %s7165_s28  ;;  %1465 = vrot.lane.b32.xlu0 %v6553_v56, %s7165_s28  ;;  %v1559_v50 = vld [vmem:[#allocation2 + $0x22] sm:$0xff]  ;;  %v1562_v56 = vld [vmem:[#allocation2 + $0x4a] sm:$0xff] }
 0x108   : > { %v6568_v1 = vpack.c.bf16 %v1559_v50, %v1559_v50 }
 0x109   : > { %v962_v4 = vpop.permute.xlu1 %961  ;;  %v968_v25 = vpop.permute.xlu0 %967 }
 0x10a   : > { %1035 = vst.msk [vmem:[#allocation3 + $0x5c] sm:$0xf] %vm1011_vm5, %v962_v4  ;;  %1038 = vst.msk [vmem:[#allocation3 + $0x68] sm:$0xf] %vm1011_vm5, %v968_v25  ;;  %v7736_v4 = vpack.c.bf16 %v1562_v56, %v1562_v56  ;;  %v1578_v56 = vld [vmem:[#allocation2 + $0x10a] sm:$0xff] }
 0x10b   : > { %1463 = vrot.lane.b32.xlu1 %v6552_v2, %s7165_s28  ;;  %1469 = vrot.lane.b32.xlu0 %v6555_v9, %s7165_s28  ;;  %v1561_v2 = vld [vmem:[#allocation2 + $0x3a] sm:$0xff]  ;;  %v1564_v9 = vld [vmem:[#allocation2 + $0x62] sm:$0xff] }
 0x10c   : > { %v7740_v25 = vpack.c.bf16 %v1561_v2, %v1561_v2  ;;  %v1577_v2 = vld [vmem:[#allocation2 + $0xfa] sm:$0xff] }
 0x10d   : > { %v966_v14 = vpop.permute.xlu1 %965  ;;  %v972_v21 = vpop.permute.xlu0 %971 }
 0x10e   : > { %1037 = vst.msk [vmem:[#allocation3 + $0x64] sm:$0xf] %vm1011_vm5, %v966_v14  ;;  %1040 = vst.msk [vmem:[#allocation3 + $0x70] sm:$0xf] %vm1011_vm5, %v972_v21  ;;  %v7745_v14 = vpack.c.bf16 %v1564_v9, %v1564_v9  ;;  %v7815_v9 = vpack.c.bf16 %v1578_v56, %v1578_v56  ;;  %v1587_v56 = vld [vmem:[#allocation2 + $0x172] sm:$0xff] }
 0x10f   : > { %1467 = vrot.lane.b32.xlu1 %v6554_v6, %s7165_s28  ;;  %1473 = vrot.lane.b32.xlu0 %v6557_v18, %s7165_s28  ;;  %v1563_v6 = vld [vmem:[#allocation2 + $0x52] sm:$0xff]  ;;  %v1566_v18 = vld [vmem:[#allocation2 + $0x7a] sm:$0xff] }
 0x110   : > { %v7750_v21 = vpack.c.bf16 %v1563_v6, %v1563_v6 }
 0x111   : > { %v970_v32 = vpop.permute.xlu1 %969  ;;  %v976_v40 = vpop.permute.xlu0 %975 }
 0x112   : > { %1039 = vst.msk [vmem:[#allocation3 + $0x6c] sm:$0xf] %vm1011_vm5, %v970_v32  ;;  %1042 = vst.msk [vmem:[#allocation3 + $0x78] sm:$0xf] %vm1011_vm5, %v976_v40  ;;  %v7755_v32 = vpack.c.bf16 %v1566_v18, %v1566_v18  ;;  %v1579_v18 = vld [vmem:[#allocation2 + $0x112] sm:$0xff] }
 0x113   : > { %1471 = vrot.lane.b32.xlu1 %v6556_v26, %s7165_s28  ;;  %1477 = vrot.lane.b32.xlu0 %v6559_v34, %s7165_s28  ;;  %v1565_v26 = vld [vmem:[#allocation2 + $0x6a] sm:$0xff]  ;;  %v1568_v34 = vld [vmem:[#allocation2 + $0x92] sm:$0xff] }
 0x114   : > { %v7760_v40 = vpack.c.bf16 %v1565_v26, %v1565_v26 }
 0x115   : > { %v974_v48 = vpop.permute.xlu1 %973  ;;  %v1173_v57 = vpop.permute.xlu0 %1172 }
 0x116   : > { %1041 = vst.msk [vmem:[#allocation3 + $0x74] sm:$0xf] %vm1011_vm5, %v974_v48  ;;  %v7765_v48 = vpack.c.bf16 %v1568_v34, %v1568_v34 }
 0x117   : > { %1475 = vrot.lane.b32.xlu1 %v6558_v45, %s7165_s28  ;;  %1269 = vst.msk [vmem:[#allocation3] sm:$0xf] %vm1268_vm6, %v1173_v57  ;;  %1481 = vrot.lane.b32.xlu0 %v6561_v52, %s7165_s28  ;;  %v1567_v45 = vld [vmem:[#allocation2 + $0x82] sm:$0xff]  ;;  %v1570_v52 = vld [vmem:[#allocation2 + $0xaa] sm:$0xff] }
 0x118   : > { %v7770_v57 = vpack.c.bf16 %v1567_v45, %v1567_v45  ;;  %v1581_v45 = vld [vmem:[#allocation2 + $0x12a] sm:$0xff] }
 0x119   : > { %v978_v3 = vpop.permute.xlu1 %977  ;;  %v1177_v12 = vpop.permute.xlu0 %1176 }
 0x11a   : > { %1043 = vst.msk [vmem:[#allocation3 + $0x7c] sm:$0xf] %vm1011_vm5, %v978_v3  ;;  %v7775_v3 = vpack.c.bf16 %v1570_v52, %v1570_v52 }
 0x11b   : > { %1479 = vrot.lane.b32.xlu1 %v6560_v59, %s7165_s28  ;;  %1271 = vst.msk [vmem:[#allocation3 + $0x8] sm:$0xf] %vm1268_vm6, %v1177_v12  ;;  %1485 = vrot.lane.b32.xlu0 %v6563_v63, %s7165_s28  ;;  %v1569_v59 = vld [vmem:[#allocation2 + $0x9a] sm:$0xff]  ;;  %v1572_v63 = vld [vmem:[#allocation2 + $0xc2] sm:$0xff] }
 0x11c   : > { %v7780_v12 = vpack.c.bf16 %v1569_v59, %v1569_v59 }
 0x11d   : > { %v1175_v24 = vpop.permute.xlu1 %1174  ;;  %v1181_v31 = vpop.permute.xlu0 %1180 }
 0x11e   : > { %1270 = vst.msk [vmem:[#allocation3 + $0x4] sm:$0xf] %vm1268_vm6, %v1175_v24  ;;  %1273 = vst.msk [vmem:[#allocation3 + $0x10] sm:$0xf] %vm1268_vm6, %v1181_v31  ;;  %v7785_v24 = vpack.c.bf16 %v1572_v63, %v1572_v63  ;;  %v1583_v63 = vld [vmem:[#allocation2 + $0x142] sm:$0xff] }
 0x11f   : > { %1483 = vrot.lane.b32.xlu1 %v6562_v17, %s7165_s28  ;;  %1489 = vrot.lane.b32.xlu0 %v6565_v29, %s7165_s28  ;;  %v1571_v17 = vld [vmem:[#allocation2 + $0xb2] sm:$0xff]  ;;  %v1574_v29 = vld [vmem:[#allocation2 + $0xda] sm:$0xff] }
 0x120   : > { %v7790_v31 = vpack.c.bf16 %v1571_v17, %v1571_v17 }
 0x121   : > { %v1179_v38 = vpop.permute.xlu1 %1178  ;;  %v1185_v44 = vpop.permute.xlu0 %1184 }
 0x122   : > { %1272 = vst.msk [vmem:[#allocation3 + $0xc] sm:$0xf] %vm1268_vm6, %v1179_v38  ;;  %1275 = vst.msk [vmem:[#allocation3 + $0x18] sm:$0xf] %vm1268_vm6, %v1185_v44  ;;  %v7795_v38 = vpack.c.bf16 %v1574_v29, %v1574_v29 }
 0x123   : > { %1487 = vrot.lane.b32.xlu1 %v6564_v36, %s7165_s28  ;;  %1686 = vrot.lane.b32.xlu0 %v6567_v42, %s7166_s29  ;;  %v1573_v36 = vld [vmem:[#allocation2 + $0xca] sm:$0xff]  ;;  %v1576_v42 = vld [vmem:[#allocation2 + $0xf2] sm:$0xff] }
 0x124   : > { %v7800_v44 = vpack.c.bf16 %v1573_v36, %v1573_v36  ;;  %v1585_v36 = vld [vmem:[#allocation2 + $0x15a] sm:$0xff] }
 0x125   : > { %v1183_v51 = vpop.permute.xlu1 %1182  ;;  %v1189_v0 = vpop.permute.xlu0 %1188 }
 0x126   : > { %1274 = vst.msk [vmem:[#allocation3 + $0x14] sm:$0xf] %vm1268_vm6, %v1183_v51  ;;  %1277 = vst.msk [vmem:[#allocation3 + $0x20] sm:$0xf] %vm1268_vm6, %v1189_v0  ;;  %v7805_v51 = vpack.c.bf16 %v1576_v42, %v1576_v42 }
 0x127   : > { %1491 = vrot.lane.b32.xlu1 %v6566_v49, %s7165_s28  ;;  %1690 = vrot.lane.b32.xlu0 %v7729_v55, %s7166_s29  ;;  %v1575_v49 = vld [vmem:[#allocation2 + $0xe2] sm:$0xff] }
 0x129   : > { %v1187_v11 = vpop.permute.xlu1 %1186  ;;  %v1193_v5 = vpop.permute.xlu0 %1192 }
 0x12a   : > { %1276 = vst.msk [vmem:[#allocation3 + $0x1c] sm:$0xf] %vm1268_vm6, %v1187_v11  ;;  %1279 = vst.msk [vmem:[#allocation3 + $0x28] sm:$0xf] %vm1268_vm6, %v1193_v5  ;;  %v1580_v5 = vld [vmem:[#allocation2 + $0x122] sm:$0xff] }
 0x12b   : > { %1688 = vrot.lane.b32.xlu1 %v6568_v1, %s7166_s29  ;;  %1694 = vrot.lane.b32.xlu0 %v7736_v4, %s7166_s29  ;;  %v7810_v1 = vpack.c.bf16 %v1575_v49, %v1575_v49  ;;  %v7825_v26 = vpack.c.bf16 %v1580_v5, %v1580_v5 }
 0x12d   : > { %v1191_v13 = vpop.permute.xlu1 %1190  ;;  %v1197_v19 = vpop.permute.xlu0 %1196 }
 0x12e   : > { %1278 = vst.msk [vmem:[#allocation3 + $0x24] sm:$0xf] %vm1268_vm6, %v1191_v13  ;;  %1281 = vst.msk [vmem:[#allocation3 + $0x30] sm:$0xf] %vm1268_vm6, %v1197_v19  ;;  %v7820_v13 = vpack.c.bf16 %v1577_v2, %v1577_v2 }
 0x12f   : > { %1692 = vrot.lane.b32.xlu1 %v7740_v25, %s7166_s29  ;;  %1698 = vrot.lane.b32.xlu0 %v7745_v14, %s7166_s29 }
 0x131   : > { %v1195_v27 = vpop.permute.xlu1 %1194  ;;  %v1201_v39 = vpop.permute.xlu0 %1200 }
 0x132   : > { %1280 = vst.msk [vmem:[#allocation3 + $0x2c] sm:$0xf] %vm1268_vm6, %v1195_v27  ;;  %1283 = vst.msk [vmem:[#allocation3 + $0x38] sm:$0xf] %vm1268_vm6, %v1201_v39  ;;  %v1582_v27 = vld [vmem:[#allocation2 + $0x13a] sm:$0xff]  ;;  %v7830_v39 = vpack.c.bf16 %v1579_v18, %v1579_v18  ;;  %v1589_v18 = vld [vmem:[#allocation2 + $0x18a] sm:$0xff] }
 0x133   : > { %1696 = vrot.lane.b32.xlu1 %v7750_v21, %s7166_s29  ;;  %1702 = vrot.lane.b32.xlu0 %v7755_v32, %s7166_s29  ;;  %v7835_v52 = vpack.c.bf16 %v1582_v27, %v1582_v27 }
 0x135   : > { %v1199_v46 = vpop.permute.xlu1 %1198  ;;  %v1205_v54 = vpop.permute.xlu0 %1204 }
 0x136   : > { %1282 = vst.msk [vmem:[#allocation3 + $0x34] sm:$0xf] %vm1268_vm6, %v1199_v46  ;;  %1285 = vst.msk [vmem:[#allocation3 + $0x40] sm:$0xf] %vm1268_vm6, %v1205_v54  ;;  %v1584_v54 = vld [vmem:[#allocation2 + $0x152] sm:$0xff] }
 0x137   : > { %1700 = vrot.lane.b32.xlu1 %v7760_v40, %s7166_s29  ;;  %1706 = vrot.lane.b32.xlu0 %v7765_v48, %s7166_s29  ;;  %v7845_v17 = vpack.c.bf16 %v1584_v54, %v1584_v54  ;;  %v1817_v54 = vld [vmem:[#allocation2 + $0x38] sm:$0xff] }
 0x139   : > { %v1203_v60 = vpop.permute.xlu1 %1202  ;;  %v1209_v8 = vpop.permute.xlu0 %1208 }
 0x13a   : > { %1284 = vst.msk [vmem:[#allocation3 + $0x3c] sm:$0xf] %vm1268_vm6, %v1203_v60  ;;  %1287 = vst.msk [vmem:[#allocation3 + $0x48] sm:$0xf] %vm1268_vm6, %v1209_v8  ;;  %v7840_v60 = vpack.c.bf16 %v1581_v45, %v1581_v45 }
 0x13b   : > { %1704 = vrot.lane.b32.xlu1 %v7770_v57, %s7166_s29  ;;  %1710 = vrot.lane.b32.xlu0 %v7775_v3, %s7166_s29 }
 0x13d   : > { %v1207_v22 = vpop.permute.xlu1 %1206  ;;  %v1213_v30 = vpop.permute.xlu0 %1212 }
 0x13e   : > { %1286 = vst.msk [vmem:[#allocation3 + $0x44] sm:$0xf] %vm1268_vm6, %v1207_v22  ;;  %1289 = vst.msk [vmem:[#allocation3 + $0x50] sm:$0xf] %vm1268_vm6, %v1213_v30  ;;  %v1586_v22 = vld [vmem:[#allocation2 + $0x16a] sm:$0xff]  ;;  %v7850_v30 = vpack.c.bf16 %v1583_v63, %v1583_v63 }
 0x13f   : > { %1708 = vrot.lane.b32.xlu1 %v7780_v12, %s7166_s29  ;;  %1714 = vrot.lane.b32.xlu0 %v7785_v24, %s7166_s29  ;;  %v7855_v42 = vpack.c.bf16 %v1586_v22, %v1586_v22 }
 0x141   : > { %v1211_v37 = vpop.permute.xlu1 %1210  ;;  %v1217_v43 = vpop.permute.xlu0 %1216 }
 0x142   : > { %1288 = vst.msk [vmem:[#allocation3 + $0x4c] sm:$0xf] %vm1268_vm6, %v1211_v37  ;;  %1291 = vst.msk [vmem:[#allocation3 + $0x58] sm:$0xf] %vm1268_vm6, %v1217_v43  ;;  %v1588_v43 = vld [vmem:[#allocation2 + $0x182] sm:$0xff] }
 0x143   : > { %1712 = vrot.lane.b32.xlu1 %v7790_v31, %s7166_s29  ;;  %1718 = vrot.lane.b32.xlu0 %v7795_v38, %s7166_s29  ;;  %v7865_v2 = vpack.c.bf16 %v1588_v43, %v1588_v43 }
 0x145   : > { %v1215_v50 = vpop.permute.xlu1 %1214  ;;  %v1221_v0 = vpop.permute.xlu0 %1220 }
 0x146   : > { %1290 = vst.msk [vmem:[#allocation3 + $0x54] sm:$0xf] %vm1268_vm6, %v1215_v50  ;;  %1293 = vst.msk [vmem:[#allocation3 + $0x60] sm:$0xf] %vm1268_vm6, %v1221_v0  ;;  %v7860_v50 = vpack.c.bf16 %v1585_v36, %v1585_v36  ;;  %v1819_v36 = vld [vmem:[#allocation2 + $0x50] sm:$0xff] }
 0x147   : > { %1716 = vrot.lane.b32.xlu1 %v7800_v44, %s7166_s29  ;;  %1722 = vrot.lane.b32.xlu0 %v7805_v51, %s7166_s29 }
 0x149   : > { %v1219_v11 = vpop.permute.xlu1 %1218  ;;  %v1225_v6 = vpop.permute.xlu0 %1224 }
 0x14a   : > { %1292 = vst.msk [vmem:[#allocation3 + $0x5c] sm:$0xf] %vm1268_vm6, %v1219_v11  ;;  %1295 = vst.msk [vmem:[#allocation3 + $0x68] sm:$0xf] %vm1268_vm6, %v1225_v6  ;;  %v1816_v11 = vld [vmem:[#allocation2 + $0x30] sm:$0xff]  ;;  %v7870_v6 = vpack.c.bf16 %v1587_v56, %v1587_v56 }
 0x14b   : > { %1720 = vrot.lane.b32.xlu1 %v7810_v1, %s7166_s29  ;;  %1726 = vrot.lane.b32.xlu0 %v7815_v9, %s7166_s29  ;;  %v6599_v27 = vpack.c.bf16 %v1816_v11, %v1816_v11  ;;  %v1821_v11 = vld [vmem:[#allocation2 + $0x68] sm:$0xff] }
 0x14d   : > { %v1223_v19 = vpop.permute.xlu1 %1222  ;;  %v1229_v34 = vpop.permute.xlu0 %1228 }
 0x14e   : > { %1294 = vst.msk [vmem:[#allocation3 + $0x64] sm:$0xf] %vm1268_vm6, %v1223_v19  ;;  %1297 = vst.msk [vmem:[#allocation3 + $0x70] sm:$0xf] %vm1268_vm6, %v1229_v34  ;;  %v1818_v34 = vld [vmem:[#allocation2 + $0x48] sm:$0xff] }
 0x14f   : > { %1724 = vrot.lane.b32.xlu1 %v7820_v13, %s7166_s29  ;;  %1730 = vrot.lane.b32.xlu0 %v7825_v26, %s7166_s29  ;;  %v6601_v63 = vpack.c.bf16 %v1818_v34, %v1818_v34  ;;  %v6604_v34 = vpack.c.bf16 %v1821_v11, %v1821_v11 }
 0x151   : > { %v1227_v46 = vpop.permute.xlu1 %1226  ;;  %v1233_v59 = vpop.permute.xlu0 %1232 }
 0x152   : > { %1296 = vst.msk [vmem:[#allocation3 + $0x6c] sm:$0xf] %vm1268_vm6, %v1227_v46  ;;  %1299 = vst.msk [vmem:[#allocation3 + $0x78] sm:$0xf] %vm1268_vm6, %v1233_v59  ;;  %v7878_v46 = vpack.c.bf16 %v1589_v18, %v1589_v18 }
 0x153   : > { %1728 = vrot.lane.b32.xlu1 %v7830_v39, %s7166_s29  ;;  %1734 = vrot.lane.b32.xlu0 %v7835_v52, %s7166_s29 }
 0x155   : > { %v1231_v8 = vpop.permute.xlu1 %1230  ;;  %v1430_v29 = vpop.permute.xlu0 %1429 }
 0x156   : > { %1298 = vst.msk [vmem:[#allocation3 + $0x74] sm:$0xf] %vm1268_vm6, %v1231_v8  ;;  %v1820_v8 = vld [vmem:[#allocation2 + $0x60] sm:$0xff] }
 0x157   : > { %1732 = vrot.lane.b32.xlu1 %v7840_v60, %s7166_s29  ;;  %1526 = vst.msk [vmem:[#allocation3] sm:$0xf] %vm1525_vm7, %v1430_v29  ;;  %1738 = vrot.lane.b32.xlu0 %v7845_v17, %s7166_s29  ;;  %v6600_v29 = vpack.c.bf16 %v1817_v54, %v1817_v54  ;;  %v6603_v43 = vpack.c.bf16 %v1820_v8, %v1820_v8 }
 0x159   : > { %v1235_v37 = vpop.permute.xlu1 %1234  ;;  %v1434_v49 = vpop.permute.xlu0 %1433 }
 0x15a   : > { %1300 = vst.msk [vmem:[#allocation3 + $0x7c] sm:$0xf] %vm1268_vm6, %v1235_v37 }
 0x15b   : > { %1736 = vrot.lane.b32.xlu1 %v7850_v30, %s7166_s29  ;;  %1528 = vst.msk [vmem:[#allocation3 + $0x8] sm:$0xf] %vm1525_vm7, %v1434_v49  ;;  %1742 = vrot.lane.b32.xlu0 %v7855_v42, %s7166_s29  ;;  %v1822_v49 = vld [vmem:[#allocation2 + $0x78] sm:$0xff] }
 0x15c   : > { %v6605_v18 = vpack.c.bf16 %v1822_v49, %v1822_v49 }
 0x15d   : > { %v1432_v0 = vpop.permute.xlu1 %1431  ;;  %v1438_v5 = vpop.permute.xlu0 %1437 }
 0x15e   : > { %1527 = vst.msk [vmem:[#allocation3 + $0x4] sm:$0xf] %vm1525_vm7, %v1432_v0  ;;  %1530 = vst.msk [vmem:[#allocation3 + $0x10] sm:$0xf] %vm1525_vm7, %v1438_v5  ;;  %v6602_v0 = vpack.c.bf16 %v1819_v36, %v1819_v36 }
 0x15f   : > { %1740 = vrot.lane.b32.xlu1 %v7860_v50, %s7166_s29  ;;  %1746 = vrot.lane.b32.xlu0 %v7865_v2, %s7166_s29 }
 0x161   : > { %v1436_v19 = vpop.permute.xlu1 %1435  ;;  %v1442_v45 = vpop.permute.xlu0 %1441 }
 0x162   : > { %1529 = vst.msk [vmem:[#allocation3 + $0xc] sm:$0xf] %vm1525_vm7, %v1436_v19  ;;  %1532 = vst.msk [vmem:[#allocation3 + $0x18] sm:$0xf] %vm1525_vm7, %v1442_v45  ;;  %v1824_v19 = vld [vmem:[#allocation2 + $0x90] sm:$0xff]  ;;  %v1823_v45 = vld [vmem:[#allocation2 + $0x80] sm:$0xff] }
 0x163   : > { %1744 = vrot.lane.b32.xlu1 %v7870_v6, %s7166_s29  ;;  %1944 = vrot.lane.b32.xlu0 %v6599_v27, %s7167_s30 }
 0x165   : > { %v1440_v59 = vpop.permute.xlu1 %1439  ;;  %v1446_v22 = vpop.permute.xlu0 %1445 }
 0x166   : > { %1531 = vst.msk [vmem:[#allocation3 + $0x14] sm:$0xf] %vm1525_vm7, %v1440_v59  ;;  %1534 = vst.msk [vmem:[#allocation3 + $0x20] sm:$0xf] %vm1525_vm7, %v1446_v22  ;;  %v6607_v59 = vpack.c.bf16 %v1824_v19, %v1824_v19  ;;  %v6606_v22 = vpack.c.bf16 %v1823_v45, %v1823_v45 }
 0x167   : > { %1748 = vrot.lane.b32.xlu1 %v7878_v46, %s7166_s29  ;;  %1948 = vrot.lane.b32.xlu0 %v6601_v63, %s7167_s30  ;;  %v1826_v63 = vld [vmem:[#allocation2 + $0xa8] sm:$0xff] }
 0x169   : > { %v1444_v37 = vpop.permute.xlu1 %1443  ;;  %v1450_v56 = vpop.permute.xlu0 %1449 }
 0x16a   : > { %1533 = vst.msk [vmem:[#allocation3 + $0x1c] sm:$0xf] %vm1525_vm7, %v1444_v37  ;;  %1536 = vst.msk [vmem:[#allocation3 + $0x28] sm:$0xf] %vm1525_vm7, %v1450_v56  ;;  %v6609_v37 = vpack.c.bf16 %v1826_v63, %v1826_v63 }
 0x16b   : > { %1946 = vrot.lane.b32.xlu1 %v6600_v29, %s7167_s30  ;;  %1952 = vrot.lane.b32.xlu0 %v6603_v43, %s7167_s30  ;;  %v1825_v29 = vld [vmem:[#allocation2 + $0x98] sm:$0xff]  ;;  %v1828_v43 = vld [vmem:[#allocation2 + $0xc0] sm:$0xff] }
 0x16c   : > { %v6608_v56 = vpack.c.bf16 %v1825_v29, %v1825_v29 }
 0x16d   : > { %v1448_v5 = vpop.permute.xlu1 %1447  ;;  %v1454_v27 = vpop.permute.xlu0 %1453 }
 0x16e   : > { %1535 = vst.msk [vmem:[#allocation3 + $0x24] sm:$0xf] %vm1525_vm7, %v1448_v5  ;;  %1538 = vst.msk [vmem:[#allocation3 + $0x30] sm:$0xf] %vm1525_vm7, %v1454_v27  ;;  %v6611_v5 = vpack.c.bf16 %v1828_v43, %v1828_v43 }
 0x16f   : > { %1950 = vrot.lane.b32.xlu1 %v6602_v0, %s7167_s30  ;;  %1956 = vrot.lane.b32.xlu0 %v6605_v18, %s7167_s30  ;;  %v1827_v0 = vld [vmem:[#allocation2 + $0xb0] sm:$0xff]  ;;  %v1830_v18 = vld [vmem:[#allocation2 + $0xd8] sm:$0xff] }
 0x170   : > { %v6610_v27 = vpack.c.bf16 %v1827_v0, %v1827_v0 }
 0x171   : > { %v1452_v54 = vpop.permute.xlu1 %1451  ;;  %v1458_v8 = vpop.permute.xlu0 %1457 }
 0x172   : > { %1537 = vst.msk [vmem:[#allocation3 + $0x2c] sm:$0xf] %vm1525_vm7, %v1452_v54  ;;  %1540 = vst.msk [vmem:[#allocation3 + $0x38] sm:$0xf] %vm1525_vm7, %v1458_v8  ;;  %v6613_v54 = vpack.c.bf16 %v1830_v18, %v1830_v18 }
 0x173   : > { %1954 = vrot.lane.b32.xlu1 %v6604_v34, %s7167_s30  ;;  %1960 = vrot.lane.b32.xlu0 %v6607_v59, %s7167_s30  ;;  %v1829_v34 = vld [vmem:[#allocation2 + $0xc8] sm:$0xff]  ;;  %v1832_v59 = vld [vmem:[#allocation2 + $0xf0] sm:$0xff] }
 0x174   : > { %v6612_v8 = vpack.c.bf16 %v1829_v34, %v1829_v34 }
 0x175   : > { %v1456_v36 = vpop.permute.xlu1 %1455  ;;  %v1462_v49 = vpop.permute.xlu0 %1461 }
 0x176   : > { %1539 = vst.msk [vmem:[#allocation3 + $0x34] sm:$0xf] %vm1525_vm7, %v1456_v36  ;;  %1542 = vst.msk [vmem:[#allocation3 + $0x40] sm:$0xf] %vm1525_vm7, %v1462_v49  ;;  %v6615_v36 = vpack.c.bf16 %v1832_v59, %v1832_v59 }
 0x177   : > { %1958 = vrot.lane.b32.xlu1 %v6606_v22, %s7167_s30  ;;  %1964 = vrot.lane.b32.xlu0 %v6609_v37, %s7167_s30  ;;  %v1831_v22 = vld [vmem:[#allocation2 + $0xe0] sm:$0xff]  ;;  %v1834_v37 = vld [vmem:[#allocation2 + $0x108] sm:$0xff] }
 0x178   : > { %v6614_v49 = vpack.c.bf16 %v1831_v22, %v1831_v22 }
 0x179   : > { %v1460_v11 = vpop.permute.xlu1 %1459  ;;  %v1466_v19 = vpop.permute.xlu0 %1465 }
 0x17a   : > { %1541 = vst.msk [vmem:[#allocation3 + $0x3c] sm:$0xf] %vm1525_vm7, %v1460_v11  ;;  %1544 = vst.msk [vmem:[#allocation3 + $0x48] sm:$0xf] %vm1525_vm7, %v1466_v19  ;;  %v6617_v11 = vpack.c.bf16 %v1834_v37, %v1834_v37 }
 0x17b   : > { %1962 = vrot.lane.b32.xlu1 %v6608_v56, %s7167_s30  ;;  %1968 = vrot.lane.b32.xlu0 %v6611_v5, %s7167_s30  ;;  %v1833_v56 = vld [vmem:[#allocation2 + $0xf8] sm:$0xff]  ;;  %v1836_v5 = vld [vmem:[#allocation2 + $0x120] sm:$0xff] }
 0x17c   : > { %v6616_v19 = vpack.c.bf16 %v1833_v56, %v1833_v56 }
 0x17d   : > { %v1464_v45 = vpop.permute.xlu1 %1463  ;;  %v1470_v63 = vpop.permute.xlu0 %1469 }
 0x17e   : > { %1543 = vst.msk [vmem:[#allocation3 + $0x44] sm:$0xf] %vm1525_vm7, %v1464_v45  ;;  %1546 = vst.msk [vmem:[#allocation3 + $0x50] sm:$0xf] %vm1525_vm7, %v1470_v63  ;;  %v6619_v45 = vpack.c.bf16 %v1836_v5, %v1836_v5 }
 0x17f   : > { %1966 = vrot.lane.b32.xlu1 %v6610_v27, %s7167_s30  ;;  %1972 = vrot.lane.b32.xlu0 %v6613_v54, %s7167_s30  ;;  %v1835_v27 = vld [vmem:[#allocation2 + $0x110] sm:$0xff]  ;;  %v1838_v54 = vld [vmem:[#allocation2 + $0x138] sm:$0xff] }
 0x180   : > { %v6618_v63 = vpack.c.bf16 %v1835_v27, %v1835_v27 }
 0x181   : > { %v1468_v29 = vpop.permute.xlu1 %1467  ;;  %v1474_v43 = vpop.permute.xlu0 %1473 }
 0x182   : > { %1545 = vst.msk [vmem:[#allocation3 + $0x4c] sm:$0xf] %vm1525_vm7, %v1468_v29  ;;  %1548 = vst.msk [vmem:[#allocation3 + $0x58] sm:$0xf] %vm1525_vm7, %v1474_v43  ;;  %v6621_v29 = vpack.c.bf16 %v1838_v54, %v1838_v54  ;;  %v1846_v54 = vld [vmem:[#allocation2 + $0x198] sm:$0xff] }
 0x183   : > { %1970 = vrot.lane.b32.xlu1 %v6612_v8, %s7167_s30  ;;  %1976 = vrot.lane.b32.xlu0 %v6615_v36, %s7167_s30  ;;  %v1837_v8 = vld [vmem:[#allocation2 + $0x128] sm:$0xff]  ;;  %v1840_v36 = vld [vmem:[#allocation2 + $0x150] sm:$0xff] }
 0x184   : > { %v6620_v43 = vpack.c.bf16 %v1837_v8, %v1837_v8  ;;  %v6629_v8 = vpack.c.bf16 %v1846_v54, %v1846_v54 }
 0x185   : > { %v1472_v0 = vpop.permute.xlu1 %1471  ;;  %v1478_v18 = vpop.permute.xlu0 %1477 }
 0x186   : > { %1547 = vst.msk [vmem:[#allocation3 + $0x54] sm:$0xf] %vm1525_vm7, %v1472_v0  ;;  %1550 = vst.msk [vmem:[#allocation3 + $0x60] sm:$0xf] %vm1525_vm7, %v1478_v18  ;;  %v6623_v0 = vpack.c.bf16 %v1840_v36, %v1840_v36 }
 0x187   : > { %1974 = vrot.lane.b32.xlu1 %v6614_v49, %s7167_s30  ;;  %1980 = vrot.lane.b32.xlu0 %v6617_v11, %s7167_s30  ;;  %v1839_v49 = vld [vmem:[#allocation2 + $0x140] sm:$0xff]  ;;  %v1842_v11 = vld [vmem:[#allocation2 + $0x168] sm:$0xff] }
 0x188   : > { %v6622_v18 = vpack.c.bf16 %v1839_v49, %v1839_v49  ;;  %v6625_v27 = vpack.c.bf16 %v1842_v11, %v1842_v11 }
 0x189   : > { %v1476_v34 = vpop.permute.xlu1 %1475  ;;  %v1482_v59 = vpop.permute.xlu0 %1481 }
 0x18a   : > { %1549 = vst.msk [vmem:[#allocation3 + $0x5c] sm:$0xf] %vm1525_vm7, %v1476_v34  ;;  %1552 = vst.msk [vmem:[#allocation3 + $0x68] sm:$0xf] %vm1525_vm7, %v1482_v59 }
 0x18b   : > { %1978 = vrot.lane.b32.xlu1 %v6616_v19, %s7167_s30  ;;  %1984 = vrot.lane.b32.xlu0 %v6619_v45, %s7167_s30 }
 0x18d   : > { %v1480_v22 = vpop.permute.xlu1 %1479  ;;  %v1486_v37 = vpop.permute.xlu0 %1485 }
 0x18e   : > { %1551 = vst.msk [vmem:[#allocation3 + $0x64] sm:$0xf] %vm1525_vm7, %v1480_v22  ;;  %1554 = vst.msk [vmem:[#allocation3 + $0x70] sm:$0xf] %vm1525_vm7, %v1486_v37 }
 0x18f   : > { %1982 = vrot.lane.b32.xlu1 %v6618_v63, %s7167_s30  ;;  %1988 = vrot.lane.b32.xlu0 %v6621_v29, %s7167_s30  ;;  %v1847_v29 = vld [vmem:[#allocation2 + $0x1a0] sm:$0xff] }
 0x191   : > { %v1484_v56 = vpop.permute.xlu1 %1483  ;;  %v1490_v5 = vpop.permute.xlu0 %1489 }
 0x192   : > { %1553 = vst.msk [vmem:[#allocation3 + $0x6c] sm:$0xf] %vm1525_vm7, %v1484_v56  ;;  %1556 = vst.msk [vmem:[#allocation3 + $0x78] sm:$0xf] %vm1525_vm7, %v1490_v5 }
 0x193   : > { %1986 = vrot.lane.b32.xlu1 %v6620_v43, %s7167_s30  ;;  %1992 = vrot.lane.b32.xlu0 %v6623_v0, %s7167_s30 }
 0x195   : > { %v1488_v19 = vpop.permute.xlu1 %1487  ;;  %v1687_v34 = vpop.permute.xlu0 %1686 }
 0x196   : > { %1555 = vst.msk [vmem:[#allocation3 + $0x74] sm:$0xf] %vm1525_vm7, %v1488_v19 }
 0x197   : > { %1990 = vrot.lane.b32.xlu1 %v6622_v18, %s7167_s30  ;;  %1783 = vst.msk [vmem:[#allocation3] sm:$0xf] %vm1782_vm8, %v1687_v34  ;;  %1996 = vrot.lane.b32.xlu0 %v6625_v27, %s7167_s30  ;;  %v2087_v34 = vld [vmem:[#allocation2 + $0xd9] sm:$0xff] }
 0x199   : > { %v1492_v45 = vpop.permute.xlu1 %1491  ;;  %v1691_v59 = vpop.permute.xlu0 %1690 }
 0x19a   : > { %1557 = vst.msk [vmem:[#allocation3 + $0x7c] sm:$0xf] %vm1525_vm7, %v1492_v45  ;;  %v2086_v45 = vld [vmem:[#allocation2 + $0xc9] sm:$0xff] }
 0x19b   : > { %1994 = vrot.lane.b32.xlu1 %v7469_v20, %s7167_s30  ;;  %1785 = vst.msk [vmem:[#allocation3 + $0x8] sm:$0xf] %vm1782_vm8, %v1691_v59  ;;  %2000 = vrot.lane.b32.xlu0 %v7616_v62, %s7167_s30  ;;  %v6630_v62 = vpack.c.bf16 %v1847_v29, %v1847_v29  ;;  %v6645_v59 = vpack.c.bf16 %v2087_v34, %v2087_v34 }
 0x19d   : > { %v1689_v63 = vpop.permute.xlu1 %1688  ;;  %v1695_v22 = vpop.permute.xlu0 %1694 }
 0x19e   : > { %1784 = vst.msk [vmem:[#allocation3 + $0x4] sm:$0xf] %vm1782_vm8, %v1689_v63  ;;  %1787 = vst.msk [vmem:[#allocation3 + $0x10] sm:$0xf] %vm1782_vm8, %v1695_v22  ;;  %v6644_v63 = vpack.c.bf16 %v2086_v45, %v2086_v45 }
 0x19f   : > { %1998 = vrot.lane.b32.xlu1 %v7479_v33, %s7167_s30  ;;  %2004 = vrot.lane.b32.xlu0 %v6629_v8, %s7167_s30  ;;  %v2088_v8 = vld [vmem:[#allocation2 + $0xe1] sm:$0xff] }
 0x1a0   : > { %v6646_v29 = vpack.c.bf16 %v2088_v8, %v2088_v8  ;;  %v2102_v8 = vld [vmem:[#allocation2 + $0x189] sm:$0xff] }
 0x1a1   : > { %v1693_v36 = vpop.permute.xlu1 %1692  ;;  %v1699_v20 = vpop.permute.xlu0 %1698 }
 0x1a2   : > { %1786 = vst.msk [vmem:[#allocation3 + $0xc] sm:$0xf] %vm1782_vm8, %v1693_v36  ;;  %1789 = vst.msk [vmem:[#allocation3 + $0x18] sm:$0xf] %vm1782_vm8, %v1699_v20 }
 0x1a3   : > { %2002 = vrot.lane.b32.xlu1 %v7627_v10, %s7167_s30  ;;  %2201 = vrot.lane.b32.xlu0 %v7631_v15, %s7168_s6 }
 0x1a5   : > { %v1697_v37 = vpop.permute.xlu1 %1696  ;;  %v1703_v33 = vpop.permute.xlu0 %1702 }
 0x1a6   : > { %1788 = vst.msk [vmem:[#allocation3 + $0x14] sm:$0xf] %vm1782_vm8, %v1697_v37  ;;  %1791 = vst.msk [vmem:[#allocation3 + $0x20] sm:$0xf] %vm1782_vm8, %v1703_v33  ;;  %v2091_v33 = vld [vmem:[#allocation2 + $0x109] sm:$0xff] }
 0x1a7   : > { %2006 = vrot.lane.b32.xlu1 %v6630_v62, %s7167_s30  ;;  %2205 = vrot.lane.b32.xlu0 %v7639_v28, %s7168_s6 }
 0x1a9   : > { %v1701_v43 = vpop.permute.xlu1 %1700  ;;  %v1707_v10 = vpop.permute.xlu0 %1706 }
 0x1aa   : > { %1790 = vst.msk [vmem:[#allocation3 + $0x1c] sm:$0xf] %vm1782_vm8, %v1701_v43  ;;  %1793 = vst.msk [vmem:[#allocation3 + $0x28] sm:$0xf] %vm1782_vm8, %v1707_v10  ;;  %v2090_v43 = vld [vmem:[#allocation2 + $0xf9] sm:$0xff] }
 0x1ab   : > { %2203 = vrot.lane.b32.xlu1 %v7643_v35, %s7168_s6  ;;  %2209 = vrot.lane.b32.xlu0 %v7648_v41, %s7168_s6  ;;  %v7116_v35 = vld [vmem:[%s9167_s1 + $0x10] ss:$0 sps:$4 sm:$0x33]  }
 0x1ac   : > { %7097 = vmatprep.subr.msk.bf16.mxu0 %vm2775_vm9, %v7116_v35 }
 0x1ad   : > { %v1705_v15 = vpop.permute.xlu1 %1704  ;;  %v1711_v49 = vpop.permute.xlu0 %1710 }
 0x1ae   : > { %1792 = vst.msk [vmem:[#allocation3 + $0x24] sm:$0xf] %vm1782_vm8, %v1705_v15  ;;  %1795 = vst.msk [vmem:[#allocation3 + $0x30] sm:$0xf] %vm1782_vm8, %v1711_v49  ;;  %v6649_v15 = vpack.c.bf16 %v2091_v33, %v2091_v33  ;;  %v6648_v49 = vpack.c.bf16 %v2090_v43, %v2090_v43 }
 0x1af   : > { %2207 = vrot.lane.b32.xlu1 %v7653_v47, %s7168_s6  ;;  %2213 = vrot.lane.b32.xlu0 %v7658_v53, %s7168_s6  ;;  %v2777_v47 = vsel %vm2775_vm9, %v7116_v35, 0  ;;  %v7117_v53 = vld [vmem:[%s9167_s1 + $0x8] sm:$0xff]  }
 0x1b0   : > { %7022 = vmatpush3.bf16.msra.mxu0 %v2777_v47 }
 0x1b1   : > { %v1709_v28 = vpop.permute.xlu1 %1708  ;;  %v1715_v41 = vpop.permute.xlu0 %1714  ;;  %7023 = vmatprep.subr.bf16.mxu0 %v7117_v53 }
 0x1b2   : > { %1794 = vst.msk [vmem:[#allocation3 + $0x2c] sm:$0xf] %vm1782_vm8, %v1709_v28  ;;  %1797 = vst.msk [vmem:[#allocation3 + $0x38] sm:$0xf] %vm1782_vm8, %v1715_v41  ;;  %v2092_v28 = vld [vmem:[#allocation2 + $0x111] sm:$0xff] }
 0x1b3   : > { %2211 = vrot.lane.b32.xlu1 %v7663_v58, %s7168_s6  ;;  %2217 = vrot.lane.b32.xlu0 %v7668_v61, %s7168_s6  ;;  %v7118_v61 = vld [vmem:[%s9167_s1] sm:$0xff]   ;;  %v6650_v41 = vpack.c.bf16 %v2092_v28, %v2092_v28 }
 0x1b4   : > { %7024 = vmatpush3.bf16.msra.mxu0 %v7117_v53 }
 0x1b5   : > { %v1713_v56 = vpop.permute.xlu1 %1712  ;;  %v1719_v58 = vpop.permute.xlu0 %1718  ;;  %7025 = vmatprep.subr.bf16.mxu0 %v7118_v61 }
 0x1b6   : > { %1796 = vst.msk [vmem:[#allocation3 + $0x34] sm:$0xf] %vm1782_vm8, %v1713_v56  ;;  %1799 = vst.msk [vmem:[#allocation3 + $0x40] sm:$0xf] %vm1782_vm8, %v1719_v58 }
 0x1b7   : > { %2215 = vrot.lane.b32.xlu1 %v7673_v7, %s7168_s6  ;;  %2221 = vrot.lane.b32.xlu0 %v7678_v16, %s7168_s6 }
 0x1b8   : > { %7026 = vmatpush3.bf16.msra.mxu0 %v7118_v61  ;;  %v2094_v61 = vld [vmem:[#allocation2 + $0x129] sm:$0xff] }
 0x1b9   : > { %v1717_v0 = vpop.permute.xlu1 %1716  ;;  %v1723_v11 = vpop.permute.xlu0 %1722 }
 0x1ba   : > { %1798 = vst.msk [vmem:[#allocation3 + $0x3c] sm:$0xf] %vm1782_vm8, %v1717_v0  ;;  %1801 = vst.msk [vmem:[#allocation3 + $0x48] sm:$0xf] %vm1782_vm8, %v1723_v11  ;;  %v2095_v0 = vld [vmem:[#allocation2 + $0x139] sm:$0xff] }
 0x1bb   : > { %2219 = vrot.lane.b32.xlu1 %v7683_v23, %s7168_s6  ;;  %2460 = vrot.lane.b32.xlu0 %v7740_v25, %s7169_s13 }
 0x1bd   : > { %v1721_v7 = vpop.permute.xlu1 %1720  ;;  %v1727_v16 = vpop.permute.xlu0 %1726 }
 0x1be   : > { %1800 = vst.msk [vmem:[#allocation3 + $0x44] sm:$0xf] %vm1782_vm8, %v1721_v7  ;;  %1803 = vst.msk [vmem:[#allocation3 + $0x50] sm:$0xf] %vm1782_vm8, %v1727_v16  ;;  %v6653_v7 = vpack.c.bf16 %v2095_v0, %v2095_v0  ;;  %v6652_v16 = vpack.c.bf16 %v2094_v61, %v2094_v61 }
 0x1bf   : > { %2458 = vrot.lane.b32.xlu1 %v7729_v55, %s7169_s13  ;;  %2464 = vrot.lane.b32.xlu0 %v7750_v21, %s7169_s13  ;;  %v2084_v21 = vld [vmem:[#allocation2 + $0xb1] sm:$0xff] }
 0x1c1   : > { %v1725_v5 = vpop.permute.xlu1 %1724  ;;  %v1731_v23 = vpop.permute.xlu0 %1730 }
 0x1c2   : > { %1802 = vst.msk [vmem:[#allocation3 + $0x4c] sm:$0xf] %vm1782_vm8, %v1725_v5  ;;  %1805 = vst.msk [vmem:[#allocation3 + $0x58] sm:$0xf] %vm1782_vm8, %v1731_v23  ;;  %v2096_v5 = vld [vmem:[#allocation2 + $0x141] sm:$0xff] }
 0x1c3   : > { %2462 = vrot.lane.b32.xlu1 %v7736_v4, %s7169_s13  ;;  %2468 = vrot.lane.b32.xlu0 %v7760_v40, %s7169_s13  ;;  %v6642_v40 = vpack.c.bf16 %v2084_v21, %v2084_v21 }
 0x1c5   : > { %v1729_v25 = vpop.permute.xlu1 %1728  ;;  %v1735_v55 = vpop.permute.xlu0 %1734 }
 0x1c6   : > { %1804 = vst.msk [vmem:[#allocation3 + $0x54] sm:$0xf] %vm1782_vm8, %v1729_v25  ;;  %1807 = vst.msk [vmem:[#allocation3 + $0x60] sm:$0xf] %vm1782_vm8, %v1735_v55  ;;  %v6654_v25 = vpack.c.bf16 %v2096_v5, %v2096_v5 }
 0x1c7   : > { %2466 = vrot.lane.b32.xlu1 %v7745_v14, %s7169_s13  ;;  %2472 = vrot.lane.b32.xlu0 %v7770_v57, %s7169_s13  ;;  %v2085_v14 = vld [vmem:[#allocation2 + $0xc1] sm:$0xff] }
 0x1c9   : > { %v1733_v18 = vpop.permute.xlu1 %1732  ;;  %v1739_v4 = vpop.permute.xlu0 %1738 }
 0x1ca   : > { %1806 = vst.msk [vmem:[#allocation3 + $0x5c] sm:$0xf] %vm1782_vm8, %v1733_v18  ;;  %1809 = vst.msk [vmem:[#allocation3 + $0x68] sm:$0xf] %vm1782_vm8, %v1739_v4 }
 0x1cb   : > { %2470 = vrot.lane.b32.xlu1 %v7755_v32, %s7169_s13  ;;  %2474 = vrot.lane.b32.xlu0 %v7765_v48, %s7169_s13  ;;  %v6643_v32 = vpack.c.bf16 %v2085_v14, %v2085_v14 }
 0x1cd   : > { %v1737_v19 = vpop.permute.xlu1 %1736  ;;  %v1743_v27 = vpop.permute.xlu0 %1742 }
 0x1ce   : > { %1808 = vst.msk [vmem:[#allocation3 + $0x64] sm:$0xf] %vm1782_vm8, %v1737_v19  ;;  %1811 = vst.msk [vmem:[#allocation3 + $0x70] sm:$0xf] %vm1782_vm8, %v1743_v27  ;;  %v2098_v19 = vld [vmem:[#allocation2 + $0x159] sm:$0xff] }
 0x1cf   : > { %2223 = vrot.lane.b32.xlu1 %v6642_v40, %s7168_s6  ;;  %2478 = vrot.lane.b32.xlu0 %v7775_v3, %s7169_s13  ;;  %v2099_v40 = vld [vmem:[#allocation2 + $0x169] sm:$0xff] }
 0x1d0   : > { %v6657_v27 = vpack.c.bf16 %v2099_v40, %v2099_v40 }
 0x1d1   : > { %v1741_v57 = vpop.permute.xlu1 %1740  ;;  %v1747_v48 = vpop.permute.xlu0 %1746 }
 0x1d2   : > { %1810 = vst.msk [vmem:[#allocation3 + $0x6c] sm:$0xf] %vm1782_vm8, %v1741_v57  ;;  %1813 = vst.msk [vmem:[#allocation3 + $0x78] sm:$0xf] %vm1782_vm8, %v1747_v48  ;;  %v6656_v57 = vpack.c.bf16 %v2098_v19, %v2098_v19 }
 0x1d3   : > { %2476 = vrot.lane.b32.xlu1 %v7780_v12, %s7169_s13  ;;  %2225 = vrot.lane.b32.xlu0 %v6643_v32, %s7168_s6  ;;  %v2100_v32 = vld [vmem:[#allocation2 + $0x171] sm:$0xff] }
 0x1d4   : > { %v6658_v48 = vpack.c.bf16 %v2100_v32, %v2100_v32 }
 0x1d5   : > { %v1745_v54 = vpop.permute.xlu1 %1744  ;;  %v1945_v3 = vpop.permute.xlu0 %1944 }
 0x1d6   : > { %1812 = vst.msk [vmem:[#allocation3 + $0x74] sm:$0xf] %vm1782_vm8, %v1745_v54 }
 0x1d7   : > { %2480 = vrot.lane.b32.xlu1 %v7790_v31, %s7169_s13  ;;  %2041 = vst.msk [vmem:[#allocation3] sm:$0xf] %vm2040_vm10, %v1945_v3  ;;  %2229 = vrot.lane.b32.xlu0 %v6645_v59, %s7168_s6  ;;  %v2089_v31 = vld [vmem:[#allocation2 + $0xf1] sm:$0xff] }
 0x1d8   : > { %v6647_v37 = vpack.c.bf16 %v2089_v31, %v2089_v31  ;;  %v2360_v31 = vld [vmem:[#allocation2 + $0x19a] sm:$0xff] }
 0x1d9   : > { %v1749_v12 = vpop.permute.xlu1 %1748  ;;  %v1949_v22 = vpop.permute.xlu0 %1948 }
 0x1da   : > { %1814 = vst.msk [vmem:[#allocation3 + $0x7c] sm:$0xf] %vm1782_vm8, %v1749_v12 }
 0x1db   : > { %2227 = vrot.lane.b32.xlu1 %v6644_v63, %s7168_s6  ;;  %2043 = vst.msk [vmem:[#allocation3 + $0x8] sm:$0xf] %vm2040_vm10, %v1949_v22  ;;  %2482 = vrot.lane.b32.xlu0 %v7785_v24, %s7169_s13  ;;  %v2103_v63 = vld [vmem:[#allocation2 + $0x199] sm:$0xff] }
 0x1dc   : > { %v6661_v22 = vpack.c.bf16 %v2103_v63, %v2103_v63 }
 0x1dd   : > { %v1947_v36 = vpop.permute.xlu1 %1946  ;;  %v1953_v20 = vpop.permute.xlu0 %1952 }
 0x1de   : > { %2042 = vst.msk [vmem:[#allocation3 + $0x4] sm:$0xf] %vm2040_vm10, %v1947_v36  ;;  %2045 = vst.msk [vmem:[#allocation3 + $0x10] sm:$0xf] %vm2040_vm10, %v1953_v20  ;;  %v2104_v36 = vld [vmem:[#allocation2 + $0x1a1] sm:$0xff] }
 0x1df   : > { %2231 = vrot.lane.b32.xlu1 %v6646_v29, %s7168_s6  ;;  %2486 = vrot.lane.b32.xlu0 %v7795_v38, %s7169_s13  ;;  %v6660_v29 = vpack.c.bf16 %v2102_v8, %v2102_v8 }
 0x1e1   : > { %v1951_v62 = vpop.permute.xlu1 %1950  ;;  %v1957_v24 = vpop.permute.xlu0 %1956 }
 0x1e2   : > { %2044 = vst.msk [vmem:[#allocation3 + $0xc] sm:$0xf] %vm2040_vm10, %v1951_v62  ;;  %2047 = vst.msk [vmem:[#allocation3 + $0x18] sm:$0xf] %vm2040_vm10, %v1957_v24  ;;  %v6662_v62 = vpack.c.bf16 %v2104_v36, %v2104_v36  ;;  %v2361_v24 = vld [vmem:[#allocation2 + $0x1a2] sm:$0xff] }
 0x1e3   : > { %2484 = vrot.lane.b32.xlu1 %v7800_v44, %s7169_s13  ;;  %2233 = vrot.lane.b32.xlu0 %v6647_v37, %s7168_s6 }
 0x1e5   : > { %v1955_v10 = vpop.permute.xlu1 %1954  ;;  %v1961_v38 = vpop.permute.xlu0 %1960 }
 0x1e6   : > { %2046 = vst.msk [vmem:[#allocation3 + $0x14] sm:$0xf] %vm2040_vm10, %v1955_v10  ;;  %2049 = vst.msk [vmem:[#allocation3 + $0x20] sm:$0xf] %vm2040_vm10, %v1961_v38 }
 0x1e7   : > { %2488 = vrot.lane.b32.xlu1 %v7810_v1, %s7169_s13  ;;  %2237 = vrot.lane.b32.xlu0 %v6649_v15, %s7168_s6  ;;  %v2093_v1 = vld [vmem:[#allocation2 + $0x121] sm:$0xff]  ;;  %v6694_v15 = vpack.c.bf16 %v2361_v24, %v2361_v24 }
 0x1e8   : > { %v6651_v58 = vpack.c.bf16 %v2093_v1, %v2093_v1 }
 0x1e9   : > { %v1959_v35 = vpop.permute.xlu1 %1958  ;;  %v1965_v44 = vpop.permute.xlu0 %1964 }
 0x1ea   : > { %2048 = vst.msk [vmem:[#allocation3 + $0x1c] sm:$0xf] %vm2040_vm10, %v1959_v35  ;;  %2051 = vst.msk [vmem:[#allocation3 + $0x28] sm:$0xf] %vm2040_vm10, %v1965_v44  ;;  %v3005_v44 = vld [vmem:[#allocation2 + $0x8] sm:$0xff] }
 0x1eb   : > { %2235 = vrot.lane.b32.xlu1 %v6648_v49, %s7168_s6  ;;  %2490 = vrot.lane.b32.xlu0 %v7805_v51, %s7169_s13 }
 0x1ed   : > { %v1963_v47 = vpop.permute.xlu1 %1962  ;;  %v1969_v56 = vpop.permute.xlu0 %1968 }
 0x1ee   : > { %2050 = vst.msk [vmem:[#allocation3 + $0x24] sm:$0xf] %vm2040_vm10, %v1963_v47  ;;  %2053 = vst.msk [vmem:[#allocation3 + $0x30] sm:$0xf] %vm2040_vm10, %v1969_v56  ;;  %v3004_v47 = vld [vmem:[#allocation2] sm:$0xff]  ;;  %v6696_v56 = vpack.c.bf16 %v3005_v44, %v3005_v44 }
 0x1ef   : > { %2239 = vrot.lane.b32.xlu1 %v6650_v41, %s7168_s6  ;;  %2494 = vrot.lane.b32.xlu0 %v7815_v9, %s7169_s13 }
 0x1f1   : > { %v1967_v53 = vpop.permute.xlu1 %1966  ;;  %v1973_v51 = vpop.permute.xlu0 %1972 }
 0x1f2   : > { %2052 = vst.msk [vmem:[#allocation3 + $0x2c] sm:$0xf] %vm2040_vm10, %v1967_v53  ;;  %2055 = vst.msk [vmem:[#allocation3 + $0x38] sm:$0xf] %vm2040_vm10, %v1973_v51 }
 0x1f3   : > { %2492 = vrot.lane.b32.xlu1 %v7820_v13, %s7169_s13  ;;  %2241 = vrot.lane.b32.xlu0 %v6651_v58, %s7168_s6  ;;  %v6695_v58 = vpack.c.bf16 %v3004_v47, %v3004_v47 }
 0x1f5   : > { %v1971_v11 = vpop.permute.xlu1 %1970  ;;  %v1977_v9 = vpop.permute.xlu0 %1976 }
 0x1f6   : > { %2054 = vst.msk [vmem:[#allocation3 + $0x34] sm:$0xf] %vm2040_vm10, %v1971_v11  ;;  %2057 = vst.msk [vmem:[#allocation3 + $0x40] sm:$0xf] %vm2040_vm10, %v1977_v9 }
 0x1f7   : > { %2496 = vrot.lane.b32.xlu1 %v7830_v39, %s7169_s13  ;;  %2245 = vrot.lane.b32.xlu0 %v6653_v7, %s7168_s6  ;;  %v2097_v39 = vld [vmem:[#allocation2 + $0x151] sm:$0xff] }
 0x1f8   : > { %v6655_v4 = vpack.c.bf16 %v2097_v39, %v2097_v39 }
 0x1f9   : > { %v1975_v23 = vpop.permute.xlu1 %1974  ;;  %v1981_v13 = vpop.permute.xlu0 %1980 }
 0x1fa   : > { %2056 = vst.msk [vmem:[#allocation3 + $0x3c] sm:$0xf] %vm2040_vm10, %v1975_v23  ;;  %2059 = vst.msk [vmem:[#allocation3 + $0x48] sm:$0xf] %vm2040_vm10, %v1981_v13 }
 0x1fb   : > { %2243 = vrot.lane.b32.xlu1 %v6652_v16, %s7168_s6  ;;  %2498 = vrot.lane.b32.xlu0 %v7825_v26, %s7169_s13 }
 0x1fd   : > { %v1979_v55 = vpop.permute.xlu1 %1978  ;;  %v1985_v21 = vpop.permute.xlu0 %1984 }
 0x1fe   : > { %2058 = vst.msk [vmem:[#allocation3 + $0x44] sm:$0xf] %vm2040_vm10, %v1979_v55  ;;  %2061 = vst.msk [vmem:[#allocation3 + $0x50] sm:$0xf] %vm2040_vm10, %v1985_v21 }
 0x1ff   : > { %2247 = vrot.lane.b32.xlu1 %v6654_v25, %s7168_s6  ;;  %2502 = vrot.lane.b32.xlu0 %v7835_v52, %s7169_s13 }
 0x201   : > { %v1983_v18 = vpop.permute.xlu1 %1982  ;;  %v1989_v26 = vpop.permute.xlu0 %1988 }
 0x202   : > { %2060 = vst.msk [vmem:[#allocation3 + $0x4c] sm:$0xf] %vm2040_vm10, %v1983_v18  ;;  %2063 = vst.msk [vmem:[#allocation3 + $0x58] sm:$0xf] %vm2040_vm10, %v1989_v26 }
 0x203   : > { %2500 = vrot.lane.b32.xlu1 %v7840_v60, %s7169_s13  ;;  %2249 = vrot.lane.b32.xlu0 %v6655_v4, %s7168_s6 }
 0x205   : > { %v1987_v14 = vpop.permute.xlu1 %1986  ;;  %v1993_v52 = vpop.permute.xlu0 %1992 }
 0x206   : > { %2062 = vst.msk [vmem:[#allocation3 + $0x54] sm:$0xf] %vm2040_vm10, %v1987_v14  ;;  %2065 = vst.msk [vmem:[#allocation3 + $0x60] sm:$0xf] %vm2040_vm10, %v1993_v52 }
 0x207   : > { %2504 = vrot.lane.b32.xlu1 %v7850_v30, %s7169_s13  ;;  %2253 = vrot.lane.b32.xlu0 %v6657_v27, %s7168_s6  ;;  %v2101_v30 = vld [vmem:[#allocation2 + $0x181] sm:$0xff] }
 0x208   : > { %v6659_v3 = vpack.c.bf16 %v2101_v30, %v2101_v30 }
 0x209   : > { %v1991_v34 = vpop.permute.xlu1 %1990  ;;  %v1997_v60 = vpop.permute.xlu0 %1996 }
 0x20a   : > { %2064 = vst.msk [vmem:[#allocation3 + $0x5c] sm:$0xf] %vm2040_vm10, %v1991_v34  ;;  %2067 = vst.msk [vmem:[#allocation3 + $0x68] sm:$0xf] %vm2040_vm10, %v1997_v60 }
 0x20b   : > { %2251 = vrot.lane.b32.xlu1 %v6656_v57, %s7168_s6  ;;  %2506 = vrot.lane.b32.xlu0 %v7845_v17, %s7169_s13 }
 0x20d   : > { %v1995_v45 = vpop.permute.xlu1 %1994  ;;  %v2001_v54 = vpop.permute.xlu0 %2000 }
 0x20e   : > { %2066 = vst.msk [vmem:[#allocation3 + $0x64] sm:$0xf] %vm2040_vm10, %v1995_v45  ;;  %2069 = vst.msk [vmem:[#allocation3 + $0x70] sm:$0xf] %vm2040_vm10, %v2001_v54 }
 0x20f   : > { %2255 = vrot.lane.b32.xlu1 %v6658_v48, %s7168_s6  ;;  %2510 = vrot.lane.b32.xlu0 %v7855_v42, %s7169_s13 }
 0x211   : > { %v1999_v59 = vpop.permute.xlu1 %1998  ;;  %v2005_v17 = vpop.permute.xlu0 %2004 }
 0x212   : > { %2068 = vst.msk [vmem:[#allocation3 + $0x6c] sm:$0xf] %vm2040_vm10, %v1999_v59  ;;  %2071 = vst.msk [vmem:[#allocation3 + $0x78] sm:$0xf] %vm2040_vm10, %v2005_v17 }
 0x213   : > { %2508 = vrot.lane.b32.xlu1 %v7860_v50, %s7169_s13  ;;  %2257 = vrot.lane.b32.xlu0 %v6659_v3, %s7168_s6 }
 0x215   : > { %v2003_v12 = vpop.permute.xlu1 %2002  ;;  %v2202_v42 = vpop.permute.xlu0 %2201 }
 0x216   : > { %2070 = vst.msk [vmem:[#allocation3 + $0x74] sm:$0xf] %vm2040_vm10, %v2003_v12 }
 0x217   : > { %2512 = vrot.lane.b32.xlu1 %v7870_v6, %s7169_s13  ;;  %2298 = vst.msk [vmem:[#allocation3] sm:$0xf] %vm2297_vm11, %v2202_v42  ;;  %2261 = vrot.lane.b32.xlu0 %v6661_v22, %s7168_s6  ;;  %v6693_v6 = vpack.c.bf16 %v2360_v31, %v2360_v31 }
 0x219   : > { %v2007_v50 = vpop.permute.xlu1 %2006  ;;  %v2206_v20 = vpop.permute.xlu0 %2205 }
 0x21a   : > { %2072 = vst.msk [vmem:[#allocation3 + $0x7c] sm:$0xf] %vm2040_vm10, %v2007_v50 }
 0x21b   : > { %2259 = vrot.lane.b32.xlu1 %v6660_v29, %s7168_s6  ;;  %2300 = vst.msk [vmem:[#allocation3 + $0x8] sm:$0xf] %vm2297_vm11, %v2206_v20  ;;  %2514 = vrot.lane.b32.xlu0 %v7865_v2, %s7169_s13 }
 0x21d   : > { %v2204_v37 = vpop.permute.xlu1 %2203  ;;  %v2210_v33 = vpop.permute.xlu0 %2209 }
 0x21e   : > { %2299 = vst.msk [vmem:[#allocation3 + $0x4] sm:$0xf] %vm2297_vm11, %v2204_v37  ;;  %2302 = vst.msk [vmem:[#allocation3 + $0x10] sm:$0xf] %vm2297_vm11, %v2210_v33 }
 0x21f   : > { %2263 = vrot.lane.b32.xlu1 %v6662_v62, %s7168_s6  ;;  %2518 = vrot.lane.b32.xlu0 %v6693_v6, %s7169_s13 }
 0x221   : > { %v2208_v43 = vpop.permute.xlu1 %2207  ;;  %v2214_v10 = vpop.permute.xlu0 %2213 }
 0x222   : > { %2301 = vst.msk [vmem:[#allocation3 + $0xc] sm:$0xf] %vm2297_vm11, %v2208_v43  ;;  %2304 = vst.msk [vmem:[#allocation3 + $0x18] sm:$0xf] %vm2297_vm11, %v2214_v10 }
 0x223   : > { %2516 = vrot.lane.b32.xlu1 %v7878_v46, %s7169_s13 }
 0x225   : > { %v2212_v2 = vpop.permute.xlu1 %2211  ;;  %v2218_v38 = vpop.permute.xlu0 %2217 }
 0x226   : > { %2303 = vst.msk [vmem:[#allocation3 + $0x14] sm:$0xf] %vm2297_vm11, %v2212_v2  ;;  %2306 = vst.msk [vmem:[#allocation3 + $0x20] sm:$0xf] %vm2297_vm11, %v2218_v38 }
 0x227   : > { %2520 = vrot.lane.b32.xlu1 %v6694_v15, %s7169_s13 }
 0x229   : > { %v2216_v49 = vpop.permute.xlu1 %2215  ;;  %v2222_v28 = vpop.permute.xlu0 %2221 }
 0x22a   : > { %2305 = vst.msk [vmem:[#allocation3 + $0x1c] sm:$0xf] %vm2297_vm11, %v2216_v49  ;;  %2308 = vst.msk [vmem:[#allocation3 + $0x28] sm:$0xf] %vm2297_vm11, %v2222_v28 }
 0x22d   : > { %v2220_v35 = vpop.permute.xlu1 %2219  ;;  %v2461_v46 = vpop.permute.xlu0 %2460 }
 0x22e   : > { %2307 = vst.msk [vmem:[#allocation3 + $0x24] sm:$0xf] %vm2297_vm11, %v2220_v35 }
 0x22f   : > { %2556 = vst.msk [vmem:[#allocation3 + $0x4] sm:$0xf] %vm2554_vm12, %v2461_v46  ;;  %v3196_v46 = vld [vmem:[#allocation2 + $0x1] sm:$0xff] }
 0x230   : > { %v6727_v44 = vpack.c.bf16 %v3196_v46, %v3196_v46 }
 0x231   : > { %v2459_v41 = vpop.permute.xlu1 %2458  ;;  %v2465_v1 = vpop.permute.xlu0 %2464 }
 0x232   : > { %2555 = vst.msk [vmem:[#allocation3] sm:$0xf] %vm2554_vm12, %v2459_v41  ;;  %2558 = vst.msk [vmem:[#allocation3 + $0xc] sm:$0xf] %vm2554_vm12, %v2465_v1  ;;  %3324 = vrot.lane.b32.xlu0 %v6727_v44, %s7162_s25 }
 0x235   : > { %v2463_v53 = vpop.permute.xlu1 %2462  ;;  %v2469_v51 = vpop.permute.xlu0 %2468 }
 0x236   : > { %2557 = vst.msk [vmem:[#allocation3 + $0x8] sm:$0xf] %vm2554_vm12, %v2463_v53  ;;  %v2588_v0 = vld [vmem:[#allocation3 + $0x4] sm:$0xf]  ;;  %2560 = vst.msk [vmem:[#allocation3 + $0x14] sm:$0xf] %vm2554_vm12, %v2469_v51 }
 0x237   : > { %3165 = vst.msk [vmem:[#allocation3 + $0x4] sm:$0xf] %vm497_vm3, %v6696_v56  ;;  %v3197_v56 = vld [vmem:[#allocation2 + $0x9] sm:$0xff] }
 0x238   : > { %v6728_v53 = vpack.c.bf16 %v3197_v56, %v3197_v56 }
 0x239   : > { %v2587_v61 = vld [vmem:[#allocation3] sm:$0xf]  ;;  %v2467_v11 = vpop.permute.xlu1 %2466  ;;  %v2473_v9 = vpop.permute.xlu0 %2472 }
 0x23a   : > { %3164 = vst.msk [vmem:[#allocation3] sm:$0xf] %vm497_vm3, %v6695_v58  ;;  %v6044_v7 = vcombine.low %v2587_v61, %v2588_v0  ;;  %3326 = vrot.lane.b32.xlu1 %v6728_v53, %s7162_s25 }
 0x23b   : > { %2559 = vst.msk [vmem:[#allocation3 + $0x10] sm:$0xf] %vm2554_vm12, %v2467_v11  ;;  %2562 = vst.msk [vmem:[#allocation3 + $0x1c] sm:$0xf] %vm2554_vm12, %v2473_v9 }
 0x23c   : > { %7027 = vmatprep.mubr.msk.bf16.mxu0 %vm2726_vm13, %v6044_v7 }
 0x23d   : > { %v2471_v16 = vpop.permute.xlu1 %2470  ;;  %v7119_v5 = vld [vmem:[#allocation3 + $0x8] sm:$0xff]   ;;  %v2475_v23 = vpop.permute.xlu0 %2474 }
 0x23e   : > { %2561 = vst.msk [vmem:[#allocation3 + $0x18] sm:$0xf] %vm2554_vm12, %v2471_v16  ;;  %7028 = vmatmul.mubr.msk.bf16.vlgmr.msra.gmra.mxu0 %vm2726_vm13, %v7119_v5  ;;  %2563 = vst.msk [vmem:[#allocation3 + $0x20] sm:$0xf] %vm2554_vm12, %v2475_v23  ;;  %v8212_v5 = vld [vmem:[%s9168_s2] ss:$0 sm:$0xff] }
 0x241   : > { %v2224_v13 = vpop.permute.xlu1 %2223  ;;  %v2479_v55 = vpop.permute.xlu0 %2478 }
 0x242   : > { %v7120_v25 = vld [vmem:[#allocation3 + $0x10] sm:$0xff]   ;;  %2309 = vst.msk [vmem:[#allocation3 + $0x2c] sm:$0xf] %vm2297_vm11, %v2224_v13 }
 0x243   : > { %7031 = vmatprep.mubr.msk.bf16.mxu0 %vm2726_vm13, %v7120_v25  ;;  %2565 = vst.msk [vmem:[#allocation3 + $0x28] sm:$0xf] %vm2554_vm12, %v2479_v55 }
 0x245   : > { %v2477_v39 = vpop.permute.xlu1 %2476  ;;  %v7121_v21 = vld [vmem:[#allocation3 + $0x18] sm:$0xff]   ;;  %v2226_v18 = vpop.permute.xlu0 %2225 }
 0x246   : > { %2564 = vst.msk [vmem:[#allocation3 + $0x24] sm:$0xf] %vm2554_vm12, %v2477_v39  ;;  %7032 = vmatmul.mubr.msk.bf16.gmra.mxu0 %vm2726_vm13, %v7121_v21 }
 0x247   : > { %2310 = vst.msk [vmem:[#allocation3 + $0x30] sm:$0xf] %vm2297_vm11, %v2226_v18 }
 0x249   : > { %v2481_v4 = vpop.permute.xlu1 %2480  ;;  %v2230_v40 = vpop.permute.xlu0 %2229 }
 0x24a   : > { %2566 = vst.msk [vmem:[#allocation3 + $0x2c] sm:$0xf] %vm2554_vm12, %v2481_v4 }
 0x24b   : > { %2312 = vst.msk [vmem:[#allocation3 + $0x38] sm:$0xf] %vm2297_vm11, %v2230_v40 }
 0x24d   : > { %v2228_v26 = vpop.permute.xlu1 %2227  ;;  %v7122_v19 = vld [vmem:[#allocation3 + $0x20] sm:$0xff]   ;;  %v2483_v14 = vpop.permute.xlu0 %2482 }
 0x24e   : > { %2311 = vst.msk [vmem:[#allocation3 + $0x34] sm:$0xf] %vm2297_vm11, %v2228_v26  ;;  %7035 = vmatprep.mubr.msk.bf16.mxu0 %vm2726_vm13, %v7122_v19 }
 0x24f   : > { %2567 = vst.msk [vmem:[#allocation3 + $0x30] sm:$0xf] %vm2554_vm12, %v2483_v14 }
 0x251   : > { %v2232_v27 = vpop.permute.xlu1 %2231  ;;  %v7123_v52 = vld [vmem:[#allocation3 + $0x28] sm:$0xff]   ;;  %v2487_v57 = vpop.permute.xlu0 %2486 }
 0x252   : > { %2313 = vst.msk [vmem:[#allocation3 + $0x3c] sm:$0xf] %vm2297_vm11, %v2232_v27  ;;  %7036 = vmatmul.mubr.msk.bf16.gmra.mxu0 %vm2726_vm13, %v7123_v52 }
 0x253   : > { %2569 = vst.msk [vmem:[#allocation3 + $0x38] sm:$0xf] %vm2554_vm12, %v2487_v57 }
 0x255   : > { %v2485_v32 = vpop.permute.xlu1 %2484  ;;  %v2234_v34 = vpop.permute.xlu0 %2233 }
 0x256   : > { %2568 = vst.msk [vmem:[#allocation3 + $0x34] sm:$0xf] %vm2554_vm12, %v2485_v32 }
 0x257   : > { %2314 = vst.msk [vmem:[#allocation3 + $0x40] sm:$0xf] %vm2297_vm11, %v2234_v34 }
 0x259   : > { %v2489_v60 = vpop.permute.xlu1 %2488  ;;  %v2238_v48 = vpop.permute.xlu0 %2237 }
 0x25a   : > { %2570 = vst.msk [vmem:[#allocation3 + $0x3c] sm:$0xf] %vm2554_vm12, %v2489_v60 }
 0x25b   : > { %2316 = vst.msk [vmem:[#allocation3 + $0x48] sm:$0xf] %vm2297_vm11, %v2238_v48 }
 0x25d   : > { %v2236_v45 = vpop.permute.xlu1 %2235  ;;  %v7124_v30 = vld [vmem:[#allocation3 + $0x30] sm:$0xff]   ;;  %v2491_v54 = vpop.permute.xlu0 %2490 }
 0x25e   : > { %2315 = vst.msk [vmem:[#allocation3 + $0x44] sm:$0xf] %vm2297_vm11, %v2236_v45  ;;  %7039 = vmatprep.mubr.msk.bf16.mxu0 %vm2726_vm13, %v7124_v30 }
 0x25f   : > { %2571 = vst.msk [vmem:[#allocation3 + $0x40] sm:$0xf] %vm2554_vm12, %v2491_v54 }
 0x261   : > { %v2240_v59 = vpop.permute.xlu1 %2239  ;;  %v7125_v3 = vld [vmem:[#allocation3 + $0x38] sm:$0xff]   ;;  %v2495_v63 = vpop.permute.xlu0 %2494 }
 0x262   : > { %2317 = vst.msk [vmem:[#allocation3 + $0x4c] sm:$0xf] %vm2297_vm11, %v2240_v59  ;;  %7040 = vmatmul.mubr.msk.bf16.gmra.mxu0 %vm2726_vm13, %v7125_v3 }
 0x263   : > { %2573 = vst.msk [vmem:[#allocation3 + $0x48] sm:$0xf] %vm2554_vm12, %v2495_v63 }
 0x265   : > { %v2493_v17 = vpop.permute.xlu1 %2492  ;;  %v2242_v8 = vpop.permute.xlu0 %2241 }
 0x266   : > { %2572 = vst.msk [vmem:[#allocation3 + $0x44] sm:$0xf] %vm2554_vm12, %v2493_v17 }
 0x267   : > { %2318 = vst.msk [vmem:[#allocation3 + $0x50] sm:$0xf] %vm2297_vm11, %v2242_v8 }
 0x269   : > { %v2497_v12 = vpop.permute.xlu1 %2496  ;;  %v2246_v22 = vpop.permute.xlu0 %2245 }
 0x26a   : > { %2574 = vst.msk [vmem:[#allocation3 + $0x4c] sm:$0xf] %vm2554_vm12, %v2497_v12 }
 0x26b   : > { %2320 = vst.msk [vmem:[#allocation3 + $0x58] sm:$0xf] %vm2297_vm11, %v2246_v22 }
 0x26d   : > { %v2244_v42 = vpop.permute.xlu1 %2243  ;;  %v7126_v29 = vld [vmem:[#allocation3 + $0x40] sm:$0xff]   ;;  %v2499_v36 = vpop.permute.xlu0 %2498 }
 0x26e   : > { %2319 = vst.msk [vmem:[#allocation3 + $0x54] sm:$0xf] %vm2297_vm11, %v2244_v42  ;;  %7043 = vmatprep.mubr.msk.bf16.mxu0 %vm2726_vm13, %v7126_v29 }
 0x26f   : > { %2575 = vst.msk [vmem:[#allocation3 + $0x50] sm:$0xf] %vm2554_vm12, %v2499_v36 }
 0x271   : > { %v2248_v50 = vpop.permute.xlu1 %2247  ;;  %v7127_v31 = vld [vmem:[#allocation3 + $0x48] sm:$0xff]   ;;  %v2503_v20 = vpop.permute.xlu0 %2502 }
 0x272   : > { %2321 = vst.msk [vmem:[#allocation3 + $0x5c] sm:$0xf] %vm2297_vm11, %v2248_v50  ;;  %7044 = vmatmul.mubr.msk.bf16.gmra.mxu0 %vm2726_vm13, %v7127_v31 }
 0x273   : > { %2577 = vst.msk [vmem:[#allocation3 + $0x58] sm:$0xf] %vm2554_vm12, %v2503_v20 }
 0x275   : > { %v2501_v62 = vpop.permute.xlu1 %2500  ;;  %v2250_v37 = vpop.permute.xlu0 %2249 }
 0x276   : > { %2576 = vst.msk [vmem:[#allocation3 + $0x54] sm:$0xf] %vm2554_vm12, %v2501_v62 }
 0x277   : > { %2322 = vst.msk [vmem:[#allocation3 + $0x60] sm:$0xf] %vm2297_vm11, %v2250_v37 }
 0x279   : > { %v2505_v6 = vpop.permute.xlu1 %2504  ;;  %v2254_v33 = vpop.permute.xlu0 %2253 }
 0x27a   : > { %2578 = vst.msk [vmem:[#allocation3 + $0x5c] sm:$0xf] %vm2554_vm12, %v2505_v6 }
 0x27b   : > { %2324 = vst.msk [vmem:[#allocation3 + $0x68] sm:$0xf] %vm2297_vm11, %v2254_v33 }
 0x27d   : > { %v2252_v24 = vpop.permute.xlu1 %2251  ;;  %v7128_v43 = vld [vmem:[#allocation3 + $0x50] sm:$0xff]   ;;  %v2507_v10 = vpop.permute.xlu0 %2506 }
 0x27e   : > { %2323 = vst.msk [vmem:[#allocation3 + $0x64] sm:$0xf] %vm2297_vm11, %v2252_v24  ;;  %7047 = vmatprep.mubr.msk.bf16.mxu0 %vm2726_vm13, %v7128_v43 }
 0x27f   : > { %2579 = vst.msk [vmem:[#allocation3 + $0x60] sm:$0xf] %vm2554_vm12, %v2507_v10 }
 0x281   : > { %v2256_v15 = vpop.permute.xlu1 %2255  ;;  %v7129_v2 = vld [vmem:[#allocation3 + $0x58] sm:$0xff]   ;;  %v2511_v38 = vpop.permute.xlu0 %2510 }
 0x282   : > { %2325 = vst.msk [vmem:[#allocation3 + $0x6c] sm:$0xf] %vm2297_vm11, %v2256_v15  ;;  %7048 = vmatmul.mubr.msk.bf16.gmra.mxu0 %vm2726_vm13, %v7129_v2 }
 0x283   : > { %2581 = vst.msk [vmem:[#allocation3 + $0x68] sm:$0xf] %vm2554_vm12, %v2511_v38 }
 0x285   : > { %v2509_v49 = vpop.permute.xlu1 %2508  ;;  %v2258_v28 = vpop.permute.xlu0 %2257 }
 0x286   : > { %2580 = vst.msk [vmem:[#allocation3 + $0x64] sm:$0xf] %vm2554_vm12, %v2509_v49 }
 0x287   : > { %2326 = vst.msk [vmem:[#allocation3 + $0x70] sm:$0xf] %vm2297_vm11, %v2258_v28 }
 0x289   : > { %v2513_v35 = vpop.permute.xlu1 %2512  ;;  %v2262_v41 = vpop.permute.xlu0 %2261 }
 0x28a   : > { %2582 = vst.msk [vmem:[#allocation3 + $0x6c] sm:$0xf] %vm2554_vm12, %v2513_v35 }
 0x28b   : > { %2328 = vst.msk [vmem:[#allocation3 + $0x78] sm:$0xf] %vm2297_vm11, %v2262_v41 }
 0x28d   : > { %v2260_v47 = vpop.permute.xlu1 %2259  ;;  %v7130_v1 = vld [vmem:[#allocation3 + $0x60] sm:$0xff]   ;;  %v2515_v58 = vpop.permute.xlu0 %2514 }
 0x28e   : > { %2327 = vst.msk [vmem:[#allocation3 + $0x74] sm:$0xf] %vm2297_vm11, %v2260_v47  ;;  %7051 = vmatprep.mubr.msk.bf16.mxu0 %vm2726_vm13, %v7130_v1 }
 0x28f   : > { %2583 = vst.msk [vmem:[#allocation3 + $0x70] sm:$0xf] %vm2554_vm12, %v2515_v58 }
 0x291   : > { %v2264_v0 = vpop.permute.xlu1 %2263  ;;  %v7131_v51 = vld [vmem:[#allocation3 + $0x68] sm:$0xff]   ;;  %v2519_v61 = vpop.permute.xlu0 %2518 }
 0x292   : > { %2329 = vst.msk [vmem:[#allocation3 + $0x7c] sm:$0xf] %vm2297_vm11, %v2264_v0  ;;  %7052 = vmatmul.mubr.msk.bf16.gmra.mxu0 %vm2726_vm13, %v7131_v51 }
 0x293   : > { %2585 = vst.msk [vmem:[#allocation3 + $0x78] sm:$0xf] %vm2554_vm12, %v2519_v61 }
 0x295   : > { %v2517_v11 = vpop.permute.xlu1 %2516 }
 0x296   : > { %2584 = vst.msk [vmem:[#allocation3 + $0x74] sm:$0xf] %vm2554_vm12, %v2517_v11 }
 0x299   : > { %v2521_v7 = vpop.permute.xlu1 %2520 }
 0x29a   : > { %2586 = vst.msk [vmem:[#allocation3 + $0x7c] sm:$0xf] %vm2554_vm12, %v2521_v7 }
 0x29d   : > { %v7132_v9 = vld [vmem:[#allocation3 + $0x70] sm:$0xff]  }
 0x29e   : > { %7055 = vmatprep.mubr.msk.bf16.mxu0 %vm2726_vm13, %v7132_v9 }
 0x2a1   : > { %v7133_v16 = vld [vmem:[#allocation3 + $0x78] sm:$0xff]  }
 0x2a2   : > { %7056 = vmatmul.mubr.msk.bf16.gmra.mxu0 %vm2726_vm13, %v7133_v16 }
 0x2a4   : > { %v3325_v23 = vpop.permute.xlu0 %3324 }
 0x2a5   : > { %3420 = vst.msk [vmem:[#allocation3] sm:$0xf] %vm754_vm4, %v3325_v23 }
 0x2ac   : > { %v3327_v18 = vpop.permute.xlu1 %3326 }
 0x2ad   : > { %3421 = vst.msk [vmem:[#allocation3 + $0x4] sm:$0xf] %vm754_vm4, %v3327_v18 }
 0x2fe   : > { %v7029_v13 = vpop.f32.mrf.mxu0 }
 0x2ff   : > { %v2822_v25 = vadd.f32 %v7029_v13, %v8212_v5 }
 0x300   : > { %v2813_v55 = vpop.f32.mrf.mxu0 }
 0x301   : > { %v2942_v39 = vmax.f32 %v2822_v25, 0.0  ;;  %v2814_v21 = vadd.f32 %v8212_v5, %v2813_v55 }
 0x302   : > { %v7030_v4 = vpop.f32.mrf.mxu0 }
 0x303   : > { %2974 = vst.msk [vmem:[#allocation2 + $0x31] sm:$0xff] %vm226_vm0, %v2942_v39  ;;  %v2940_v40 = vmax.f32 %v2814_v21, 0.0  ;;  %v2825_v26 = vadd.f32 %v7030_v4, %v8212_v5 }
 0x304   : > { %v2816_v19 = vpop.f32.mrf.mxu0 }
 0x305   : > { %2972 = vst.msk [vmem:[#allocation2 + $0x19] sm:$0xff] %vm226_vm0, %v2940_v40  ;;  %v2943_v14 = vmax.f32 %v2825_v26, 0.0  ;;  %v2817_v27 = vadd.f32 %v8212_v5, %v2816_v19 }
 0x306   : > { %v7033_v52 = vpop.f32.mrf.mxu0 }
 0x307   : > { %2975 = vst.msk [vmem:[#allocation2 + $0x39] sm:$0xff] %vm226_vm0, %v2943_v14  ;;  %v2941_v57 = vmax.f32 %v2817_v27, 0.0  ;;  %v2838_v32 = vadd.f32 %v7033_v52, %v8212_v5 }
 0x308   : > { %v2829_v34 = vpop.f32.mrf.mxu0 }
 0x309   : > { %2973 = vst.msk [vmem:[#allocation2 + $0x21] sm:$0xff] %vm226_vm0, %v2941_v57  ;;  %v2946_v60 = vmax.f32 %v2838_v32, 0.0  ;;  %v2830_v48 = vadd.f32 %v8212_v5, %v2829_v34 }
 0x30a   : > { %v7034_v45 = vpop.f32.mrf.mxu0  ;;  %v3008_v30 = vld [vmem:[#allocation2 + $0x30] sm:$0xff] }
 0x30b   : > { %2978 = vst.msk [vmem:[#allocation2 + $0x61] sm:$0xff] %vm226_vm0, %v2946_v60  ;;  %v2944_v54 = vmax.f32 %v2830_v48, 0.0  ;;  %v2841_v59 = vadd.f32 %v7034_v45, %v8212_v5  ;;  %v8228_v3 = vpack.c.bf16 %v3008_v30, %v3008_v30  ;;  %v3200_v36 = vld [vmem:[#allocation2 + $0x31] sm:$0xff] }
 0x30c   : > { %v2832_v63 = vpop.f32.mrf.mxu0  ;;  %v3198_v17 = vld [vmem:[#allocation2 + $0x19] sm:$0xff]  ;;  %v6731_v6 = vpack.c.bf16 %v3200_v36, %v3200_v36 }
 0x30d   : > { %v3006_v8 = vld [vmem:[#allocation2 + $0x18] sm:$0xff]  ;;  %2976 = vst.msk [vmem:[#allocation2 + $0x49] sm:$0xff] %vm226_vm0, %v2944_v54  ;;  %v2947_v12 = vmax.f32 %v2841_v59, 0.0  ;;  %v2833_v22 = vadd.f32 %v8212_v5, %v2832_v63  ;;  %v6729_v42 = vpack.c.bf16 %v3198_v17, %v3198_v17 }
 0x30e   : > { %v8232_v29 = vpack.c.bf16 %v3006_v8, %v3006_v8  ;;  %3168 = vst.msk [vmem:[#allocation3 + $0x10] sm:$0xf] %vm497_vm3, %v8228_v3  ;;  %v3009_v31 = vld [vmem:[#allocation2 + $0x38] sm:$0xff] }
 0x30f   : > { %2979 = vst.msk [vmem:[#allocation2 + $0x69] sm:$0xff] %vm226_vm0, %v2947_v12  ;;  %v2945_v50 = vmax.f32 %v2833_v22, 0.0  ;;  %3328 = vrot.lane.b32.xlu0 %v6729_v42, %s7162_s25  ;;  %v8240_v62 = vpack.c.bf16 %v3009_v31, %v3009_v31  ;;  %v3201_v33 = vld [vmem:[#allocation2 + $0x39] sm:$0xff] }
 0x310   : > { %3166 = vst.msk [vmem:[#allocation3 + $0x8] sm:$0xf] %vm497_vm3, %v8232_v29  ;;  %v3199_v20 = vld [vmem:[#allocation2 + $0x21] sm:$0xff]  ;;  %v8252_v28 = vpack.c.bf16 %v3201_v33, %v3201_v33 }
 0x311   : > { %2977 = vst.msk [vmem:[#allocation2 + $0x51] sm:$0xff] %vm226_vm0, %v2945_v50  ;;  %v6730_v37 = vpack.c.bf16 %v3199_v20, %v3199_v20  ;;  %v3007_v24 = vld [vmem:[#allocation2 + $0x20] sm:$0xff] }
 0x312   : > { %v7037_v43 = vpop.f32.mrf.mxu0  ;;  %v8243_v10 = vpack.c.bf16 %v3007_v24, %v3007_v24  ;;  %3169 = vst.msk [vmem:[#allocation3 + $0x14] sm:$0xf] %vm497_vm3, %v8240_v62  ;;  %v3012_v15 = vld [vmem:[#allocation2 + $0x60] sm:$0xff] }
 0x313   : > { %v2854_v2 = vadd.f32 %v7037_v43, %v8212_v5  ;;  %3330 = vrot.lane.b32.xlu1 %v6730_v37, %s7162_s25  ;;  %3332 = vrot.lane.b32.xlu0 %v6731_v6, %s7162_s25  ;;  %v8250_v38 = vpack.c.bf16 %v3012_v15, %v3012_v15  ;;  %v3204_v53 = vld [vmem:[#allocation2 + $0x61] sm:$0xff] }
 0x314   : > { %v2845_v49 = vpop.f32.mrf.mxu0  ;;  %v3202_v35 = vld [vmem:[#allocation2 + $0x49] sm:$0xff]  ;;  %3167 = vst.msk [vmem:[#allocation3 + $0xc] sm:$0xf] %vm497_vm3, %v8243_v10  ;;  %v6735_v13 = vpack.c.bf16 %v3204_v53, %v3204_v53 }
 0x315   : > { %v3010_v46 = vld [vmem:[#allocation2 + $0x48] sm:$0xff]  ;;  %v2950_v44 = vmax.f32 %v2854_v2, 0.0  ;;  %v2846_v41 = vadd.f32 %v8212_v5, %v2845_v49  ;;  %v6733_v47 = vpack.c.bf16 %v3202_v35, %v3202_v35  ;;  %3172 = vst.msk [vmem:[#allocation3 + $0x20] sm:$0xf] %vm497_vm3, %v8250_v38 }
 0x316   : > { %v8257_v1 = vpack.c.bf16 %v3010_v46, %v3010_v46  ;;  %v7038_v56 = vpop.f32.mrf.mxu0  ;;  %v3013_v51 = vld [vmem:[#allocation2 + $0x68] sm:$0xff] }
 0x317   : > { %2982 = vst.msk [vmem:[#allocation2 + $0x91] sm:$0xff] %vm226_vm0, %v2950_v44  ;;  %v2948_v58 = vmax.f32 %v2846_v41, 0.0  ;;  %v2857_v0 = vadd.f32 %v7038_v56, %v8212_v5  ;;  %3334 = vrot.lane.b32.xlu1 %v8252_v28, %s7162_s25  ;;  %3336 = vrot.lane.b32.xlu0 %v6733_v47, %s7162_s25  ;;  %v8268_v7 = vpack.c.bf16 %v3013_v51, %v3013_v51  ;;  %v3205_v55 = vld [vmem:[#allocation2 + $0x69] sm:$0xff] }
 0x318   : > { %3170 = vst.msk [vmem:[#allocation3 + $0x18] sm:$0xf] %vm497_vm3, %v8257_v1  ;;  %v2848_v61 = vpop.f32.mrf.mxu0  ;;  %v3203_v11 = vld [vmem:[#allocation2 + $0x51] sm:$0xff]  ;;  %v6736_v18 = vpack.c.bf16 %v3205_v55, %v3205_v55 }
 0x319   : > { %2980 = vst.msk [vmem:[#allocation2 + $0x79] sm:$0xff] %vm226_vm0, %v2948_v58  ;;  %v2951_v9 = vmax.f32 %v2857_v0, 0.0  ;;  %v2849_v16 = vadd.f32 %v8212_v5, %v2848_v61  ;;  %v6734_v23 = vpack.c.bf16 %v3203_v11, %v3203_v11  ;;  %v3011_v25 = vld [vmem:[#allocation2 + $0x50] sm:$0xff] }
 0x31a   : > { %v8272_v39 = vpack.c.bf16 %v3011_v25, %v3011_v25  ;;  %3173 = vst.msk [vmem:[#allocation3 + $0x24] sm:$0xf] %vm497_vm3, %v8268_v7 }
 0x31b   : > { %2983 = vst.msk [vmem:[#allocation2 + $0x99] sm:$0xff] %vm226_vm0, %v2951_v9  ;;  %v2949_v21 = vmax.f32 %v2849_v16, 0.0  ;;  %3338 = vrot.lane.b32.xlu1 %v6734_v23, %s7162_s25  ;;  %3340 = vrot.lane.b32.xlu0 %v6735_v13, %s7162_s25 }
 0x31c   : > { %3171 = vst.msk [vmem:[#allocation3 + $0x1c] sm:$0xf] %vm497_vm3, %v8272_v39 }
 0x31d   : > { %2981 = vst.msk [vmem:[#allocation2 + $0x81] sm:$0xff] %vm226_vm0, %v2949_v21 }
 0x31e   : > { %v3016_v4 = vld [vmem:[#allocation2 + $0x90] sm:$0xff] }
 0x31f   : > { %3342 = vrot.lane.b32.xlu1 %v6736_v18, %s7162_s25  ;;  %v8283_v40 = vpack.c.bf16 %v3016_v4, %v3016_v4  ;;  %v3208_v57 = vld [vmem:[#allocation2 + $0x91] sm:$0xff] }
 0x320   : > { %v3206_v26 = vld [vmem:[#allocation2 + $0x79] sm:$0xff]  ;;  %v6739_v63 = vpack.c.bf16 %v3208_v57, %v3208_v57 }
 0x321   : > { %v3014_v19 = vld [vmem:[#allocation2 + $0x78] sm:$0xff]  ;;  %v6737_v14 = vpack.c.bf16 %v3206_v26, %v3206_v26  ;;  %3176 = vst.msk [vmem:[#allocation3 + $0x30] sm:$0xf] %vm497_vm3, %v8283_v40 }
 0x322   : > { %v8285_v27 = vpack.c.bf16 %v3014_v19, %v3014_v19  ;;  %v7041_v52 = vpop.f32.mrf.mxu0  ;;  %v3017_v34 = vld [vmem:[#allocation2 + $0x98] sm:$0xff] }
 0x323   : > { %v2870_v32 = vadd.f32 %v7041_v52, %v8212_v5  ;;  %3344 = vrot.lane.b32.xlu0 %v6737_v14, %s7162_s25  ;;  %v8293_v45 = vpack.c.bf16 %v3017_v34, %v3017_v34  ;;  %v3209_v12 = vld [vmem:[#allocation2 + $0x99] sm:$0xff] }
 0x324   : > { %3174 = vst.msk [vmem:[#allocation3 + $0x28] sm:$0xf] %vm497_vm3, %v8285_v27  ;;  %v2861_v60 = vpop.f32.mrf.mxu0  ;;  %v3207_v48 = vld [vmem:[#allocation2 + $0x81] sm:$0xff]  ;;  %v6740_v37 = vpack.c.bf16 %v3209_v12, %v3209_v12 }
 0x325   : > { %v2954_v30 = vmax.f32 %v2870_v32, 0.0  ;;  %v2862_v54 = vadd.f32 %v8212_v5, %v2861_v60  ;;  %v6738_v59 = vpack.c.bf16 %v3207_v48, %v3207_v48  ;;  %v3015_v17 = vld [vmem:[#allocation2 + $0x80] sm:$0xff]  ;;  %3177 = vst.msk [vmem:[#allocation3 + $0x34] sm:$0xf] %vm497_vm3, %v8293_v45 }
 0x326   : > { %v7042_v8 = vpop.f32.mrf.mxu0  ;;  %v8296_v22 = vpack.c.bf16 %v3015_v17, %v3015_v17 }
 0x327   : > { %2986 = vst.msk [vmem:[#allocation2 + $0xc1] sm:$0xff] %vm226_vm0, %v2954_v30  ;;  %v2952_v42 = vmax.f32 %v2862_v54, 0.0  ;;  %v2873_v36 = vadd.f32 %v7042_v8, %v8212_v5  ;;  %3346 = vrot.lane.b32.xlu1 %v6738_v59, %s7162_s25  ;;  %3348 = vrot.lane.b32.xlu0 %v6739_v63, %s7162_s25 }
 0x328   : > { %v2864_v50 = vpop.f32.mrf.mxu0  ;;  %3175 = vst.msk [vmem:[#allocation3 + $0x2c] sm:$0xf] %vm497_vm3, %v8296_v22 }
 0x329   : > { %2984 = vst.msk [vmem:[#allocation2 + $0xa9] sm:$0xff] %vm226_vm0, %v2952_v42  ;;  %v2955_v31 = vmax.f32 %v2873_v36, 0.0  ;;  %v2865_v20 = vadd.f32 %v8212_v5, %v2864_v50 }
 0x32b   : > { %2987 = vst.msk [vmem:[#allocation2 + $0xc9] sm:$0xff] %vm226_vm0, %v2955_v31  ;;  %v2953_v6 = vmax.f32 %v2865_v20, 0.0  ;;  %3350 = vrot.lane.b32.xlu1 %v6740_v37, %s7162_s25 }
 0x32d   : > { %2985 = vst.msk [vmem:[#allocation2 + $0xb1] sm:$0xff] %vm226_vm0, %v2953_v6 }
 0x32e   : > { %v3020_v33 = vld [vmem:[#allocation2 + $0xc0] sm:$0xff] }
 0x32f   : > { %v8311_v24 = vpack.c.bf16 %v3020_v33, %v3020_v33  ;;  %v3212_v46 = vld [vmem:[#allocation2 + $0xc1] sm:$0xff] }
 0x330   : > { %v3210_v43 = vld [vmem:[#allocation2 + $0xa9] sm:$0xff]  ;;  %v6743_v61 = vpack.c.bf16 %v3212_v46, %v3212_v46 }
 0x331   : > { %v3018_v15 = vld [vmem:[#allocation2 + $0xa8] sm:$0xff]  ;;  %v6741_v2 = vpack.c.bf16 %v3210_v43, %v3210_v43  ;;  %3180 = vst.msk [vmem:[#allocation3 + $0x40] sm:$0xf] %vm497_vm3, %v8311_v24 }
 0x332   : > { %v8313_v49 = vpack.c.bf16 %v3018_v15, %v3018_v15  ;;  %v7045_v35 = vpop.f32.mrf.mxu0  ;;  %v3021_v41 = vld [vmem:[#allocation2 + $0xc8] sm:$0xff] }
 0x333   : > { %v2886_v44 = vadd.f32 %v7045_v35, %v8212_v5  ;;  %3352 = vrot.lane.b32.xlu0 %v6741_v2, %s7162_s25  ;;  %v8321_v53 = vpack.c.bf16 %v3021_v41, %v3021_v41  ;;  %v3213_v16 = vld [vmem:[#allocation2 + $0xc9] sm:$0xff] }
 0x334   : > { %3178 = vst.msk [vmem:[#allocation3 + $0x38] sm:$0xf] %vm497_vm3, %v8313_v49  ;;  %v2877_v47 = vpop.f32.mrf.mxu0  ;;  %v3211_v56 = vld [vmem:[#allocation2 + $0xb1] sm:$0xff]  ;;  %v6744_v4 = vpack.c.bf16 %v3213_v16, %v3213_v16 }
 0x335   : > { %v2958_v58 = vmax.f32 %v2886_v44, 0.0  ;;  %v2878_v0 = vadd.f32 %v8212_v5, %v2877_v47  ;;  %v6742_v51 = vpack.c.bf16 %v3211_v56, %v3211_v56  ;;  %v3019_v11 = vld [vmem:[#allocation2 + $0xb0] sm:$0xff]  ;;  %3181 = vst.msk [vmem:[#allocation3 + $0x44] sm:$0xf] %vm497_vm3, %v8321_v53 }
 0x336   : > { %v7046_v9 = vpop.f32.mrf.mxu0  ;;  %v8324_v23 = vpack.c.bf16 %v3019_v11, %v3019_v11 }
 0x337   : > { %2990 = vst.msk [vmem:[#allocation2 + $0xf1] sm:$0xff] %vm226_vm0, %v2958_v58  ;;  %v2956_v13 = vmax.f32 %v2878_v0, 0.0  ;;  %v2889_v25 = vadd.f32 %v7046_v9, %v8212_v5  ;;  %3354 = vrot.lane.b32.xlu1 %v6742_v51, %s7162_s25  ;;  %3356 = vrot.lane.b32.xlu0 %v6743_v61, %s7162_s25 }
 0x338   : > { %v2880_v55 = vpop.f32.mrf.mxu0  ;;  %3179 = vst.msk [vmem:[#allocation3 + $0x3c] sm:$0xf] %vm497_vm3, %v8324_v23 }
 0x339   : > { %2988 = vst.msk [vmem:[#allocation2 + $0xd9] sm:$0xff] %vm226_vm0, %v2956_v13  ;;  %v2959_v21 = vmax.f32 %v2889_v25, 0.0  ;;  %v2881_v18 = vadd.f32 %v8212_v5, %v2880_v55 }
 0x33b   : > { %2991 = vst.msk [vmem:[#allocation2 + $0xf9] sm:$0xff] %vm226_vm0, %v2959_v21  ;;  %v2957_v26 = vmax.f32 %v2881_v18, 0.0  ;;  %3358 = vrot.lane.b32.xlu1 %v6744_v4, %s7162_s25 }
 0x33d   : > { %2989 = vst.msk [vmem:[#allocation2 + $0xe1] sm:$0xff] %vm226_vm0, %v2957_v26 }
 0x33e   : > { %v3024_v19 = vld [vmem:[#allocation2 + $0xf0] sm:$0xff] }
 0x33f   : > { %v8339_v14 = vpack.c.bf16 %v3024_v19, %v3024_v19  ;;  %v3216_v48 = vld [vmem:[#allocation2 + $0xf1] sm:$0xff] }
 0x340   : > { %v3214_v52 = vld [vmem:[#allocation2 + $0xd9] sm:$0xff]  ;;  %v6747_v36 = vpack.c.bf16 %v3216_v48, %v3216_v48 }
 0x341   : > { %v3022_v57 = vld [vmem:[#allocation2 + $0xd8] sm:$0xff]  ;;  %v6745_v32 = vpack.c.bf16 %v3214_v52, %v3214_v52  ;;  %3184 = vst.msk [vmem:[#allocation3 + $0x50] sm:$0xf] %vm497_vm3, %v8339_v14 }
 0x342   : > { %v8341_v34 = vpack.c.bf16 %v3022_v57, %v3022_v57  ;;  %v7049_v60 = vpop.f32.mrf.mxu0  ;;  %v3025_v54 = vld [vmem:[#allocation2 + $0xf8] sm:$0xff] }
 0x343   : > { %v2902_v30 = vadd.f32 %v7049_v60, %v8212_v5  ;;  %3360 = vrot.lane.b32.xlu0 %v6745_v32, %s7162_s25  ;;  %v8349_v17 = vpack.c.bf16 %v3025_v54, %v3025_v54  ;;  %v3217_v20 = vld [vmem:[#allocation2 + $0xf9] sm:$0xff] }
 0x344   : > { %3182 = vst.msk [vmem:[#allocation3 + $0x48] sm:$0xf] %vm497_vm3, %v8341_v34  ;;  %v2893_v59 = vpop.f32.mrf.mxu0  ;;  %v3215_v63 = vld [vmem:[#allocation2 + $0xe1] sm:$0xff]  ;;  %v6748_v35 = vpack.c.bf16 %v3217_v20, %v3217_v20 }
 0x345   : > { %v2962_v8 = vmax.f32 %v2902_v30, 0.0  ;;  %v2894_v12 = vadd.f32 %v8212_v5, %v2893_v59  ;;  %v6746_v42 = vpack.c.bf16 %v3215_v63, %v3215_v63  ;;  %v3023_v50 = vld [vmem:[#allocation2 + $0xe0] sm:$0xff]  ;;  %3185 = vst.msk [vmem:[#allocation3 + $0x54] sm:$0xf] %vm497_vm3, %v8349_v17 }
 0x346   : > { %v7050_v31 = vpop.f32.mrf.mxu0  ;;  %v8352_v37 = vpack.c.bf16 %v3023_v50, %v3023_v50 }
 0x347   : > { %2994 = vst.msk [vmem:[#allocation2 + $0x121] sm:$0xff] %vm226_vm0, %v2962_v8  ;;  %v2960_v6 = vmax.f32 %v2894_v12, 0.0  ;;  %v2905_v33 = vadd.f32 %v7050_v31, %v8212_v5  ;;  %3362 = vrot.lane.b32.xlu1 %v6746_v42, %s7162_s25  ;;  %3364 = vrot.lane.b32.xlu0 %v6747_v36, %s7162_s25 }
 0x348   : > { %v2896_v43 = vpop.f32.mrf.mxu0  ;;  %3183 = vst.msk [vmem:[#allocation3 + $0x4c] sm:$0xf] %vm497_vm3, %v8352_v37 }
 0x349   : > { %2992 = vst.msk [vmem:[#allocation2 + $0x109] sm:$0xff] %vm226_vm0, %v2960_v6  ;;  %v2963_v15 = vmax.f32 %v2905_v33, 0.0  ;;  %v2897_v2 = vadd.f32 %v8212_v5, %v2896_v43 }
 0x34b   : > { %2995 = vst.msk [vmem:[#allocation2 + $0x129] sm:$0xff] %vm226_vm0, %v2963_v15  ;;  %v2961_v46 = vmax.f32 %v2897_v2, 0.0  ;;  %3366 = vrot.lane.b32.xlu1 %v6748_v35, %s7162_s25 }
 0x34d   : > { %2993 = vst.msk [vmem:[#allocation2 + $0x111] sm:$0xff] %vm226_vm0, %v2961_v46 }
 0x34e   : > { %v3028_v44 = vld [vmem:[#allocation2 + $0x120] sm:$0xff] }
 0x34f   : > { %v8367_v41 = vpack.c.bf16 %v3028_v44, %v3028_v44  ;;  %v3220_v61 = vld [vmem:[#allocation2 + $0x121] sm:$0xff] }
 0x350   : > { %v3218_v47 = vld [vmem:[#allocation2 + $0x109] sm:$0xff]  ;;  %v6751_v4 = vpack.c.bf16 %v3220_v61, %v3220_v61 }
 0x351   : > { %v3026_v56 = vld [vmem:[#allocation2 + $0x108] sm:$0xff]  ;;  %v6749_v58 = vpack.c.bf16 %v3218_v47, %v3218_v47  ;;  %3188 = vst.msk [vmem:[#allocation3 + $0x60] sm:$0xf] %vm497_vm3, %v8367_v41 }
 0x352   : > { %v8369_v0 = vpack.c.bf16 %v3026_v56, %v3026_v56  ;;  %v7053_v51 = vpop.f32.mrf.mxu0  ;;  %v3029_v9 = vld [vmem:[#allocation2 + $0x128] sm:$0xff] }
 0x353   : > { %v2918_v11 = vadd.f32 %v7053_v51, %v8212_v5  ;;  %3368 = vrot.lane.b32.xlu0 %v6749_v58, %s7162_s25  ;;  %v8377_v25 = vpack.c.bf16 %v3029_v9, %v3029_v9  ;;  %v3221_v52 = vld [vmem:[#allocation2 + $0x129] sm:$0xff] }
 0x354   : > { %3186 = vst.msk [vmem:[#allocation3 + $0x58] sm:$0xf] %vm497_vm3, %v8369_v0  ;;  %v2909_v16 = vpop.f32.mrf.mxu0  ;;  %v3219_v13 = vld [vmem:[#allocation2 + $0x111] sm:$0xff]  ;;  %v6752_v59 = vpack.c.bf16 %v3221_v52, %v3221_v52 }
 0x355   : > { %v2966_v55 = vmax.f32 %v2918_v11, 0.0  ;;  %v2910_v21 = vadd.f32 %v8212_v5, %v2909_v16  ;;  %v6750_v18 = vpack.c.bf16 %v3219_v13, %v3219_v13  ;;  %v3027_v26 = vld [vmem:[#allocation2 + $0x110] sm:$0xff]  ;;  %3189 = vst.msk [vmem:[#allocation3 + $0x64] sm:$0xf] %vm497_vm3, %v8377_v25 }
 0x356   : > { %v7054_v19 = vpop.f32.mrf.mxu0  ;;  %v8380_v57 = vpack.c.bf16 %v3027_v26, %v3027_v26 }
 0x357   : > { %2998 = vst.msk [vmem:[#allocation2 + $0x151] sm:$0xff] %vm226_vm0, %v2966_v55  ;;  %v2964_v32 = vmax.f32 %v2910_v21, 0.0  ;;  %v2921_v60 = vadd.f32 %v7054_v19, %v8212_v5  ;;  %3370 = vrot.lane.b32.xlu1 %v6750_v18, %s7162_s25  ;;  %3372 = vrot.lane.b32.xlu0 %v6751_v4, %s7162_s25  ;;  %v3452_v19 = vld [vmem:[#allocation2 + $0x2] sm:$0xff] }
 0x358   : > { %v2912_v48 = vpop.f32.mrf.mxu0  ;;  %3187 = vst.msk [vmem:[#allocation3 + $0x5c] sm:$0xf] %vm497_vm3, %v8380_v57 }
 0x359   : > { %2996 = vst.msk [vmem:[#allocation2 + $0x139] sm:$0xff] %vm226_vm0, %v2964_v32  ;;  %v2967_v30 = vmax.f32 %v2921_v60, 0.0  ;;  %v2913_v54 = vadd.f32 %v8212_v5, %v2912_v48  ;;  %v6759_v48 = vpack.c.bf16 %v3452_v19, %v3452_v19 }
 0x35b   : > { %2999 = vst.msk [vmem:[#allocation2 + $0x159] sm:$0xff] %vm226_vm0, %v2967_v30  ;;  %v2965_v63 = vmax.f32 %v2913_v54, 0.0  ;;  %3374 = vrot.lane.b32.xlu1 %v6752_v59, %s7162_s25 }
 0x35d   : > { %2997 = vst.msk [vmem:[#allocation2 + $0x141] sm:$0xff] %vm226_vm0, %v2965_v63  ;;  %v3454_v63 = vld [vmem:[#allocation2 + $0x1a] sm:$0xff] }
 0x35e   : > { %v3032_v8 = vld [vmem:[#allocation2 + $0x150] sm:$0xff] }
 0x35f   : > { %v6723_v12 = vpack.c.bf16 %v3032_v8, %v3032_v8  ;;  %v3224_v6 = vld [vmem:[#allocation2 + $0x151] sm:$0xff] }
 0x360   : > { %v3222_v42 = vld [vmem:[#allocation2 + $0x139] sm:$0xff]  ;;  %v6755_v56 = vpack.c.bf16 %v3224_v6, %v3224_v6 }
 0x361   : > { %v3030_v36 = vld [vmem:[#allocation2 + $0x138] sm:$0xff]  ;;  %v6753_v50 = vpack.c.bf16 %v3222_v42, %v3222_v42  ;;  %3192 = vst.msk [vmem:[#allocation3 + $0x70] sm:$0xf] %vm497_vm3, %v6723_v12  ;;  %v8422_v42 = vpack.c.bf16 %v3454_v63, %v3454_v63  ;;  %v3468_v63 = vld [vmem:[#allocation2 + $0xc2] sm:$0xff] }
 0x362   : > { %v8395_v31 = vpack.c.bf16 %v3030_v36, %v3030_v36  ;;  %v7057_v20 = vpop.f32.mrf.mxu0  ;;  %v3033_v43 = vld [vmem:[#allocation2 + $0x158] sm:$0xff]  ;;  %v3455_v36 = vld [vmem:[#allocation2 + $0x22] sm:$0xff] }
 0x363   : > { %v2934_v33 = vadd.f32 %v7057_v20, %v8212_v5  ;;  %3376 = vrot.lane.b32.xlu0 %v6753_v50, %s7162_s25  ;;  %v6724_v35 = vpack.c.bf16 %v3033_v43, %v3033_v43  ;;  %v3225_v61 = vld [vmem:[#allocation2 + $0x159] sm:$0xff]  ;;  %v8427_v20 = vpack.c.bf16 %v3455_v36, %v3455_v36  ;;  %v3458_v43 = vld [vmem:[#allocation2 + $0x4a] sm:$0xff]  ;;  %v6775_v36 = vpack.c.bf16 %v3468_v63, %v3468_v63 }
 0x364   : > { %3190 = vst.msk [vmem:[#allocation3 + $0x68] sm:$0xf] %vm497_vm3, %v8395_v31  ;;  %v2925_v15 = vpop.f32.mrf.mxu0  ;;  %v3223_v2 = vld [vmem:[#allocation2 + $0x141] sm:$0xff]  ;;  %v6756_v18 = vpack.c.bf16 %v3225_v61, %v3225_v61  ;;  %v3456_v50 = vld [vmem:[#allocation2 + $0x32] sm:$0xff]  ;;  %v3461_v61 = vld [vmem:[#allocation2 + $0x6a] sm:$0xff] }
 0x365   : > { %v2970_v46 = vmax.f32 %v2934_v33, 0.0  ;;  %v2926_v44 = vadd.f32 %v8212_v5, %v2925_v15  ;;  %v6754_v47 = vpack.c.bf16 %v3223_v2, %v3223_v2  ;;  %v3031_v58 = vld [vmem:[#allocation2 + $0x140] sm:$0xff]  ;;  %3193 = vst.msk [vmem:[#allocation3 + $0x74] sm:$0xf] %vm497_vm3, %v6724_v35  ;;  %v8429_v6 = vpack.c.bf16 %v3456_v50, %v3456_v50  ;;  %v3469_v50 = vld [vmem:[#allocation2 + $0xca] sm:$0xff] }
 0x366   : > { %v7058_v51 = vpop.f32.mrf.mxu0  ;;  %v8403_v11 = vpack.c.bf16 %v3031_v58, %v3031_v58  ;;  %v3457_v33 = vld [vmem:[#allocation2 + $0x3a] sm:$0xff]  ;;  %v8437_v35 = vpack.c.bf16 %v3458_v43, %v3458_v43 }
 0x367   : > { %3002 = vst.msk [vmem:[#allocation2 + $0x181] sm:$0xff] %vm226_vm0, %v2970_v46  ;;  %v2968_v9 = vmax.f32 %v2926_v44, 0.0  ;;  %v2937_v16 = vadd.f32 %v7058_v51, %v8212_v5  ;;  %3378 = vrot.lane.b32.xlu1 %v6754_v47, %s7162_s25  ;;  %3380 = vrot.lane.b32.xlu0 %v6755_v56, %s7162_s25  ;;  %v8435_v2 = vpack.c.bf16 %v3457_v33, %v3457_v33  ;;  %v3459_v46 = vld [vmem:[#allocation2 + $0x52] sm:$0xff]  ;;  %v3460_v44 = vld [vmem:[#allocation2 + $0x62] sm:$0xff]  ;;  %v3470_v33 = vld [vmem:[#allocation2 + $0xda] sm:$0xff] }
 0x368   : > { %v2928_v13 = vpop.f32.mrf.mxu0  ;;  %3191 = vst.msk [vmem:[#allocation3 + $0x6c] sm:$0xf] %vm497_vm3, %v8403_v11  ;;  %v8444_v58 = vpack.c.bf16 %v3459_v46, %v3459_v46  ;;  %v8446_v51 = vpack.c.bf16 %v3460_v44, %v3460_v44  ;;  %v6776_v46 = vpack.c.bf16 %v3469_v50, %v3469_v50  ;;  %v6777_v44 = vpack.c.bf16 %v3470_v33, %v3470_v33  ;;  %v3478_v63 = vld [vmem:[#allocation2 + $0x13a] sm:$0xff]  ;;  %v3479_v33 = vld [vmem:[#allocation2 + $0x142] sm:$0xff] }
 0x369   : > { %3000 = vst.msk [vmem:[#allocation2 + $0x169] sm:$0xff] %vm226_vm0, %v2968_v9  ;;  %v2971_v55 = vmax.f32 %v2937_v16, 0.0  ;;  %v2929_v21 = vadd.f32 %v8212_v5, %v2928_v13  ;;  %v3453_v5 = vld [vmem:[#allocation2 + $0xa] sm:$0xff]  ;;  %v3462_v9 = vld [vmem:[#allocation2 + $0x7a] sm:$0xff]  ;;  %v6785_v50 = vpack.c.bf16 %v3478_v63, %v3478_v63 }
 0x36a   : > { %v6760_v12 = vpack.c.bf16 %v3453_v5, %v3453_v5  ;;  %v3964_v63 = vld [vmem:[#allocation2 + $0x19] sm:$0xff] }
 0x36b   : > { %3003 = vst.msk [vmem:[#allocation2 + $0x189] sm:$0xff] %vm226_vm0, %v2971_v55  ;;  %v2969_v4 = vmax.f32 %v2929_v21, 0.0  ;;  %3382 = vrot.lane.b32.xlu1 %v6756_v18, %s7162_s25  ;;  %v8454_v55 = vpack.c.bf16 %v3461_v61, %v3461_v61  ;;  %v8456_v21 = vpack.c.bf16 %v3462_v9, %v3462_v9  ;;  %v3463_v18 = vld [vmem:[#allocation2 + $0x82] sm:$0xff] }
 0x36d   : > { %3001 = vst.msk [vmem:[#allocation2 + $0x171] sm:$0xff] %vm226_vm0, %v2969_v4  ;;  %v3464_v4 = vld [vmem:[#allocation2 + $0x92] sm:$0xff] }
 0x370   : > { %v3226_v26 = vld [vmem:[#allocation2 + $0x169] sm:$0xff] }
 0x371   : > { %v3034_v52 = vld [vmem:[#allocation2 + $0x168] sm:$0xff]  ;;  %v6757_v32 = vpack.c.bf16 %v3226_v26, %v3226_v26 }
 0x372   : > { %v6725_v60 = vpack.c.bf16 %v3034_v52, %v3034_v52  ;;  %v8464_v52 = vpack.c.bf16 %v3463_v18, %v3463_v18  ;;  %v3474_v18 = vld [vmem:[#allocation2 + $0x10a] sm:$0xff] }
 0x373   : > { %3384 = vrot.lane.b32.xlu0 %v6757_v32, %s7162_s25  ;;  %v8466_v32 = vpack.c.bf16 %v3464_v4, %v3464_v4 }
 0x374   : > { %3194 = vst.msk [vmem:[#allocation3 + $0x78] sm:$0xf] %vm497_vm3, %v6725_v60  ;;  %v3227_v30 = vld [vmem:[#allocation2 + $0x171] sm:$0xff]  ;;  %v3465_v60 = vld [vmem:[#allocation2 + $0x9a] sm:$0xff] }
 0x375   : > { %v6758_v54 = vpack.c.bf16 %v3227_v30, %v3227_v30  ;;  %v3035_v59 = vld [vmem:[#allocation2 + $0x170] sm:$0xff]  ;;  %v8474_v5 = vpack.c.bf16 %v3465_v60, %v3465_v60  ;;  %v3476_v60 = vld [vmem:[#allocation2 + $0x122] sm:$0xff] }
 0x376   : > { %v6726_v8 = vpack.c.bf16 %v3035_v59, %v3035_v59  ;;  %v3467_v59 = vld [vmem:[#allocation2 + $0xb2] sm:$0xff] }
 0x377   : > { %3386 = vrot.lane.b32.xlu1 %v6758_v54, %s7162_s25  ;;  %3580 = vrot.lane.b32.xlu0 %v6759_v48, %s7163_s26  ;;  %v3466_v48 = vld [vmem:[#allocation2 + $0xaa] sm:$0xff] }
 0x378   : > { %3195 = vst.msk [vmem:[#allocation3 + $0x7c] sm:$0xf] %vm497_vm3, %v6726_v8  ;;  %v6773_v54 = vpack.c.bf16 %v3466_v48, %v3466_v48 }
 0x37b   : > { %3582 = vrot.lane.b32.xlu1 %v6760_v12, %s7163_s26  ;;  %3584 = vrot.lane.b32.xlu0 %v8422_v42, %s7163_s26  ;;  %v6774_v12 = vpack.c.bf16 %v3467_v59, %v3467_v59  ;;  %v3477_v59 = vld [vmem:[#allocation2 + $0x12a] sm:$0xff] }
 0x37f   : > { %3586 = vrot.lane.b32.xlu1 %v8427_v20, %s7163_s26  ;;  %3588 = vrot.lane.b32.xlu0 %v8429_v6, %s7163_s26 }
 0x381   : > { %v3329_v15 = vpop.permute.xlu0 %3328 }
 0x382   : > { %3422 = vst.msk [vmem:[#allocation3 + $0x8] sm:$0xf] %vm754_vm4, %v3329_v15 }
 0x383   : > { %3590 = vrot.lane.b32.xlu1 %v8435_v2, %s7163_s26  ;;  %3592 = vrot.lane.b32.xlu0 %v8437_v35, %s7163_s26 }
 0x385   : > { %v3331_v47 = vpop.permute.xlu1 %3330  ;;  %v3333_v56 = vpop.permute.xlu0 %3332 }
 0x386   : > { %3423 = vst.msk [vmem:[#allocation3 + $0xc] sm:$0xf] %vm754_vm4, %v3331_v47  ;;  %3424 = vst.msk [vmem:[#allocation3 + $0x10] sm:$0xf] %vm754_vm4, %v3333_v56  ;;  %v3471_v47 = vld [vmem:[#allocation2 + $0xe2] sm:$0xff]  ;;  %v3472_v56 = vld [vmem:[#allocation2 + $0xf2] sm:$0xff] }
 0x387   : > { %3594 = vrot.lane.b32.xlu1 %v8444_v58, %s7163_s26  ;;  %3596 = vrot.lane.b32.xlu0 %v8446_v51, %s7163_s26  ;;  %v6778_v9 = vpack.c.bf16 %v3471_v47, %v3471_v47  ;;  %v3481_v47 = vld [vmem:[#allocation2 + $0x15a] sm:$0xff] }
 0x389   : > { %v3335_v16 = vpop.permute.xlu1 %3334  ;;  %v3337_v13 = vpop.permute.xlu0 %3336 }
 0x38a   : > { %3425 = vst.msk [vmem:[#allocation3 + $0x14] sm:$0xf] %vm754_vm4, %v3335_v16  ;;  %3426 = vst.msk [vmem:[#allocation3 + $0x18] sm:$0xf] %vm754_vm4, %v3337_v13  ;;  %v6779_v16 = vpack.c.bf16 %v3472_v56, %v3472_v56  ;;  %v3473_v13 = vld [vmem:[#allocation2 + $0xfa] sm:$0xff]  ;;  %v3482_v56 = vld [vmem:[#allocation2 + $0x16a] sm:$0xff] }
 0x38b   : > { %3598 = vrot.lane.b32.xlu1 %v8454_v55, %s7163_s26  ;;  %3600 = vrot.lane.b32.xlu0 %v8456_v21, %s7163_s26  ;;  %v6780_v4 = vpack.c.bf16 %v3473_v13, %v3473_v13 }
 0x38d   : > { %v3339_v26 = vpop.permute.xlu1 %3338  ;;  %v3341_v19 = vpop.permute.xlu0 %3340 }
 0x38e   : > { %3427 = vst.msk [vmem:[#allocation3 + $0x1c] sm:$0xf] %vm754_vm4, %v3339_v26  ;;  %3428 = vst.msk [vmem:[#allocation3 + $0x20] sm:$0xf] %vm754_vm4, %v3341_v19  ;;  %v6781_v26 = vpack.c.bf16 %v3474_v18, %v3474_v18  ;;  %v3475_v19 = vld [vmem:[#allocation2 + $0x112] sm:$0xff] }
 0x38f   : > { %3602 = vrot.lane.b32.xlu1 %v8464_v52, %s7163_s26  ;;  %3604 = vrot.lane.b32.xlu0 %v8466_v32, %s7163_s26 }
 0x391   : > { %v3343_v30 = vpop.permute.xlu1 %3342 }
 0x392   : > { %3429 = vst.msk [vmem:[#allocation3 + $0x24] sm:$0xf] %vm754_vm4, %v3343_v30  ;;  %v6782_v30 = vpack.c.bf16 %v3475_v19, %v3475_v19 }
 0x393   : > { %3606 = vrot.lane.b32.xlu1 %v8474_v5, %s7163_s26  ;;  %3608 = vrot.lane.b32.xlu0 %v6773_v54, %s7163_s26  ;;  %v6783_v54 = vpack.c.bf16 %v3476_v60, %v3476_v60 }
 0x395   : > { %v3345_v8 = vpop.permute.xlu0 %3344 }
 0x396   : > { %3430 = vst.msk [vmem:[#allocation3 + $0x28] sm:$0xf] %vm754_vm4, %v3345_v8 }
 0x397   : > { %3610 = vrot.lane.b32.xlu1 %v6774_v12, %s7163_s26  ;;  %3612 = vrot.lane.b32.xlu0 %v6775_v36, %s7163_s26  ;;  %v6784_v36 = vpack.c.bf16 %v3477_v59, %v3477_v59 }
 0x399   : > { %v3347_v43 = vpop.permute.xlu1 %3346  ;;  %v3349_v15 = vpop.permute.xlu0 %3348 }
 0x39a   : > { %3431 = vst.msk [vmem:[#allocation3 + $0x2c] sm:$0xf] %vm754_vm4, %v3347_v43  ;;  %3432 = vst.msk [vmem:[#allocation3 + $0x30] sm:$0xf] %vm754_vm4, %v3349_v15  ;;  %v3480_v43 = vld [vmem:[#allocation2 + $0x152] sm:$0xff] }
 0x39b   : > { %3614 = vrot.lane.b32.xlu1 %v6776_v46, %s7163_s26  ;;  %3616 = vrot.lane.b32.xlu0 %v6777_v44, %s7163_s26  ;;  %v6786_v46 = vpack.c.bf16 %v3479_v33, %v3479_v33  ;;  %v6787_v44 = vpack.c.bf16 %v3480_v43, %v3480_v43 }
 0x39d   : > { %v3351_v61 = vpop.permute.xlu1 %3350 }
 0x39e   : > { %3433 = vst.msk [vmem:[#allocation3 + $0x34] sm:$0xf] %vm754_vm4, %v3351_v61  ;;  %v6788_v61 = vpack.c.bf16 %v3481_v47, %v3481_v47 }
 0x39f   : > { %3618 = vrot.lane.b32.xlu1 %v6778_v9, %s7163_s26  ;;  %3620 = vrot.lane.b32.xlu0 %v6779_v16, %s7163_s26  ;;  %v6789_v9 = vpack.c.bf16 %v3482_v56, %v3482_v56  ;;  %v3483_v16 = vld [vmem:[#allocation2 + $0x172] sm:$0xff] }
 0x3a0   : > { %v6790_v18 = vpack.c.bf16 %v3483_v16, %v3483_v16  ;;  %v4735_v16 = vld [vmem:[#allocation2 + $0x51] sm:$0xff] }
 0x3a3   : > { %3622 = vrot.lane.b32.xlu1 %v6780_v4, %s7163_s26  ;;  %3624 = vrot.lane.b32.xlu0 %v6781_v26, %s7163_s26 }
 0x3a5   : > { %v3353_v48 = vpop.permute.xlu0 %3352 }
 0x3a6   : > { %3434 = vst.msk [vmem:[#allocation3 + $0x38] sm:$0xf] %vm754_vm4, %v3353_v48 }
 0x3a7   : > { %3626 = vrot.lane.b32.xlu1 %v6782_v30, %s7163_s26  ;;  %3628 = vrot.lane.b32.xlu0 %v6783_v54, %s7163_s26 }
 0x3a9   : > { %v3355_v8 = vpop.permute.xlu1 %3354  ;;  %v3357_v12 = vpop.permute.xlu0 %3356 }
 0x3aa   : > { %3435 = vst.msk [vmem:[#allocation3 + $0x3c] sm:$0xf] %vm754_vm4, %v3355_v8  ;;  %3436 = vst.msk [vmem:[#allocation3 + $0x40] sm:$0xf] %vm754_vm4, %v3357_v12  ;;  %v6823_v8 = vpack.c.bf16 %v3964_v63, %v3964_v63 }
 0x3ab   : > { %3630 = vrot.lane.b32.xlu1 %v6784_v36, %s7163_s26  ;;  %3632 = vrot.lane.b32.xlu0 %v6785_v50, %s7163_s26 }
 0x3ad   : > { %v3359_v15 = vpop.permute.xlu1 %3358 }
 0x3ae   : > { %3437 = vst.msk [vmem:[#allocation3 + $0x44] sm:$0xf] %vm754_vm4, %v3359_v15 }
 0x3af   : > { %3634 = vrot.lane.b32.xlu1 %v6786_v46, %s7163_s26  ;;  %3636 = vrot.lane.b32.xlu0 %v6787_v44, %s7163_s26  ;;  %v4733_v44 = vld [vmem:[#allocation2 + $0x39] sm:$0xff] }
 0x3b3   : > { %3638 = vrot.lane.b32.xlu1 %v6788_v61, %s7163_s26  ;;  %3640 = vrot.lane.b32.xlu0 %v6789_v9, %s7163_s26 }
 0x3b5   : > { %v3361_v13 = vpop.permute.xlu0 %3360 }
 0x3b6   : > { %3438 = vst.msk [vmem:[#allocation3 + $0x48] sm:$0xf] %vm754_vm4, %v3361_v13 }
 0x3b7   : > { %3642 = vrot.lane.b32.xlu1 %v6790_v18, %s7163_s26  ;;  %3836 = vrot.lane.b32.xlu0 %v8232_v29, %s7164_s27 }
 0x3b9   : > { %v3363_v4 = vpop.permute.xlu1 %3362  ;;  %v3365_v26 = vpop.permute.xlu0 %3364 }
 0x3ba   : > { %3439 = vst.msk [vmem:[#allocation3 + $0x4c] sm:$0xf] %vm754_vm4, %v3363_v4  ;;  %3440 = vst.msk [vmem:[#allocation3 + $0x50] sm:$0xf] %vm754_vm4, %v3365_v26  ;;  %v6922_v4 = vpack.c.bf16 %v4735_v16, %v4735_v16  ;;  %v7136_v26 = vld [vmem:[%s9169_s3] sm:$0xff]  }
 0x3bb   : > { %3838 = vrot.lane.b32.xlu1 %v8243_v10, %s7164_s27  ;;  %3840 = vrot.lane.b32.xlu0 %v8228_v3, %s7164_s27 }
 0x3bd   : > { %v3367_v19 = vpop.permute.xlu1 %3366 }
 0x3be   : > { %3441 = vst.msk [vmem:[#allocation3 + $0x54] sm:$0xf] %vm754_vm4, %v3367_v19 }
 0x3bf   : > { %3842 = vrot.lane.b32.xlu1 %v8240_v62, %s7164_s27  ;;  %3844 = vrot.lane.b32.xlu0 %v8257_v1, %s7164_s27 }
 0x3c3   : > { %3846 = vrot.lane.b32.xlu1 %v8272_v39, %s7164_s27  ;;  %3848 = vrot.lane.b32.xlu0 %v8250_v38, %s7164_s27 }
 0x3c5   : > { %v3369_v29 = vpop.permute.xlu0 %3368 }
 0x3c6   : > { %3442 = vst.msk [vmem:[#allocation3 + $0x58] sm:$0xf] %vm754_vm4, %v3369_v29 }
 0x3c7   : > { %3850 = vrot.lane.b32.xlu1 %v8268_v7, %s7164_s27  ;;  %3852 = vrot.lane.b32.xlu0 %v8285_v27, %s7164_s27 }
 0x3c9   : > { %v3371_v10 = vpop.permute.xlu1 %3370  ;;  %v3373_v60 = vpop.permute.xlu0 %3372 }
 0x3ca   : > { %3443 = vst.msk [vmem:[#allocation3 + $0x5c] sm:$0xf] %vm754_vm4, %v3371_v10  ;;  %3444 = vst.msk [vmem:[#allocation3 + $0x60] sm:$0xf] %vm754_vm4, %v3373_v60  ;;  %v3970_v60 = vld [vmem:[#allocation2 + $0x61] sm:$0xff] }
 0x3cb   : > { %3854 = vrot.lane.b32.xlu1 %v8296_v22, %s7164_s27  ;;  %3856 = vrot.lane.b32.xlu0 %v8283_v40, %s7164_s27 }
 0x3cd   : > { %v3375_v48 = vpop.permute.xlu1 %3374 }
 0x3ce   : > { %3445 = vst.msk [vmem:[#allocation3 + $0x64] sm:$0xf] %vm754_vm4, %v3375_v48 }
 0x3cf   : > { %3858 = vrot.lane.b32.xlu1 %v8293_v45, %s7164_s27  ;;  %3860 = vrot.lane.b32.xlu0 %v8313_v49, %s7164_s27 }
 0x3d3   : > { %3862 = vrot.lane.b32.xlu1 %v8324_v23, %s7164_s27  ;;  %3864 = vrot.lane.b32.xlu0 %v8311_v24, %s7164_s27 }
 0x3d5   : > { %v3377_v30 = vpop.permute.xlu0 %3376 }
 0x3d6   : > { %3446 = vst.msk [vmem:[#allocation3 + $0x68] sm:$0xf] %vm754_vm4, %v3377_v30 }
 0x3d7   : > { %3866 = vrot.lane.b32.xlu1 %v8321_v53, %s7164_s27  ;;  %3868 = vrot.lane.b32.xlu0 %v8341_v34, %s7164_s27 }
 0x3d9   : > { %v3379_v54 = vpop.permute.xlu1 %3378  ;;  %v3381_v59 = vpop.permute.xlu0 %3380 }
 0x3da   : > { %3447 = vst.msk [vmem:[#allocation3 + $0x6c] sm:$0xf] %vm754_vm4, %v3379_v54  ;;  %3448 = vst.msk [vmem:[#allocation3 + $0x70] sm:$0xf] %vm754_vm4, %v3381_v59  ;;  %v6829_v54 = vpack.c.bf16 %v3970_v60, %v3970_v60 }
 0x3db   : > { %3870 = vrot.lane.b32.xlu1 %v8352_v37, %s7164_s27  ;;  %3872 = vrot.lane.b32.xlu0 %v8339_v14, %s7164_s27 }
 0x3dd   : > { %v3383_v24 = vpop.permute.xlu1 %3382 }
 0x3de   : > { %3449 = vst.msk [vmem:[#allocation3 + $0x74] sm:$0xf] %vm754_vm4, %v3383_v24 }
 0x3df   : > { %3874 = vrot.lane.b32.xlu1 %v8349_v17, %s7164_s27  ;;  %3876 = vrot.lane.b32.xlu0 %v8369_v0, %s7164_s27  ;;  %v3965_v0 = vld [vmem:[#allocation2 + $0x21] sm:$0xff] }
 0x3e3   : > { %3878 = vrot.lane.b32.xlu1 %v8380_v57, %s7164_s27  ;;  %3880 = vrot.lane.b32.xlu0 %v8367_v41, %s7164_s27  ;;  %v3966_v57 = vld [vmem:[#allocation2 + $0x31] sm:$0xff] }
 0x3e4   : > { %v6825_v36 = vpack.c.bf16 %v3966_v57, %v3966_v57 }
 0x3e5   : > { %v3385_v53 = vpop.permute.xlu0 %3384 }
 0x3e6   : > { %3450 = vst.msk [vmem:[#allocation3 + $0x78] sm:$0xf] %vm754_vm4, %v3385_v53 }
 0x3e7   : > { %3882 = vrot.lane.b32.xlu1 %v8377_v25, %s7164_s27  ;;  %3884 = vrot.lane.b32.xlu0 %v8395_v31, %s7164_s27  ;;  %v6824_v25 = vpack.c.bf16 %v3965_v0, %v3965_v0 }
 0x3e9   : > { %v3387_v14 = vpop.permute.xlu1 %3386  ;;  %v3581_v17 = vpop.permute.xlu0 %3580 }
 0x3ea   : > { %3451 = vst.msk [vmem:[#allocation3 + $0x7c] sm:$0xf] %vm754_vm4, %v3387_v14 }
 0x3eb   : > { %3676 = vst.msk [vmem:[#allocation3] sm:$0xf] %vm1011_vm5, %v3581_v17  ;;  %3886 = vrot.lane.b32.xlu1 %v8403_v11, %s7164_s27  ;;  %4092 = vrot.lane.b32.xlu0 %v6823_v8, %s7165_s28 }
 0x3ed   : > { %v3583_v41 = vpop.permute.xlu1 %3582  ;;  %v3585_v12 = vpop.permute.xlu0 %3584 }
 0x3ee   : > { %3677 = vst.msk [vmem:[#allocation3 + $0x4] sm:$0xf] %vm1011_vm5, %v3583_v41  ;;  %3678 = vst.msk [vmem:[#allocation3 + $0x8] sm:$0xf] %vm1011_vm5, %v3585_v12  ;;  %v4738_v41 = vld [vmem:[#allocation2 + $0x79] sm:$0xff] }
 0x3ef   : > { %4094 = vrot.lane.b32.xlu1 %v6824_v25, %s7165_s28  ;;  %4096 = vrot.lane.b32.xlu0 %v6825_v36, %s7165_s28  ;;  %v6925_v25 = vpack.c.bf16 %v4738_v41, %v4738_v41 }
 0x3f1   : > { %v3587_v31 = vpop.permute.xlu1 %3586  ;;  %v3589_v50 = vpop.permute.xlu0 %3588 }
 0x3f2   : > { %3679 = vst.msk [vmem:[#allocation3 + $0xc] sm:$0xf] %vm1011_vm5, %v3587_v31  ;;  %3680 = vst.msk [vmem:[#allocation3 + $0x10] sm:$0xf] %vm1011_vm5, %v3589_v50 }
 0x3f3   : > { %4098 = vrot.lane.b32.xlu1 %v8252_v28, %s7165_s28  ;;  %4348 = vrot.lane.b32.xlu0 %v8422_v42, %s7166_s29 }
 0x3f5   : > { %v3591_v11 = vpop.permute.xlu1 %3590  ;;  %v3593_v33 = vpop.permute.xlu0 %3592 }
 0x3f6   : > { %3681 = vst.msk [vmem:[#allocation3 + $0x14] sm:$0xf] %vm1011_vm5, %v3591_v11  ;;  %3682 = vst.msk [vmem:[#allocation3 + $0x18] sm:$0xf] %vm1011_vm5, %v3593_v33 }
 0x3f7   : > { %4350 = vrot.lane.b32.xlu1 %v8427_v20, %s7166_s29  ;;  %4352 = vrot.lane.b32.xlu0 %v8429_v6, %s7166_s29 }
 0x3f9   : > { %v3595_v43 = vpop.permute.xlu1 %3594  ;;  %v3597_v15 = vpop.permute.xlu0 %3596 }
 0x3fa   : > { %3683 = vst.msk [vmem:[#allocation3 + $0x1c] sm:$0xf] %vm1011_vm5, %v3595_v43  ;;  %3684 = vst.msk [vmem:[#allocation3 + $0x20] sm:$0xf] %vm1011_vm5, %v3597_v15  ;;  %v3974_v43 = vld [vmem:[#allocation2 + $0x91] sm:$0xff] }
 0x3fb   : > { %4354 = vrot.lane.b32.xlu1 %v8435_v2, %s7166_s29  ;;  %4604 = vrot.lane.b32.xlu0 %v8228_v3, %s7167_s30  ;;  %v4734_v3 = vld [vmem:[#allocation2 + $0x49] sm:$0xff] }
 0x3fc   : > { %v6921_v61 = vpack.c.bf16 %v4734_v3, %v4734_v3 }
 0x3fd   : > { %v3599_v28 = vpop.permute.xlu1 %3598  ;;  %v3601_v42 = vpop.permute.xlu0 %3600 }
 0x3fe   : > { %3685 = vst.msk [vmem:[#allocation3 + $0x24] sm:$0xf] %vm1011_vm5, %v3599_v28  ;;  %3686 = vst.msk [vmem:[#allocation3 + $0x28] sm:$0xf] %vm1011_vm5, %v3601_v42  ;;  %v6833_v28 = vpack.c.bf16 %v3974_v43, %v3974_v43 }
 0x3ff   : > { %4606 = vrot.lane.b32.xlu1 %v8240_v62, %s7167_s30  ;;  %4608 = vrot.lane.b32.xlu0 %v8257_v1, %s7167_s30  ;;  %v7134_v62 = vld [vmem:[%s9169_s3 + $0x10] ss:$0 sps:$4 sm:$0x33]   ;;  %v6920_v1 = vpack.c.bf16 %v4733_v44, %v4733_v44 }
 0x400   : > { %7098 = vmatprep.subr.msk.bf16.mxu1 %vm2775_vm9, %v7134_v62  ;;  %v5432_v9 = vsel %vm2775_vm9, %v7134_v62, 0 }
 0x401   : > { %v3603_v20 = vpop.permute.xlu1 %3602  ;;  %v3605_v46 = vpop.permute.xlu0 %3604  ;;  %7060 = vmatpush3.bf16.msra.mxu1 %v5432_v9 }
 0x402   : > { %3687 = vst.msk [vmem:[#allocation3 + $0x2c] sm:$0xf] %vm1011_vm5, %v3603_v20  ;;  %3688 = vst.msk [vmem:[#allocation3 + $0x30] sm:$0xf] %vm1011_vm5, %v3605_v46 }
 0x403   : > { %4610 = vrot.lane.b32.xlu1 %v8272_v39, %s7167_s30  ;;  %4860 = vrot.lane.b32.xlu0 %v6825_v36, %s7168_s6  ;;  %v7135_v39 = vld [vmem:[%s9169_s3 + $0x8] sm:$0xff]  }
 0x404   : > { %7061 = vmatprep.subr.bf16.mxu1 %v7135_v39 }
 0x405   : > { %v3607_v47 = vpop.permute.xlu1 %3606  ;;  %v3609_v56 = vpop.permute.xlu0 %3608  ;;  %7062 = vmatpush3.bf16.msra.mxu1 %v7135_v39 }
 0x406   : > { %3689 = vst.msk [vmem:[#allocation3 + $0x34] sm:$0xf] %vm1011_vm5, %v3607_v47  ;;  %3690 = vst.msk [vmem:[#allocation3 + $0x38] sm:$0xf] %vm1011_vm5, %v3609_v56  ;;  %7063 = vmatprep.subr.bf16.mxu1 %v7136_v26 }
 0x407   : > { %4862 = vrot.lane.b32.xlu1 %v6920_v1, %s7168_s6  ;;  %4864 = vrot.lane.b32.xlu0 %v6921_v61, %s7168_s6 }
 0x409   : > { %v3611_v13 = vpop.permute.xlu1 %3610  ;;  %v3613_v18 = vpop.permute.xlu0 %3612  ;;  %7064 = vmatpush3.bf16.msra.mxu1 %v7136_v26 }
 0x40a   : > { %3691 = vst.msk [vmem:[#allocation3 + $0x3c] sm:$0xf] %vm1011_vm5, %v3611_v13  ;;  %3692 = vst.msk [vmem:[#allocation3 + $0x40] sm:$0xf] %vm1011_vm5, %v3613_v18  ;;  %v4998_v18 = vld [vmem:[#allocation2 + $0xaa] sm:$0xff] }
 0x40b   : > { %4866 = vrot.lane.b32.xlu1 %v6922_v4, %s7168_s6  ;;  %5116 = vrot.lane.b32.xlu0 %v8429_v6, %s7169_s13 }
 0x40d   : > { %v3615_v19 = vpop.permute.xlu1 %3614  ;;  %v3617_v29 = vpop.permute.xlu0 %3616 }
 0x40e   : > { %3693 = vst.msk [vmem:[#allocation3 + $0x44] sm:$0xf] %vm1011_vm5, %v3615_v19  ;;  %3694 = vst.msk [vmem:[#allocation3 + $0x48] sm:$0xf] %vm1011_vm5, %v3617_v29  ;;  %v6961_v29 = vpack.c.bf16 %v4998_v18, %v4998_v18  ;;  %v4492_v18 = vld [vmem:[#allocation2 + $0xf0] sm:$0xff] }
 0x40f   : > { %5118 = vrot.lane.b32.xlu1 %v8435_v2, %s7169_s13  ;;  %5120 = vrot.lane.b32.xlu0 %v8437_v35, %s7169_s13  ;;  %v3971_v2 = vld [vmem:[#allocation2 + $0x69] sm:$0xff] }
 0x410   : > { %v6830_v53 = vpack.c.bf16 %v3971_v2, %v3971_v2 }
 0x411   : > { %v3619_v10 = vpop.permute.xlu1 %3618  ;;  %v3621_v6 = vpop.permute.xlu0 %3620 }
 0x412   : > { %3695 = vst.msk [vmem:[#allocation3 + $0x4c] sm:$0xf] %vm1011_vm5, %v3619_v10  ;;  %3696 = vst.msk [vmem:[#allocation3 + $0x50] sm:$0xf] %vm1011_vm5, %v3621_v6  ;;  %v4999_v10 = vld [vmem:[#allocation2 + $0xb2] sm:$0xff] }
 0x413   : > { %5122 = vrot.lane.b32.xlu1 %v8444_v58, %s7169_s13  ;;  %4100 = vrot.lane.b32.xlu0 %v6921_v61, %s7165_s28 }
 0x415   : > { %v3623_v48 = vpop.permute.xlu1 %3622  ;;  %v3625_v30 = vpop.permute.xlu0 %3624 }
 0x416   : > { %3697 = vst.msk [vmem:[#allocation3 + $0x54] sm:$0xf] %vm1011_vm5, %v3623_v48  ;;  %3698 = vst.msk [vmem:[#allocation3 + $0x58] sm:$0xf] %vm1011_vm5, %v3625_v30  ;;  %v6962_v48 = vpack.c.bf16 %v4999_v10, %v4999_v10  ;;  %v3978_v30 = vld [vmem:[#allocation2 + $0xc1] sm:$0xff]  ;;  %v4493_v10 = vld [vmem:[#allocation2 + $0xf8] sm:$0xff] }
 0x417   : > { %4102 = vrot.lane.b32.xlu1 %v6922_v4, %s7165_s28  ;;  %4104 = vrot.lane.b32.xlu0 %v6829_v54, %s7165_s28 }
 0x419   : > { %v3627_v59 = vpop.permute.xlu1 %3626  ;;  %v3629_v24 = vpop.permute.xlu0 %3628 }
 0x41a   : > { %3699 = vst.msk [vmem:[#allocation3 + $0x5c] sm:$0xf] %vm1011_vm5, %v3627_v59  ;;  %3700 = vst.msk [vmem:[#allocation3 + $0x60] sm:$0xf] %vm1011_vm5, %v3629_v24  ;;  %v6837_v59 = vpack.c.bf16 %v3978_v30, %v3978_v30  ;;  %v3979_v24 = vld [vmem:[#allocation2 + $0xc9] sm:$0xff]  ;;  %v6904_v30 = vpack.c.bf16 %v4493_v10, %v4493_v10  ;;  %v5010_v10 = vld [vmem:[#allocation2 + $0x13a] sm:$0xff] }
 0x41b   : > { %4106 = vrot.lane.b32.xlu1 %v6830_v53, %s7165_s28  ;;  %4356 = vrot.lane.b32.xlu0 %v8437_v35, %s7166_s29 }
 0x41d   : > { %v3631_v63 = vpop.permute.xlu1 %3630  ;;  %v3633_v14 = vpop.permute.xlu0 %3632 }
 0x41e   : > { %3701 = vst.msk [vmem:[#allocation3 + $0x64] sm:$0xf] %vm1011_vm5, %v3631_v63  ;;  %3702 = vst.msk [vmem:[#allocation3 + $0x68] sm:$0xf] %vm1011_vm5, %v3633_v14  ;;  %v6838_v14 = vpack.c.bf16 %v3979_v24, %v3979_v24 }
 0x41f   : > { %4358 = vrot.lane.b32.xlu1 %v8444_v58, %s7166_s29  ;;  %4360 = vrot.lane.b32.xlu0 %v8446_v51, %s7166_s29 }
 0x421   : > { %v3635_v17 = vpop.permute.xlu1 %3634  ;;  %v3637_v8 = vpop.permute.xlu0 %3636 }
 0x422   : > { %3703 = vst.msk [vmem:[#allocation3 + $0x6c] sm:$0xf] %vm1011_vm5, %v3635_v17  ;;  %3704 = vst.msk [vmem:[#allocation3 + $0x70] sm:$0xf] %vm1011_vm5, %v3637_v8  ;;  %v4234_v17 = vld [vmem:[#allocation2 + $0xc2] sm:$0xff] }
 0x423   : > { %4362 = vrot.lane.b32.xlu1 %v8454_v55, %s7166_s29  ;;  %4612 = vrot.lane.b32.xlu0 %v8250_v38, %s7167_s30 }
 0x425   : > { %v3639_v35 = vpop.permute.xlu1 %3638  ;;  %v3641_v0 = vpop.permute.xlu0 %3640 }
 0x426   : > { %3705 = vst.msk [vmem:[#allocation3 + $0x74] sm:$0xf] %vm1011_vm5, %v3639_v35  ;;  %3706 = vst.msk [vmem:[#allocation3 + $0x78] sm:$0xf] %vm1011_vm5, %v3641_v0  ;;  %v6869_v0 = vpack.c.bf16 %v4234_v17, %v4234_v17 }
 0x427   : > { %4614 = vrot.lane.b32.xlu1 %v8268_v7, %s7167_s30  ;;  %4616 = vrot.lane.b32.xlu0 %v8285_v27, %s7167_s30  ;;  %v4739_v7 = vld [vmem:[#allocation2 + $0x81] sm:$0xff] }
 0x428   : > { %v6926_v31 = vpack.c.bf16 %v4739_v7, %v4739_v7  ;;  %v4489_v7 = vld [vmem:[#allocation2 + $0xc8] sm:$0xff] }
 0x429   : > { %v3643_v58 = vpop.permute.xlu1 %3642  ;;  %v3837_v57 = vpop.permute.xlu0 %3836 }
 0x42a   : > { %3707 = vst.msk [vmem:[#allocation3 + $0x7c] sm:$0xf] %vm1011_vm5, %v3643_v58  ;;  %v4235_v58 = vld [vmem:[#allocation2 + $0xca] sm:$0xff] }
 0x42b   : > { %3932 = vst.msk [vmem:[#allocation3] sm:$0xf] %vm1268_vm6, %v3837_v57  ;;  %4618 = vrot.lane.b32.xlu1 %v8296_v22, %s7167_s30  ;;  %4868 = vrot.lane.b32.xlu0 %v6829_v54, %s7168_s6  ;;  %v4488_v57 = vld [vmem:[#allocation2 + $0xc0] sm:$0xff] }
 0x42d   : > { %v3839_v38 = vpop.permute.xlu1 %3838  ;;  %v3841_v12 = vpop.permute.xlu0 %3840 }
 0x42e   : > { %3933 = vst.msk [vmem:[#allocation3 + $0x4] sm:$0xf] %vm1268_vm6, %v3839_v38  ;;  %3934 = vst.msk [vmem:[#allocation3 + $0x8] sm:$0xf] %vm1268_vm6, %v3841_v12  ;;  %v6870_v12 = vpack.c.bf16 %v4235_v58, %v4235_v58 }
 0x42f   : > { %4870 = vrot.lane.b32.xlu1 %v6830_v53, %s7168_s6  ;;  %4872 = vrot.lane.b32.xlu0 %v6925_v25, %s7168_s6 }
 0x431   : > { %v3843_v27 = vpop.permute.xlu1 %3842  ;;  %v3845_v36 = vpop.permute.xlu0 %3844 }
 0x432   : > { %3935 = vst.msk [vmem:[#allocation3 + $0xc] sm:$0xf] %vm1268_vm6, %v3843_v27  ;;  %3936 = vst.msk [vmem:[#allocation3 + $0x10] sm:$0xf] %vm1268_vm6, %v3845_v36 }
 0x433   : > { %4874 = vrot.lane.b32.xlu1 %v6926_v31, %s7168_s6  ;;  %5124 = vrot.lane.b32.xlu0 %v8446_v51, %s7169_s13 }
 0x435   : > { %v3847_v22 = vpop.permute.xlu1 %3846  ;;  %v3849_v50 = vpop.permute.xlu0 %3848 }
 0x436   : > { %3937 = vst.msk [vmem:[#allocation3 + $0x14] sm:$0xf] %vm1268_vm6, %v3847_v22  ;;  %3938 = vst.msk [vmem:[#allocation3 + $0x18] sm:$0xf] %vm1268_vm6, %v3849_v50 }
 0x437   : > { %5126 = vrot.lane.b32.xlu1 %v8454_v55, %s7169_s13  ;;  %5128 = vrot.lane.b32.xlu0 %v8456_v21, %s7169_s13  ;;  %v3975_v55 = vld [vmem:[#allocation2 + $0x99] sm:$0xff] }
 0x438   : > { %v6834_v46 = vpack.c.bf16 %v3975_v55, %v3975_v55 }
 0x439   : > { %v3851_v11 = vpop.permute.xlu1 %3850  ;;  %v3853_v33 = vpop.permute.xlu0 %3852 }
 0x43a   : > { %3939 = vst.msk [vmem:[#allocation3 + $0x1c] sm:$0xf] %vm1268_vm6, %v3851_v11  ;;  %3940 = vst.msk [vmem:[#allocation3 + $0x20] sm:$0xf] %vm1268_vm6, %v3853_v33  ;;  %v4746_v11 = vld [vmem:[#allocation2 + $0xd9] sm:$0xff] }
 0x43b   : > { %5130 = vrot.lane.b32.xlu1 %v8464_v52, %s7169_s13  ;;  %4108 = vrot.lane.b32.xlu0 %v6925_v25, %s7165_s28  ;;  %v6899_v25 = vpack.c.bf16 %v4488_v57, %v4488_v57 }
 0x43d   : > { %v3855_v51 = vpop.permute.xlu1 %3854  ;;  %v3857_v15 = vpop.permute.xlu0 %3856 }
 0x43e   : > { %3941 = vst.msk [vmem:[#allocation3 + $0x24] sm:$0xf] %vm1268_vm6, %v3855_v51  ;;  %3942 = vst.msk [vmem:[#allocation3 + $0x28] sm:$0xf] %vm1268_vm6, %v3857_v15  ;;  %v6933_v51 = vpack.c.bf16 %v4746_v11, %v4746_v11 }
 0x43f   : > { %4110 = vrot.lane.b32.xlu1 %v6926_v31, %s7165_s28  ;;  %4112 = vrot.lane.b32.xlu0 %v6833_v28, %s7165_s28  ;;  %v6900_v31 = vpack.c.bf16 %v4489_v7, %v4489_v7  ;;  %v5007_v7 = vld [vmem:[#allocation2 + $0x112] sm:$0xff] }
 0x441   : > { %v3859_v42 = vpop.permute.xlu1 %3858  ;;  %v3861_v20 = vpop.permute.xlu0 %3860 }
 0x442   : > { %3943 = vst.msk [vmem:[#allocation3 + $0x2c] sm:$0xf] %vm1268_vm6, %v3859_v42  ;;  %3944 = vst.msk [vmem:[#allocation3 + $0x30] sm:$0xf] %vm1268_vm6, %v3861_v20 }
 0x443   : > { %4114 = vrot.lane.b32.xlu1 %v6834_v46, %s7165_s28  ;;  %4364 = vrot.lane.b32.xlu0 %v8456_v21, %s7166_s29 }
 0x445   : > { %v3863_v44 = vpop.permute.xlu1 %3862  ;;  %v3865_v3 = vpop.permute.xlu0 %3864 }
 0x446   : > { %3945 = vst.msk [vmem:[#allocation3 + $0x34] sm:$0xf] %vm1268_vm6, %v3863_v44  ;;  %3946 = vst.msk [vmem:[#allocation3 + $0x38] sm:$0xf] %vm1268_vm6, %v3865_v3  ;;  %v5003_v44 = vld [vmem:[#allocation2 + $0xe2] sm:$0xff] }
 0x447   : > { %4366 = vrot.lane.b32.xlu1 %v8464_v52, %s7166_s29  ;;  %4368 = vrot.lane.b32.xlu0 %v8466_v32, %s7166_s29 }
 0x449   : > { %v3867_v62 = vpop.permute.xlu1 %3866  ;;  %v3869_v47 = vpop.permute.xlu0 %3868 }
 0x44a   : > { %3947 = vst.msk [vmem:[#allocation3 + $0x3c] sm:$0xf] %vm1268_vm6, %v3867_v62  ;;  %3948 = vst.msk [vmem:[#allocation3 + $0x40] sm:$0xf] %vm1268_vm6, %v3869_v47  ;;  %v6966_v47 = vpack.c.bf16 %v5003_v44, %v5003_v44  ;;  %v4243_v44 = vld [vmem:[#allocation2 + $0x12a] sm:$0xff] }
 0x44b   : > { %4370 = vrot.lane.b32.xlu1 %v8474_v5, %s7166_s29  ;;  %4620 = vrot.lane.b32.xlu0 %v8283_v40, %s7167_s30  ;;  %v4742_v5 = vld [vmem:[#allocation2 + $0xa9] sm:$0xff] }
 0x44c   : > { %v6929_v61 = vpack.c.bf16 %v4742_v5, %v4742_v5 }
 0x44d   : > { %v3871_v21 = vpop.permute.xlu1 %3870  ;;  %v3873_v56 = vpop.permute.xlu0 %3872 }
 0x44e   : > { %3949 = vst.msk [vmem:[#allocation3 + $0x44] sm:$0xf] %vm1268_vm6, %v3871_v21  ;;  %3950 = vst.msk [vmem:[#allocation3 + $0x48] sm:$0xf] %vm1268_vm6, %v3873_v56  ;;  %v3982_v56 = vld [vmem:[#allocation2 + $0xf1] sm:$0xff] }
 0x44f   : > { %4622 = vrot.lane.b32.xlu1 %v8293_v45, %s7167_s30  ;;  %4624 = vrot.lane.b32.xlu0 %v8313_v49, %s7167_s30  ;;  %v4743_v45 = vld [vmem:[#allocation2 + $0xb1] sm:$0xff]  ;;  %v6841_v5 = vpack.c.bf16 %v3982_v56, %v3982_v56 }
 0x450   : > { %v4996_v49 = vld [vmem:[#allocation2 + $0x92] sm:$0xff]  ;;  %v6930_v39 = vpack.c.bf16 %v4743_v45, %v4743_v45 }
 0x451   : > { %v3875_v52 = vpop.permute.xlu1 %3874  ;;  %v3877_v32 = vpop.permute.xlu0 %3876  ;;  %v6959_v13 = vpack.c.bf16 %v4996_v49, %v4996_v49 }
 0x452   : > { %3951 = vst.msk [vmem:[#allocation3 + $0x4c] sm:$0xf] %vm1268_vm6, %v3875_v52  ;;  %3952 = vst.msk [vmem:[#allocation3 + $0x50] sm:$0xf] %vm1268_vm6, %v3877_v32 }
 0x453   : > { %4626 = vrot.lane.b32.xlu1 %v8324_v23, %s7167_s30  ;;  %4876 = vrot.lane.b32.xlu0 %v6833_v28, %s7168_s6  ;;  %v4997_v23 = vld [vmem:[#allocation2 + $0x9a] sm:$0xff] }
 0x454   : > { %v6960_v19 = vpack.c.bf16 %v4997_v23, %v4997_v23  ;;  %v4239_v23 = vld [vmem:[#allocation2 + $0xfa] sm:$0xff] }
 0x455   : > { %v3879_v40 = vpop.permute.xlu1 %3878  ;;  %v3881_v1 = vpop.permute.xlu0 %3880 }
 0x456   : > { %3953 = vst.msk [vmem:[#allocation3 + $0x54] sm:$0xf] %vm1268_vm6, %v3879_v40  ;;  %3954 = vst.msk [vmem:[#allocation3 + $0x58] sm:$0xf] %vm1268_vm6, %v3881_v1  ;;  %v3983_v1 = vld [vmem:[#allocation2 + $0xf9] sm:$0xff] }
 0x457   : > { %4878 = vrot.lane.b32.xlu1 %v6834_v46, %s7168_s6  ;;  %4880 = vrot.lane.b32.xlu0 %v6929_v61, %s7168_s6  ;;  %v6842_v49 = vpack.c.bf16 %v3983_v1, %v3983_v1 }
 0x459   : > { %v3883_v9 = vpop.permute.xlu1 %3882  ;;  %v3885_v16 = vpop.permute.xlu0 %3884 }
 0x45a   : > { %3955 = vst.msk [vmem:[#allocation3 + $0x5c] sm:$0xf] %vm1268_vm6, %v3883_v9  ;;  %3956 = vst.msk [vmem:[#allocation3 + $0x60] sm:$0xf] %vm1268_vm6, %v3885_v16  ;;  %v4238_v9 = vld [vmem:[#allocation2 + $0xf2] sm:$0xff] }
 0x45b   : > { %4882 = vrot.lane.b32.xlu1 %v6930_v39, %s7168_s6  ;;  %5132 = vrot.lane.b32.xlu0 %v6959_v13, %s7169_s13  ;;  %v6873_v13 = vpack.c.bf16 %v4238_v9, %v4238_v9 }
 0x45d   : > { %v3887_v4 = vpop.permute.xlu1 %3886  ;;  %v4093_v26 = vpop.permute.xlu0 %4092 }
 0x45e   : > { %3957 = vst.msk [vmem:[#allocation3 + $0x64] sm:$0xf] %vm1268_vm6, %v3887_v4 }
 0x45f   : > { %4188 = vst.msk [vmem:[#allocation3] sm:$0xf] %vm1525_vm7, %v4093_v26  ;;  %5134 = vrot.lane.b32.xlu1 %v6960_v19, %s7169_s13  ;;  %5136 = vrot.lane.b32.xlu0 %v6961_v29, %s7169_s13  ;;  %v6874_v19 = vpack.c.bf16 %v4239_v23, %v4239_v23 }
 0x461   : > { %v4095_v6 = vpop.permute.xlu1 %4094  ;;  %v4097_v60 = vpop.permute.xlu0 %4096 }
 0x462   : > { %4189 = vst.msk [vmem:[#allocation3 + $0x4] sm:$0xf] %vm1525_vm7, %v4095_v6  ;;  %4190 = vst.msk [vmem:[#allocation3 + $0x8] sm:$0xf] %vm1525_vm7, %v4097_v60  ;;  %v4494_v6 = vld [vmem:[#allocation2 + $0x108] sm:$0xff] }
 0x463   : > { %5138 = vrot.lane.b32.xlu1 %v6962_v48, %s7169_s13  ;;  %4116 = vrot.lane.b32.xlu0 %v6929_v61, %s7165_s28 }
 0x465   : > { %v4099_v54 = vpop.permute.xlu1 %4098  ;;  %v4349_v2 = vpop.permute.xlu0 %4348 }
 0x466   : > { %4191 = vst.msk [vmem:[#allocation3 + $0xc] sm:$0xf] %vm1525_vm7, %v4099_v54  ;;  %v6905_v54 = vpack.c.bf16 %v4494_v6, %v4494_v6 }
 0x467   : > { %4444 = vst.msk [vmem:[#allocation3] sm:$0xf] %vm1782_vm8, %v4349_v2  ;;  %4118 = vrot.lane.b32.xlu1 %v6930_v39, %s7165_s28  ;;  %4120 = vrot.lane.b32.xlu0 %v6837_v59, %s7165_s28  ;;  %v4495_v2 = vld [vmem:[#allocation2 + $0x110] sm:$0xff] }
 0x469   : > { %v4351_v53 = vpop.permute.xlu1 %4350  ;;  %v4353_v63 = vpop.permute.xlu0 %4352 }
 0x46a   : > { %4445 = vst.msk [vmem:[#allocation3 + $0x4] sm:$0xf] %vm1782_vm8, %v4351_v53  ;;  %4446 = vst.msk [vmem:[#allocation3 + $0x8] sm:$0xf] %vm1782_vm8, %v4353_v63  ;;  %v6906_v53 = vpack.c.bf16 %v4495_v2, %v4495_v2  ;;  %v4750_v63 = vld [vmem:[#allocation2 + $0x109] sm:$0xff] }
 0x46b   : > { %4122 = vrot.lane.b32.xlu1 %v6838_v14, %s7165_s28  ;;  %4372 = vrot.lane.b32.xlu0 %v6961_v29, %s7166_s29  ;;  %v6903_v29 = vpack.c.bf16 %v4492_v18, %v4492_v18 }
 0x46d   : > { %v4355_v8 = vpop.permute.xlu1 %4354  ;;  %v4605_v35 = vpop.permute.xlu0 %4604 }
 0x46e   : > { %4447 = vst.msk [vmem:[#allocation3 + $0xc] sm:$0xf] %vm1782_vm8, %v4355_v8  ;;  %v6937_v8 = vpack.c.bf16 %v4750_v63, %v4750_v63 }
 0x46f   : > { %4700 = vst.msk [vmem:[#allocation3] sm:$0xf] %vm2040_vm10, %v4605_v35  ;;  %4374 = vrot.lane.b32.xlu1 %v6962_v48, %s7166_s29  ;;  %4376 = vrot.lane.b32.xlu0 %v6869_v0, %s7166_s29  ;;  %v4751_v35 = vld [vmem:[#allocation2 + $0x111] sm:$0xff] }
 0x470   : > { %v6938_v57 = vpack.c.bf16 %v4751_v35, %v4751_v35 }
 0x471   : > { %v4607_v41 = vpop.permute.xlu1 %4606  ;;  %v4609_v38 = vpop.permute.xlu0 %4608 }
 0x472   : > { %4701 = vst.msk [vmem:[#allocation3 + $0x4] sm:$0xf] %vm2040_vm10, %v4607_v41  ;;  %4702 = vst.msk [vmem:[#allocation3 + $0x8] sm:$0xf] %vm2040_vm10, %v4609_v38  ;;  %v5006_v41 = vld [vmem:[#allocation2 + $0x10a] sm:$0xff] }
 0x473   : > { %4378 = vrot.lane.b32.xlu1 %v6870_v12, %s7166_s29  ;;  %4628 = vrot.lane.b32.xlu0 %v6899_v25, %s7167_s30  ;;  %v6969_v25 = vpack.c.bf16 %v5006_v41, %v5006_v41 }
 0x475   : > { %v4611_v27 = vpop.permute.xlu1 %4610  ;;  %v4861_v36 = vpop.permute.xlu0 %4860 }
 0x476   : > { %4703 = vst.msk [vmem:[#allocation3 + $0xc] sm:$0xf] %vm2040_vm10, %v4611_v27 }
 0x477   : > { %4956 = vst.msk [vmem:[#allocation3] sm:$0xf] %vm2297_vm11, %v4861_v36  ;;  %4630 = vrot.lane.b32.xlu1 %v6900_v31, %s7167_s30  ;;  %4632 = vrot.lane.b32.xlu0 %v8341_v34, %s7167_s30  ;;  %v4747_v34 = vld [vmem:[#allocation2 + $0xe1] sm:$0xff]  ;;  %v6970_v31 = vpack.c.bf16 %v5007_v7, %v5007_v7 }
 0x478   : > { %v6934_v55 = vpack.c.bf16 %v4747_v34, %v4747_v34  ;;  %v3987_v34 = vld [vmem:[#allocation2 + $0x129] sm:$0xff] }
 0x479   : > { %v4863_v22 = vpop.permute.xlu1 %4862  ;;  %v4865_v50 = vpop.permute.xlu0 %4864 }
 0x47a   : > { %4957 = vst.msk [vmem:[#allocation3 + $0x4] sm:$0xf] %vm2297_vm11, %v4863_v22  ;;  %4958 = vst.msk [vmem:[#allocation3 + $0x8] sm:$0xf] %vm2297_vm11, %v4865_v50  ;;  %v3986_v50 = vld [vmem:[#allocation2 + $0x121] sm:$0xff] }
 0x47b   : > { %4634 = vrot.lane.b32.xlu1 %v8352_v37, %s7167_s30  ;;  %4884 = vrot.lane.b32.xlu0 %v6837_v59, %s7168_s6  ;;  %v5002_v37 = vld [vmem:[#allocation2 + $0xda] sm:$0xff] }
 0x47c   : > { %v6965_v46 = vpack.c.bf16 %v5002_v37, %v5002_v37  ;;  %v4242_v37 = vld [vmem:[#allocation2 + $0x122] sm:$0xff] }
 0x47d   : > { %v4867_v33 = vpop.permute.xlu1 %4866  ;;  %v5117_v43 = vpop.permute.xlu0 %5116 }
 0x47e   : > { %4959 = vst.msk [vmem:[#allocation3 + $0xc] sm:$0xf] %vm2297_vm11, %v4867_v33 }
 0x47f   : > { %5212 = vst.msk [vmem:[#allocation3] sm:$0xf] %vm2554_vm12, %v5117_v43  ;;  %4886 = vrot.lane.b32.xlu1 %v6838_v14, %s7168_s6  ;;  %4888 = vrot.lane.b32.xlu0 %v6933_v51, %s7168_s6  ;;  %v6845_v43 = vpack.c.bf16 %v3986_v50, %v3986_v50 }
 0x481   : > { %v5119_v15 = vpop.permute.xlu1 %5118  ;;  %v5121_v28 = vpop.permute.xlu0 %5120 }
 0x482   : > { %5213 = vst.msk [vmem:[#allocation3 + $0x4] sm:$0xf] %vm2554_vm12, %v5119_v15  ;;  %5214 = vst.msk [vmem:[#allocation3 + $0x8] sm:$0xf] %vm2554_vm12, %v5121_v28 }
 0x483   : > { %4890 = vrot.lane.b32.xlu1 %v6934_v55, %s7168_s6  ;;  %5140 = vrot.lane.b32.xlu0 %v6869_v0, %s7169_s13 }
 0x485   : > { %v5123_v42 = vpop.permute.xlu1 %5122  ;;  %v4101_v20 = vpop.permute.xlu0 %4100 }
 0x486   : > { %5215 = vst.msk [vmem:[#allocation3 + $0xc] sm:$0xf] %vm2554_vm12, %v5123_v42 }
 0x487   : > { %4192 = vst.msk [vmem:[#allocation3 + $0x10] sm:$0xf] %vm1525_vm7, %v4101_v20  ;;  %5142 = vrot.lane.b32.xlu1 %v6870_v12, %s7169_s13  ;;  %5144 = vrot.lane.b32.xlu0 %v6965_v46, %s7169_s13 }
 0x489   : > { %v4103_v3 = vpop.permute.xlu1 %4102  ;;  %v4105_v62 = vpop.permute.xlu0 %4104  ;;  %v7137_v21 = vld [vmem:[#allocation3] sm:$0xff]  }
 0x48a   : > { %4193 = vst.msk [vmem:[#allocation3 + $0x14] sm:$0xf] %vm1525_vm7, %v4103_v3  ;;  %4194 = vst.msk [vmem:[#allocation3 + $0x18] sm:$0xf] %vm1525_vm7, %v4105_v62  ;;  %7065 = vmatprep.mubr.msk.bf16.mxu1 %vm2726_vm13, %v7137_v21  ;;  %v4496_v3 = vld [vmem:[#allocation2 + $0x120] sm:$0xff]  ;;  %v6878_v21 = vpack.c.bf16 %v4243_v44, %v4243_v44  ;;  %v4758_v44 = vld [vmem:[#allocation2 + $0x169] sm:$0xff] }
 0x48b   : > { %5146 = vrot.lane.b32.xlu1 %v6966_v47, %s7169_s13  ;;  %4124 = vrot.lane.b32.xlu0 %v6933_v51, %s7165_s28  ;;  %v6907_v56 = vpack.c.bf16 %v4496_v3, %v4496_v3 }
 0x48d   : > { %v4107_v52 = vpop.permute.xlu1 %4106  ;;  %v4357_v32 = vpop.permute.xlu0 %4356  ;;  %v7138_v40 = vld [vmem:[#allocation3 + $0x8] sm:$0xff]  }
 0x48e   : > { %4195 = vst.msk [vmem:[#allocation3 + $0x1c] sm:$0xf] %vm1525_vm7, %v4107_v52  ;;  %7066 = vmatmul.mubr.msk.bf16.vlgmr.msra.gmra.mxu1 %vm2726_vm13, %v7138_v40  ;;  %v4497_v52 = vld [vmem:[#allocation2 + $0x128] sm:$0xff] }
 0x48f   : > { %4448 = vst.msk [vmem:[#allocation3 + $0x10] sm:$0xf] %vm1782_vm8, %v4357_v32  ;;  %4126 = vrot.lane.b32.xlu1 %v6934_v55, %s7165_s28  ;;  %4128 = vrot.lane.b32.xlu0 %v6841_v5, %s7165_s28  ;;  %v6846_v55 = vpack.c.bf16 %v3987_v34, %v3987_v34  ;;  %v4498_v32 = vld [vmem:[#allocation2 + $0x138] sm:$0xff]  ;;  %v6908_v1 = vpack.c.bf16 %v4497_v52, %v4497_v52  ;;  %v4502_v34 = vld [vmem:[#allocation2 + $0x168] sm:$0xff] }
 0x491   : > { %v4359_v61 = vpop.permute.xlu1 %4358  ;;  %v4361_v45 = vpop.permute.xlu0 %4360 }
 0x492   : > { %4449 = vst.msk [vmem:[#allocation3 + $0x14] sm:$0xf] %vm1782_vm8, %v4359_v61  ;;  %4450 = vst.msk [vmem:[#allocation3 + $0x18] sm:$0xf] %vm1782_vm8, %v4361_v45  ;;  %v6909_v61 = vpack.c.bf16 %v4498_v32, %v4498_v32  ;;  %v4499_v45 = vld [vmem:[#allocation2 + $0x140] sm:$0xff] }
 0x493   : > { %4130 = vrot.lane.b32.xlu1 %v6842_v49, %s7165_s28  ;;  %4380 = vrot.lane.b32.xlu0 %v6965_v46, %s7166_s29  ;;  %v6877_v46 = vpack.c.bf16 %v4242_v37, %v4242_v37  ;;  %v4503_v37 = vld [vmem:[#allocation2 + $0x170] sm:$0xff] }
 0x495   : > { %v4363_v16 = vpop.permute.xlu1 %4362  ;;  %v4613_v39 = vpop.permute.xlu0 %4612 }
 0x496   : > { %4451 = vst.msk [vmem:[#allocation3 + $0x1c] sm:$0xf] %vm1782_vm8, %v4363_v16  ;;  %v6910_v16 = vpack.c.bf16 %v4499_v45, %v4499_v45 }
 0x497   : > { %4704 = vst.msk [vmem:[#allocation3 + $0x10] sm:$0xf] %vm2040_vm10, %v4613_v39  ;;  %4382 = vrot.lane.b32.xlu1 %v6966_v47, %s7166_s29  ;;  %4384 = vrot.lane.b32.xlu0 %v6873_v13, %s7166_s29  ;;  %v4754_v39 = vld [vmem:[#allocation2 + $0x139] sm:$0xff] }
 0x498   : > { %v6941_v18 = vpack.c.bf16 %v4754_v39, %v4754_v39 }
 0x499   : > { %v4615_v4 = vpop.permute.xlu1 %4614  ;;  %v4617_v26 = vpop.permute.xlu0 %4616 }
 0x49a   : > { %4705 = vst.msk [vmem:[#allocation3 + $0x14] sm:$0xf] %vm2040_vm10, %v4615_v4  ;;  %4706 = vst.msk [vmem:[#allocation3 + $0x18] sm:$0xf] %vm2040_vm10, %v4617_v26  ;;  %v4755_v4 = vld [vmem:[#allocation2 + $0x141] sm:$0xff] }
 0x49b   : > { %4386 = vrot.lane.b32.xlu1 %v6874_v19, %s7166_s29  ;;  %4636 = vrot.lane.b32.xlu0 %v6903_v29, %s7167_s30  ;;  %v6942_v29 = vpack.c.bf16 %v4755_v4, %v4755_v4 }
 0x49d   : > { %v4619_v60 = vpop.permute.xlu1 %4618  ;;  %v4869_v48 = vpop.permute.xlu0 %4868 }
 0x49e   : > { %4707 = vst.msk [vmem:[#allocation3 + $0x1c] sm:$0xf] %vm2040_vm10, %v4619_v60 }
 0x49f   : > { %4960 = vst.msk [vmem:[#allocation3 + $0x10] sm:$0xf] %vm2297_vm11, %v4869_v48  ;;  %4638 = vrot.lane.b32.xlu1 %v6904_v30, %s7167_s30  ;;  %4640 = vrot.lane.b32.xlu0 %v6905_v54, %s7167_s30  ;;  %v6973_v48 = vpack.c.bf16 %v5010_v10, %v5010_v10  ;;  %v5011_v30 = vld [vmem:[#allocation2 + $0x142] sm:$0xff]  ;;  %v3734_v54 = vld [vmem:[#allocation2 + $0x150] sm:$0xff] }
 0x4a1   : > { %v4871_v59 = vpop.permute.xlu1 %4870  ;;  %v4873_v24 = vpop.permute.xlu0 %4872 }
 0x4a2   : > { %4961 = vst.msk [vmem:[#allocation3 + $0x14] sm:$0xf] %vm2297_vm11, %v4871_v59  ;;  %4962 = vst.msk [vmem:[#allocation3 + $0x18] sm:$0xf] %vm2297_vm11, %v4873_v24  ;;  %v6974_v24 = vpack.c.bf16 %v5011_v30, %v5011_v30 }
 0x4a3   : > { %4642 = vrot.lane.b32.xlu1 %v6906_v53, %s7167_s30  ;;  %4892 = vrot.lane.b32.xlu0 %v6841_v5, %s7168_s6  ;;  %v6817_v53 = vpack.c.bf16 %v3734_v54, %v3734_v54 }
 0x4a5   : > { %v4875_v14 = vpop.permute.xlu1 %4874  ;;  %v5125_v17 = vpop.permute.xlu0 %5124 }
 0x4a6   : > { %4963 = vst.msk [vmem:[#allocation3 + $0x1c] sm:$0xf] %vm2297_vm11, %v4875_v14  ;;  %v3735_v14 = vld [vmem:[#allocation2 + $0x158] sm:$0xff] }
 0x4a7   : > { %5216 = vst.msk [vmem:[#allocation3 + $0x10] sm:$0xf] %vm2554_vm12, %v5125_v17  ;;  %4894 = vrot.lane.b32.xlu1 %v6842_v49, %s7168_s6  ;;  %4896 = vrot.lane.b32.xlu0 %v6937_v8, %s7168_s6  ;;  %v6818_v35 = vpack.c.bf16 %v3735_v14, %v3735_v14 }
 0x4a9   : > { %v5127_v0 = vpop.permute.xlu1 %5126  ;;  %v5129_v58 = vpop.permute.xlu0 %5128 }
 0x4aa   : > { %5217 = vst.msk [vmem:[#allocation3 + $0x14] sm:$0xf] %vm2554_vm12, %v5127_v0  ;;  %5218 = vst.msk [vmem:[#allocation3 + $0x18] sm:$0xf] %vm2554_vm12, %v5129_v58  ;;  %v3990_v58 = vld [vmem:[#allocation2 + $0x151] sm:$0xff] }
 0x4ab   : > { %4898 = vrot.lane.b32.xlu1 %v6938_v57, %s7168_s6  ;;  %5148 = vrot.lane.b32.xlu0 %v6873_v13, %s7169_s13 }
 0x4ad   : > { %v5131_v38 = vpop.permute.xlu1 %5130  ;;  %v4109_v12 = vpop.permute.xlu0 %4108 }
 0x4ae   : > { %5219 = vst.msk [vmem:[#allocation3 + $0x1c] sm:$0xf] %vm2554_vm12, %v5131_v38  ;;  %v6849_v38 = vpack.c.bf16 %v3990_v58, %v3990_v58 }
 0x4af   : > { %4196 = vst.msk [vmem:[#allocation3 + $0x20] sm:$0xf] %vm1525_vm7, %v4109_v12  ;;  %5150 = vrot.lane.b32.xlu1 %v6874_v19, %s7169_s13  ;;  %5152 = vrot.lane.b32.xlu0 %v6969_v25, %s7169_s13  ;;  %v3991_v12 = vld [vmem:[#allocation2 + $0x159] sm:$0xff] }
 0x4b1   : > { %v4111_v27 = vpop.permute.xlu1 %4110  ;;  %v4113_v36 = vpop.permute.xlu0 %4112  ;;  %v7139_v22 = vld [vmem:[#allocation3 + $0x10] sm:$0xff]  }
 0x4b2   : > { %4197 = vst.msk [vmem:[#allocation3 + $0x24] sm:$0xf] %vm1525_vm7, %v4111_v27  ;;  %4198 = vst.msk [vmem:[#allocation3 + $0x28] sm:$0xf] %vm1525_vm7, %v4113_v36  ;;  %7069 = vmatprep.mubr.msk.bf16.mxu1 %vm2726_vm13, %v7139_v22  ;;  %v6850_v27 = vpack.c.bf16 %v3991_v12, %v3991_v12  ;;  %v4246_v36 = vld [vmem:[#allocation2 + $0x152] sm:$0xff]  ;;  %v4507_v12 = vld [vmem:[#allocation2 + $0x1a0] sm:$0xff] }
 0x4b3   : > { %5154 = vrot.lane.b32.xlu1 %v6970_v31, %s7169_s13  ;;  %4132 = vrot.lane.b32.xlu0 %v6937_v8, %s7165_s28  ;;  %v6881_v50 = vpack.c.bf16 %v4246_v36, %v4246_v36  ;;  %v4762_v36 = vld [vmem:[#allocation2 + $0x199] sm:$0xff] }
 0x4b5   : > { %v4115_v11 = vpop.permute.xlu1 %4114  ;;  %v4365_v33 = vpop.permute.xlu0 %4364  ;;  %v7140_v51 = vld [vmem:[#allocation3 + $0x18] sm:$0xff]  }
 0x4b6   : > { %4199 = vst.msk [vmem:[#allocation3 + $0x2c] sm:$0xf] %vm1525_vm7, %v4115_v11  ;;  %7070 = vmatmul.mubr.msk.bf16.gmra.mxu1 %vm2726_vm13, %v7140_v51  ;;  %v4247_v11 = vld [vmem:[#allocation2 + $0x15a] sm:$0xff] }
 0x4b7   : > { %4452 = vst.msk [vmem:[#allocation3 + $0x20] sm:$0xf] %vm1782_vm8, %v4365_v33  ;;  %4134 = vrot.lane.b32.xlu1 %v6938_v57, %s7165_s28  ;;  %4136 = vrot.lane.b32.xlu0 %v6845_v43, %s7165_s28  ;;  %v6882_v51 = vpack.c.bf16 %v4247_v11, %v4247_v11  ;;  %v4763_v11 = vld [vmem:[#allocation2 + $0x1a1] sm:$0xff] }
 0x4b9   : > { %v4367_v15 = vpop.permute.xlu1 %4366  ;;  %v4369_v28 = vpop.permute.xlu0 %4368 }
 0x4ba   : > { %4453 = vst.msk [vmem:[#allocation3 + $0x24] sm:$0xf] %vm1782_vm8, %v4367_v15  ;;  %4454 = vst.msk [vmem:[#allocation3 + $0x28] sm:$0xf] %vm1782_vm8, %v4369_v28 }
 0x4bb   : > { %4138 = vrot.lane.b32.xlu1 %v6846_v55, %s7165_s28  ;;  %4388 = vrot.lane.b32.xlu0 %v6969_v25, %s7166_s29 }
 0x4bd   : > { %v4371_v42 = vpop.permute.xlu1 %4370  ;;  %v4621_v20 = vpop.permute.xlu0 %4620 }
 0x4be   : > { %4455 = vst.msk [vmem:[#allocation3 + $0x2c] sm:$0xf] %vm1782_vm8, %v4371_v42 }
 0x4bf   : > { %4708 = vst.msk [vmem:[#allocation3 + $0x20] sm:$0xf] %vm2040_vm10, %v4621_v20  ;;  %4390 = vrot.lane.b32.xlu1 %v6970_v31, %s7166_s29  ;;  %4392 = vrot.lane.b32.xlu0 %v6877_v46, %s7166_s29 }
 0x4c1   : > { %v4623_v62 = vpop.permute.xlu1 %4622  ;;  %v4625_v47 = vpop.permute.xlu0 %4624 }
 0x4c2   : > { %4709 = vst.msk [vmem:[#allocation3 + $0x24] sm:$0xf] %vm2040_vm10, %v4623_v62  ;;  %4710 = vst.msk [vmem:[#allocation3 + $0x28] sm:$0xf] %vm2040_vm10, %v4625_v47  ;;  %v6945_v47 = vpack.c.bf16 %v4758_v44, %v4758_v44 }
 0x4c3   : > { %4394 = vrot.lane.b32.xlu1 %v6878_v21, %s7166_s29  ;;  %4644 = vrot.lane.b32.xlu0 %v6907_v56, %s7167_s30 }
 0x4c5   : > { %v4627_v5 = vpop.permute.xlu1 %4626  ;;  %v4877_v40 = vpop.permute.xlu0 %4876 }
 0x4c6   : > { %4711 = vst.msk [vmem:[#allocation3 + $0x2c] sm:$0xf] %vm2040_vm10, %v4627_v5  ;;  %v5014_v5 = vld [vmem:[#allocation2 + $0x16a] sm:$0xff] }
 0x4c7   : > { %4964 = vst.msk [vmem:[#allocation3 + $0x20] sm:$0xf] %vm2297_vm11, %v4877_v40  ;;  %4646 = vrot.lane.b32.xlu1 %v6908_v1, %s7167_s30  ;;  %4648 = vrot.lane.b32.xlu0 %v6909_v61, %s7167_s30  ;;  %v6977_v61 = vpack.c.bf16 %v5014_v5, %v5014_v5 }
 0x4c9   : > { %v4879_v49 = vpop.permute.xlu1 %4878  ;;  %v4881_v9 = vpop.permute.xlu0 %4880 }
 0x4ca   : > { %4965 = vst.msk [vmem:[#allocation3 + $0x24] sm:$0xf] %vm2297_vm11, %v4879_v49  ;;  %4966 = vst.msk [vmem:[#allocation3 + $0x28] sm:$0xf] %vm2297_vm11, %v4881_v9  ;;  %v5015_v49 = vld [vmem:[#allocation2 + $0x172] sm:$0xff] }
 0x4cb   : > { %4650 = vrot.lane.b32.xlu1 %v6910_v16, %s7167_s30  ;;  %4900 = vrot.lane.b32.xlu0 %v6845_v43, %s7168_s6  ;;  %v6978_v39 = vpack.c.bf16 %v5015_v49, %v5015_v49 }
 0x4cd   : > { %v4883_v13 = vpop.permute.xlu1 %4882  ;;  %v5133_v23 = vpop.permute.xlu0 %5132 }
 0x4ce   : > { %4967 = vst.msk [vmem:[#allocation3 + $0x2c] sm:$0xf] %vm2297_vm11, %v4883_v13 }
 0x4cf   : > { %5220 = vst.msk [vmem:[#allocation3 + $0x20] sm:$0xf] %vm2554_vm12, %v5133_v23  ;;  %4902 = vrot.lane.b32.xlu1 %v6846_v55, %s7168_s6  ;;  %4904 = vrot.lane.b32.xlu0 %v6941_v18, %s7168_s6  ;;  %v6913_v55 = vpack.c.bf16 %v4502_v34, %v4502_v34  ;;  %v3738_v23 = vld [vmem:[#allocation2 + $0x180] sm:$0xff]  ;;  %v6950_v34 = vpack.c.bf16 %v4763_v11, %v4763_v11 }
 0x4d1   : > { %v5135_v26 = vpop.permute.xlu1 %5134  ;;  %v5137_v19 = vpop.permute.xlu0 %5136 }
 0x4d2   : > { %5221 = vst.msk [vmem:[#allocation3 + $0x24] sm:$0xf] %vm2554_vm12, %v5135_v26  ;;  %5222 = vst.msk [vmem:[#allocation3 + $0x28] sm:$0xf] %vm2554_vm12, %v5137_v19  ;;  %v6821_v26 = vpack.c.bf16 %v3738_v23, %v3738_v23  ;;  %v3739_v19 = vld [vmem:[#allocation2 + $0x188] sm:$0xff]  ;;  %v5597_v23 = vld [vmem:[%s7266_s24 + $0x10] sm:$0xff] }
 0x4d3   : > { %4906 = vrot.lane.b32.xlu1 %v6942_v29, %s7168_s6  ;;  %5156 = vrot.lane.b32.xlu0 %v6877_v46, %s7169_s13  ;;  %v6914_v46 = vpack.c.bf16 %v4503_v37, %v4503_v37 }
 0x4d5   : > { %v5139_v6 = vpop.permute.xlu1 %5138  ;;  %v4117_v60 = vpop.permute.xlu0 %4116 }
 0x4d6   : > { %5223 = vst.msk [vmem:[#allocation3 + $0x2c] sm:$0xf] %vm2554_vm12, %v5139_v6  ;;  %v6822_v6 = vpack.c.bf16 %v3739_v19, %v3739_v19 }
 0x4d7   : > { %4200 = vst.msk [vmem:[#allocation3 + $0x30] sm:$0xf] %vm1525_vm7, %v4117_v60  ;;  %5158 = vrot.lane.b32.xlu1 %v6878_v21, %s7169_s13  ;;  %5160 = vrot.lane.b32.xlu0 %v6973_v48, %s7169_s13  ;;  %v4759_v21 = vld [vmem:[#allocation2 + $0x171] sm:$0xff]  ;;  %v3994_v60 = vld [vmem:[#allocation2 + $0x181] sm:$0xff] }
 0x4d8   : > { %v6946_v32 = vpack.c.bf16 %v4759_v21, %v4759_v21  ;;  %v6853_v54 = vpack.c.bf16 %v3994_v60, %v3994_v60 }
 0x4d9   : > { %v4119_v2 = vpop.permute.xlu1 %4118  ;;  %v4121_v59 = vpop.permute.xlu0 %4120  ;;  %v7141_v63 = vld [vmem:[#allocation3 + $0x20] sm:$0xff]  }
 0x4da   : > { %4201 = vst.msk [vmem:[#allocation3 + $0x34] sm:$0xf] %vm1525_vm7, %v4119_v2  ;;  %4202 = vst.msk [vmem:[#allocation3 + $0x38] sm:$0xf] %vm1525_vm7, %v4121_v59  ;;  %7073 = vmatprep.mubr.msk.bf16.mxu1 %vm2726_vm13, %v7141_v63  ;;  %v3995_v2 = vld [vmem:[#allocation2 + $0x189] sm:$0xff] }
 0x4db   : > { %5162 = vrot.lane.b32.xlu1 %v6974_v24, %s7169_s13  ;;  %3888 = vrot.lane.b32.xlu0 %v6817_v53, %s7164_s27  ;;  %v4250_v63 = vld [vmem:[#allocation2 + $0x182] sm:$0xff] }
 0x4dd   : > { %v4123_v17 = vpop.permute.xlu1 %4122  ;;  %v4373_v8 = vpop.permute.xlu0 %4372  ;;  %v7142_v0 = vld [vmem:[#allocation3 + $0x28] sm:$0xff]  }
 0x4de   : > { %4203 = vst.msk [vmem:[#allocation3 + $0x3c] sm:$0xf] %vm1525_vm7, %v4123_v17  ;;  %7074 = vmatmul.mubr.msk.bf16.gmra.mxu1 %vm2726_vm13, %v7142_v0  ;;  %v4506_v0 = vld [vmem:[#allocation2 + $0x198] sm:$0xff] }
 0x4df   : > { %4456 = vst.msk [vmem:[#allocation3 + $0x30] sm:$0xf] %vm1782_vm8, %v4373_v8  ;;  %3890 = vrot.lane.b32.xlu1 %v6818_v35, %s7164_s27  ;;  %4140 = vrot.lane.b32.xlu0 %v6941_v18, %s7165_s28  ;;  %v6885_v8 = vpack.c.bf16 %v4250_v63, %v4250_v63 }
 0x4e1   : > { %v4375_v57 = vpop.permute.xlu1 %4374  ;;  %v4377_v41 = vpop.permute.xlu0 %4376 }
 0x4e2   : > { %4457 = vst.msk [vmem:[#allocation3 + $0x34] sm:$0xf] %vm1782_vm8, %v4375_v57  ;;  %4458 = vst.msk [vmem:[#allocation3 + $0x38] sm:$0xf] %vm1782_vm8, %v4377_v41 }
 0x4e3   : > { %4142 = vrot.lane.b32.xlu1 %v6942_v29, %s7165_s28  ;;  %4144 = vrot.lane.b32.xlu0 %v6849_v38, %s7165_s28 }
 0x4e5   : > { %v4379_v25 = vpop.permute.xlu1 %4378  ;;  %v4629_v7 = vpop.permute.xlu0 %4628 }
 0x4e6   : > { %4459 = vst.msk [vmem:[#allocation3 + $0x3c] sm:$0xf] %vm1782_vm8, %v4379_v25 }
 0x4e7   : > { %4712 = vst.msk [vmem:[#allocation3 + $0x30] sm:$0xf] %vm2040_vm10, %v4629_v7  ;;  %4146 = vrot.lane.b32.xlu1 %v6850_v27, %s7165_s28  ;;  %4396 = vrot.lane.b32.xlu0 %v6973_v48, %s7166_s29 }
 0x4e9   : > { %v4631_v31 = vpop.permute.xlu1 %4630  ;;  %v4633_v22 = vpop.permute.xlu0 %4632 }
 0x4ea   : > { %4713 = vst.msk [vmem:[#allocation3 + $0x34] sm:$0xf] %vm2040_vm10, %v4631_v31  ;;  %4714 = vst.msk [vmem:[#allocation3 + $0x38] sm:$0xf] %vm2040_vm10, %v4633_v22 }
 0x4eb   : > { %4398 = vrot.lane.b32.xlu1 %v6974_v24, %s7166_s29  ;;  %4400 = vrot.lane.b32.xlu0 %v6881_v50, %s7166_s29 }
 0x4ed   : > { %v4635_v33 = vpop.permute.xlu1 %4634  ;;  %v4885_v43 = vpop.permute.xlu0 %4884 }
 0x4ee   : > { %4715 = vst.msk [vmem:[#allocation3 + $0x3c] sm:$0xf] %vm2040_vm10, %v4635_v33 }
 0x4ef   : > { %4968 = vst.msk [vmem:[#allocation3 + $0x30] sm:$0xf] %vm2297_vm11, %v4885_v43  ;;  %4402 = vrot.lane.b32.xlu1 %v6882_v51, %s7166_s29  ;;  %4652 = vrot.lane.b32.xlu0 %v6817_v53, %s7167_s30  ;;  %v6854_v53 = vpack.c.bf16 %v3995_v2, %v3995_v2 }
 0x4f1   : > { %v4887_v15 = vpop.permute.xlu1 %4886  ;;  %v4889_v28 = vpop.permute.xlu0 %4888 }
 0x4f2   : > { %4969 = vst.msk [vmem:[#allocation3 + $0x34] sm:$0xf] %vm2297_vm11, %v4887_v15  ;;  %4970 = vst.msk [vmem:[#allocation3 + $0x38] sm:$0xf] %vm2297_vm11, %v4889_v28  ;;  %v5018_v15 = vld [vmem:[#allocation2 + $0x19a] sm:$0xff] }
 0x4f3   : > { %4654 = vrot.lane.b32.xlu1 %v6818_v35, %s7167_s30  ;;  %4656 = vrot.lane.b32.xlu0 %v6913_v55, %s7167_s30  ;;  %v4251_v35 = vld [vmem:[#allocation2 + $0x18a] sm:$0xff] }
 0x4f4   : > { %v6886_v41 = vpack.c.bf16 %v4251_v35, %v4251_v35 }
 0x4f5   : > { %v4891_v42 = vpop.permute.xlu1 %4890  ;;  %v5141_v20 = vpop.permute.xlu0 %5140 }
 0x4f6   : > { %4971 = vst.msk [vmem:[#allocation3 + $0x3c] sm:$0xf] %vm2297_vm11, %v4891_v42  ;;  %v6981_v42 = vpack.c.bf16 %v5018_v15, %v5018_v15 }
 0x4f7   : > { %5224 = vst.msk [vmem:[#allocation3 + $0x30] sm:$0xf] %vm2554_vm12, %v5141_v20  ;;  %4658 = vrot.lane.b32.xlu1 %v6914_v46, %s7167_s30  ;;  %4908 = vrot.lane.b32.xlu0 %v6849_v38, %s7168_s6  ;;  %v6917_v38 = vpack.c.bf16 %v4506_v0, %v4506_v0  ;;  %v5019_v20 = vld [vmem:[#allocation2 + $0x1a2] sm:$0xff] }
 0x4f9   : > { %v5143_v3 = vpop.permute.xlu1 %5142  ;;  %v5145_v62 = vpop.permute.xlu0 %5144 }
 0x4fa   : > { %5225 = vst.msk [vmem:[#allocation3 + $0x34] sm:$0xf] %vm2554_vm12, %v5143_v3  ;;  %5226 = vst.msk [vmem:[#allocation3 + $0x38] sm:$0xf] %vm2554_vm12, %v5145_v62  ;;  %v6982_v3 = vpack.c.bf16 %v5019_v20, %v5019_v20 }
 0x4fb   : > { %4910 = vrot.lane.b32.xlu1 %v6850_v27, %s7168_s6  ;;  %4912 = vrot.lane.b32.xlu0 %v6945_v47, %s7168_s6  ;;  %v6918_v27 = vpack.c.bf16 %v4507_v12, %v4507_v12 }
 0x4fd   : > { %v5147_v56 = vpop.permute.xlu1 %5146  ;;  %v4125_v52 = vpop.permute.xlu0 %4124 }
 0x4fe   : > { %5227 = vst.msk [vmem:[#allocation3 + $0x3c] sm:$0xf] %vm2554_vm12, %v5147_v56 }
 0x4ff   : > { %4204 = vst.msk [vmem:[#allocation3 + $0x40] sm:$0xf] %vm1525_vm7, %v4125_v52  ;;  %4914 = vrot.lane.b32.xlu1 %v6946_v32, %s7168_s6  ;;  %5164 = vrot.lane.b32.xlu0 %v6881_v50, %s7169_s13  ;;  %v6949_v50 = vpack.c.bf16 %v4762_v36, %v4762_v36 }
 0x501   : > { %v4127_v40 = vpop.permute.xlu1 %4126  ;;  %v4129_v1 = vpop.permute.xlu0 %4128  ;;  %v7143_v45 = vld [vmem:[#allocation3 + $0x30] sm:$0xff]  }
 0x502   : > { %4205 = vst.msk [vmem:[#allocation3 + $0x44] sm:$0xf] %vm1525_vm7, %v4127_v40  ;;  %4206 = vst.msk [vmem:[#allocation3 + $0x48] sm:$0xf] %vm1525_vm7, %v4129_v1  ;;  %7077 = vmatprep.mubr.msk.bf16.mxu1 %vm2726_vm13, %v7143_v45 }
 0x503   : > { %5166 = vrot.lane.b32.xlu1 %v6882_v51, %s7169_s13  ;;  %5168 = vrot.lane.b32.xlu0 %v6977_v61, %s7169_s13 }
 0x505   : > { %v4131_v9 = vpop.permute.xlu1 %4130  ;;  %v4381_v16 = vpop.permute.xlu0 %4380  ;;  %v7144_v13 = vld [vmem:[#allocation3 + $0x38] sm:$0xff]  }
 0x506   : > { %4207 = vst.msk [vmem:[#allocation3 + $0x4c] sm:$0xf] %vm1525_vm7, %v4131_v9  ;;  %7078 = vmatmul.mubr.msk.bf16.gmra.mxu1 %vm2726_vm13, %v7144_v13 }
 0x507   : > { %4460 = vst.msk [vmem:[#allocation3 + $0x40] sm:$0xf] %vm1782_vm8, %v4381_v16  ;;  %5170 = vrot.lane.b32.xlu1 %v6978_v39, %s7169_s13  ;;  %3892 = vrot.lane.b32.xlu0 %v6913_v55, %s7164_s27 }
 0x509   : > { %v4383_v18 = vpop.permute.xlu1 %4382  ;;  %v4385_v4 = vpop.permute.xlu0 %4384 }
 0x50a   : > { %4461 = vst.msk [vmem:[#allocation3 + $0x44] sm:$0xf] %vm1782_vm8, %v4383_v18  ;;  %4462 = vst.msk [vmem:[#allocation3 + $0x48] sm:$0xf] %vm1782_vm8, %v4385_v4 }
 0x50b   : > { %3894 = vrot.lane.b32.xlu1 %v6914_v46, %s7164_s27  ;;  %3896 = vrot.lane.b32.xlu0 %v6821_v26, %s7164_s27 }
 0x50d   : > { %v4387_v29 = vpop.permute.xlu1 %4386  ;;  %v4637_v10 = vpop.permute.xlu0 %4636 }
 0x50e   : > { %4463 = vst.msk [vmem:[#allocation3 + $0x4c] sm:$0xf] %vm1782_vm8, %v4387_v29 }
 0x50f   : > { %4716 = vst.msk [vmem:[#allocation3 + $0x40] sm:$0xf] %vm2040_vm10, %v4637_v10  ;;  %3898 = vrot.lane.b32.xlu1 %v6822_v6, %s7164_s27  ;;  %4148 = vrot.lane.b32.xlu0 %v6945_v47, %s7165_s28  ;;  %v5595_v10 = vld [vmem:[%s7266_s24] sm:$0xff] }
 0x511   : > { %v4639_v48 = vpop.permute.xlu1 %4638  ;;  %v4641_v30 = vpop.permute.xlu0 %4640 }
 0x512   : > { %4717 = vst.msk [vmem:[#allocation3 + $0x44] sm:$0xf] %vm2040_vm10, %v4639_v48  ;;  %4718 = vst.msk [vmem:[#allocation3 + $0x48] sm:$0xf] %vm2040_vm10, %v4641_v30  ;;  %v5598_v30 = vld [vmem:[%s7266_s24 + $0x18] sm:$0xff] }
 0x513   : > { %4150 = vrot.lane.b32.xlu1 %v6946_v32, %s7165_s28  ;;  %4152 = vrot.lane.b32.xlu0 %v6853_v54, %s7165_s28 }
 0x515   : > { %v4643_v59 = vpop.permute.xlu1 %4642  ;;  %v4893_v24 = vpop.permute.xlu0 %4892 }
 0x516   : > { %4719 = vst.msk [vmem:[#allocation3 + $0x4c] sm:$0xf] %vm2040_vm10, %v4643_v59 }
 0x517   : > { %4972 = vst.msk [vmem:[#allocation3 + $0x40] sm:$0xf] %vm2297_vm11, %v4893_v24  ;;  %4154 = vrot.lane.b32.xlu1 %v6854_v53, %s7165_s28  ;;  %4404 = vrot.lane.b32.xlu0 %v6977_v61, %s7166_s29 }
 0x519   : > { %v4895_v14 = vpop.permute.xlu1 %4894  ;;  %v4897_v17 = vpop.permute.xlu0 %4896 }
 0x51a   : > { %4973 = vst.msk [vmem:[#allocation3 + $0x44] sm:$0xf] %vm2297_vm11, %v4895_v14  ;;  %4974 = vst.msk [vmem:[#allocation3 + $0x48] sm:$0xf] %vm2297_vm11, %v4897_v17  ;;  %v5596_v14 = vld [vmem:[%s7266_s24 + $0x8] sm:$0xff] }
 0x51b   : > { %4406 = vrot.lane.b32.xlu1 %v6978_v39, %s7166_s29  ;;  %4408 = vrot.lane.b32.xlu0 %v6885_v8, %s7166_s29  ;;  %v8975_v39 = vld [vmem:[%s9170_s4] ss:$0 sm:$0xff] }
 0x51d   : > { %v4899_v58 = vpop.permute.xlu1 %4898  ;;  %v5149_v57 = vpop.permute.xlu0 %5148 }
 0x51e   : > { %4975 = vst.msk [vmem:[#allocation3 + $0x4c] sm:$0xf] %vm2297_vm11, %v4899_v58 }
 0x51f   : > { %5228 = vst.msk [vmem:[#allocation3 + $0x40] sm:$0xf] %vm2554_vm12, %v5149_v57  ;;  %4410 = vrot.lane.b32.xlu1 %v6886_v41, %s7166_s29  ;;  %4660 = vrot.lane.b32.xlu0 %v6821_v26, %s7167_s30 }
 0x521   : > { %v5151_v25 = vpop.permute.xlu1 %5150  ;;  %v5153_v7 = vpop.permute.xlu0 %5152 }
 0x522   : > { %5229 = vst.msk [vmem:[#allocation3 + $0x44] sm:$0xf] %vm2554_vm12, %v5151_v25  ;;  %5230 = vst.msk [vmem:[#allocation3 + $0x48] sm:$0xf] %vm2554_vm12, %v5153_v7 }
 0x523   : > { %4662 = vrot.lane.b32.xlu1 %v6822_v6, %s7167_s30  ;;  %4664 = vrot.lane.b32.xlu0 %v6917_v38, %s7167_s30 }
 0x525   : > { %v5155_v31 = vpop.permute.xlu1 %5154  ;;  %v4133_v22 = vpop.permute.xlu0 %4132 }
 0x526   : > { %5231 = vst.msk [vmem:[#allocation3 + $0x4c] sm:$0xf] %vm2554_vm12, %v5155_v31 }
 0x527   : > { %4208 = vst.msk [vmem:[#allocation3 + $0x50] sm:$0xf] %vm1525_vm7, %v4133_v22  ;;  %4666 = vrot.lane.b32.xlu1 %v6918_v27, %s7167_s30  ;;  %4916 = vrot.lane.b32.xlu0 %v6853_v54, %s7168_s6  ;;  %s8984_s30 = scalar_lea.vmem %s9171_s5, %s6405_s21 }
 0x529   : > { %v4135_v33 = vpop.permute.xlu1 %4134  ;;  %v4137_v43 = vpop.permute.xlu0 %4136  ;;  %v7145_v51 = vld [vmem:[#allocation3 + $0x40] sm:$0xff]  }
 0x52a   : > { %4209 = vst.msk [vmem:[#allocation3 + $0x54] sm:$0xf] %vm1525_vm7, %v4135_v33  ;;  %4210 = vst.msk [vmem:[#allocation3 + $0x58] sm:$0xf] %vm1525_vm7, %v4137_v43  ;;  %7081 = vmatprep.mubr.msk.bf16.mxu1 %vm2726_vm13, %v7145_v51 }
 0x52b   : > { %4918 = vrot.lane.b32.xlu1 %v6854_v53, %s7168_s6  ;;  %4920 = vrot.lane.b32.xlu0 %v6949_v50, %s7168_s6 }
 0x52d   : > { %v4139_v28 = vpop.permute.xlu1 %4138  ;;  %v4389_v55 = vpop.permute.xlu0 %4388  ;;  %v7146_v37 = vld [vmem:[#allocation3 + $0x48] sm:$0xff]  }
 0x52e   : > { %4211 = vst.msk [vmem:[#allocation3 + $0x5c] sm:$0xf] %vm1525_vm7, %v4139_v28  ;;  %7082 = vmatmul.mubr.msk.bf16.gmra.mxu1 %vm2726_vm13, %v7146_v37 }
 0x52f   : > { %4464 = vst.msk [vmem:[#allocation3 + $0x50] sm:$0xf] %vm1782_vm8, %v4389_v55  ;;  %4922 = vrot.lane.b32.xlu1 %v6950_v34, %s7168_s6  ;;  %5172 = vrot.lane.b32.xlu0 %v6885_v8, %s7169_s13  ;;  %v5601_v34 = vld [vmem:[%s7266_s24 + $0x30] sm:$0xff] }
 0x531   : > { %v4391_v46 = vpop.permute.xlu1 %4390  ;;  %v4393_v44 = vpop.permute.xlu0 %4392 }
 0x532   : > { %4465 = vst.msk [vmem:[#allocation3 + $0x54] sm:$0xf] %vm1782_vm8, %v4391_v46  ;;  %4466 = vst.msk [vmem:[#allocation3 + $0x58] sm:$0xf] %vm1782_vm8, %v4393_v44 }
 0x533   : > { %5174 = vrot.lane.b32.xlu1 %v6886_v41, %s7169_s13  ;;  %5176 = vrot.lane.b32.xlu0 %v6981_v42, %s7169_s13  ;;  %v5599_v42 = vld [vmem:[%s7266_s24 + $0x20] sm:$0xff] }
 0x535   : > { %v4395_v62 = vpop.permute.xlu1 %4394  ;;  %v4645_v47 = vpop.permute.xlu0 %4644 }
 0x536   : > { %4467 = vst.msk [vmem:[#allocation3 + $0x5c] sm:$0xf] %vm1782_vm8, %v4395_v62 }
 0x537   : > { %4720 = vst.msk [vmem:[#allocation3 + $0x50] sm:$0xf] %vm2040_vm10, %v4645_v47  ;;  %5178 = vrot.lane.b32.xlu1 %v6982_v3, %s7169_s13  ;;  %v5602_v3 = vld [vmem:[%s7266_s24 + $0x38] sm:$0xff] }
 0x539   : > { %v4647_v21 = vpop.permute.xlu1 %4646  ;;  %v4649_v56 = vpop.permute.xlu0 %4648 }
 0x53a   : > { %4721 = vst.msk [vmem:[#allocation3 + $0x54] sm:$0xf] %vm2040_vm10, %v4647_v21  ;;  %4722 = vst.msk [vmem:[#allocation3 + $0x58] sm:$0xf] %vm2040_vm10, %v4649_v56 }
 0x53d   : > { %v4651_v52 = vpop.permute.xlu1 %4650  ;;  %v4901_v32 = vpop.permute.xlu0 %4900 }
 0x53e   : > { %4723 = vst.msk [vmem:[#allocation3 + $0x5c] sm:$0xf] %vm2040_vm10, %v4651_v52 }
 0x53f   : > { %4976 = vst.msk [vmem:[#allocation3 + $0x50] sm:$0xf] %vm2297_vm11, %v4901_v32 }
 0x541   : > { %v4903_v5 = vpop.permute.xlu1 %4902  ;;  %v4905_v40 = vpop.permute.xlu0 %4904 }
 0x542   : > { %4977 = vst.msk [vmem:[#allocation3 + $0x54] sm:$0xf] %vm2297_vm11, %v4903_v5  ;;  %4978 = vst.msk [vmem:[#allocation3 + $0x58] sm:$0xf] %vm2297_vm11, %v4905_v40  ;;  %v5600_v5 = vld [vmem:[%s7266_s24 + $0x28] sm:$0xff] }
 0x545   : > { %v4907_v1 = vpop.permute.xlu1 %4906  ;;  %v5157_v61 = vpop.permute.xlu0 %5156 }
 0x546   : > { %4979 = vst.msk [vmem:[#allocation3 + $0x5c] sm:$0xf] %vm2297_vm11, %v4907_v1 }
 0x547   : > { %5232 = vst.msk [vmem:[#allocation3 + $0x50] sm:$0xf] %vm2554_vm12, %v5157_v61 }
 0x549   : > { %v5159_v45 = vpop.permute.xlu1 %5158  ;;  %v5161_v49 = vpop.permute.xlu0 %5160 }
 0x54a   : > { %5233 = vst.msk [vmem:[#allocation3 + $0x54] sm:$0xf] %vm2554_vm12, %v5159_v45  ;;  %5234 = vst.msk [vmem:[#allocation3 + $0x58] sm:$0xf] %vm2554_vm12, %v5161_v49 }
 0x54d   : > { %v5163_v9 = vpop.permute.xlu1 %5162  ;;  %v3889_v16 = vpop.permute.xlu0 %3888 }
 0x54e   : > { %5235 = vst.msk [vmem:[#allocation3 + $0x5c] sm:$0xf] %vm2554_vm12, %v5163_v9  ;;  %v7067_v13 = vpop.f32.mrf.mxu1 }
 0x54f   : > { %3958 = vst.msk [vmem:[#allocation3 + $0x68] sm:$0xf] %vm1268_vm6, %v3889_v16  ;;  %v5477_v18 = vadd.f32 %v7067_v13, %v8975_v39 }
 0x550   : > { %v5468_v29 = vpop.f32.mrf.mxu1 }
 0x551   : > { %v3891_v4 = vpop.permute.xlu1 %3890  ;;  %v4141_v26 = vpop.permute.xlu0 %4140  ;;  %v7147_v19 = vld [vmem:[#allocation3 + $0x50] sm:$0xff]   ;;  %v5629_v6 = vadd.f32 %v5597_v23, %v5477_v18  ;;  %v5469_v60 = vadd.f32 %v8975_v39, %v5468_v29 }
 0x552   : > { %3959 = vst.msk [vmem:[#allocation3 + $0x6c] sm:$0xf] %vm1268_vm6, %v3891_v4  ;;  %7085 = vmatprep.mubr.msk.bf16.mxu1 %vm2726_vm13, %v7147_v19  ;;  %v7068_v48 = vpop.f32.mrf.mxu1 }
 0x553   : > { %4212 = vst.msk [vmem:[#allocation3 + $0x60] sm:$0xf] %vm1525_vm7, %v4141_v26  ;;  %v5627_v54 = vadd.f32 %v5595_v10, %v5469_v60  ;;  %v5480_v2 = vadd.f32 %v7068_v48, %v8975_v39 }
 0x554   : > { %5661 = vst.msk [vmem:[%s8984_s30 + $0x10] sm:$0xff] %vm226_vm0, %v5629_v6  ;;  %v5471_v63 = vpop.f32.mrf.mxu1 }
 0x555   : > { %v4143_v59 = vpop.permute.xlu1 %4142  ;;  %v4145_v24 = vpop.permute.xlu0 %4144  ;;  %v7148_v53 = vld [vmem:[#allocation3 + $0x58] sm:$0xff]   ;;  %5659 = vst.msk [vmem:[%s8984_s30] sm:$0xff] %vm226_vm0, %v5627_v54  ;;  %v5630_v17 = vadd.f32 %v5598_v30, %v5480_v2  ;;  %v5472_v8 = vadd.f32 %v8975_v39, %v5471_v63 }
 0x556   : > { %4213 = vst.msk [vmem:[#allocation3 + $0x64] sm:$0xf] %vm1525_vm7, %v4143_v59  ;;  %4214 = vst.msk [vmem:[#allocation3 + $0x68] sm:$0xf] %vm1525_vm7, %v4145_v24  ;;  %7086 = vmatmul.mubr.msk.bf16.gmra.mxu1 %vm2726_vm13, %v7148_v53  ;;  %v5605_v59 = vld [vmem:[%s7266_s24 + $0x50] sm:$0xff] }
 0x557   : > { %5662 = vst.msk [vmem:[%s8984_s30 + $0x18] sm:$0xff] %vm226_vm0, %v5630_v17  ;;  %v5628_v35 = vadd.f32 %v5596_v14, %v5472_v8  ;;  %v5603_v17 = vld [vmem:[%s7266_s24 + $0x40] sm:$0xff] }
 0x559   : > { %v4147_v0 = vpop.permute.xlu1 %4146  ;;  %v4397_v58 = vpop.permute.xlu0 %4396  ;;  %5660 = vst.msk [vmem:[%s8984_s30 + $0x8] sm:$0xff] %vm226_vm0, %v5628_v35 }
 0x55a   : > { %4215 = vst.msk [vmem:[#allocation3 + $0x6c] sm:$0xf] %vm1525_vm7, %v4147_v0 }
 0x55b   : > { %4468 = vst.msk [vmem:[#allocation3 + $0x60] sm:$0xf] %vm1782_vm8, %v4397_v58  ;;  %v5606_v58 = vld [vmem:[%s7266_s24 + $0x58] sm:$0xff] }
 0x55d   : > { %v4399_v57 = vpop.permute.xlu1 %4398  ;;  %v4401_v41 = vpop.permute.xlu0 %4400 }
 0x55e   : > { %4469 = vst.msk [vmem:[#allocation3 + $0x64] sm:$0xf] %vm1782_vm8, %v4399_v57  ;;  %4470 = vst.msk [vmem:[#allocation3 + $0x68] sm:$0xf] %vm1782_vm8, %v4401_v41 }
 0x561   : > { %v4403_v38 = vpop.permute.xlu1 %4402  ;;  %v4653_v12 = vpop.permute.xlu0 %4652 }
 0x562   : > { %4471 = vst.msk [vmem:[#allocation3 + $0x6c] sm:$0xf] %vm1782_vm8, %v4403_v38 }
 0x563   : > { %4724 = vst.msk [vmem:[#allocation3 + $0x60] sm:$0xf] %vm2040_vm10, %v4653_v12 }
 0x565   : > { %v4655_v25 = vpop.permute.xlu1 %4654  ;;  %v4657_v7 = vpop.permute.xlu0 %4656 }
 0x566   : > { %4725 = vst.msk [vmem:[#allocation3 + $0x64] sm:$0xf] %vm2040_vm10, %v4655_v25  ;;  %4726 = vst.msk [vmem:[#allocation3 + $0x68] sm:$0xf] %vm2040_vm10, %v4657_v7  ;;  %v5604_v7 = vld [vmem:[%s7266_s24 + $0x48] sm:$0xff] }
 0x569   : > { %v4659_v27 = vpop.permute.xlu1 %4658  ;;  %v4909_v36 = vpop.permute.xlu0 %4908 }
 0x56a   : > { %4727 = vst.msk [vmem:[#allocation3 + $0x6c] sm:$0xf] %vm2040_vm10, %v4659_v27 }
 0x56b   : > { %4980 = vst.msk [vmem:[#allocation3 + $0x60] sm:$0xf] %vm2297_vm11, %v4909_v36 }
 0x56d   : > { %v4911_v31 = vpop.permute.xlu1 %4910  ;;  %v4913_v22 = vpop.permute.xlu0 %4912 }
 0x56e   : > { %4981 = vst.msk [vmem:[#allocation3 + $0x64] sm:$0xf] %vm2297_vm11, %v4911_v31  ;;  %4982 = vst.msk [vmem:[#allocation3 + $0x68] sm:$0xf] %vm2297_vm11, %v4913_v22 }
 0x571   : > { %v4915_v50 = vpop.permute.xlu1 %4914  ;;  %v5165_v11 = vpop.permute.xlu0 %5164 }
 0x572   : > { %4983 = vst.msk [vmem:[#allocation3 + $0x6c] sm:$0xf] %vm2297_vm11, %v4915_v50 }
 0x573   : > { %5236 = vst.msk [vmem:[#allocation3 + $0x60] sm:$0xf] %vm2554_vm12, %v5165_v11 }
 0x575   : > { %v5167_v33 = vpop.permute.xlu1 %5166  ;;  %v5169_v43 = vpop.permute.xlu0 %5168 }
 0x576   : > { %5237 = vst.msk [vmem:[#allocation3 + $0x64] sm:$0xf] %vm2554_vm12, %v5167_v33  ;;  %5238 = vst.msk [vmem:[#allocation3 + $0x68] sm:$0xf] %vm2554_vm12, %v5169_v43  ;;  %v7071_v51 = vpop.f32.mrf.mxu1  ;;  %v5609_v43 = vld [vmem:[%s7266_s24 + $0x70] sm:$0xff] }
 0x577   : > { %v5493_v15 = vadd.f32 %v7071_v51, %v8975_v39 }
 0x578   : > { %v5484_v37 = vpop.f32.mrf.mxu1 }
 0x579   : > { %v5171_v28 = vpop.permute.xlu1 %5170  ;;  %v3893_v55 = vpop.permute.xlu0 %3892  ;;  %v5633_v20 = vadd.f32 %v5601_v34, %v5493_v15  ;;  %v5485_v46 = vadd.f32 %v8975_v39, %v5484_v37  ;;  %v5607_v15 = vld [vmem:[%s7266_s24 + $0x60] sm:$0xff] }
 0x57a   : > { %5239 = vst.msk [vmem:[#allocation3 + $0x6c] sm:$0xf] %vm2554_vm12, %v5171_v28  ;;  %v7072_v44 = vpop.f32.mrf.mxu1 }
 0x57b   : > { %3960 = vst.msk [vmem:[#allocation3 + $0x70] sm:$0xf] %vm1268_vm6, %v3893_v55  ;;  %v5631_v62 = vadd.f32 %v5599_v42, %v5485_v46  ;;  %v5496_v47 = vadd.f32 %v7072_v44, %v8975_v39  ;;  %v5610_v42 = vld [vmem:[%s7266_s24 + $0x78] sm:$0xff] }
 0x57c   : > { %5665 = vst.msk [vmem:[%s8984_s30 + $0x30] sm:$0xff] %vm226_vm0, %v5633_v20  ;;  %v5487_v32 = vpop.f32.mrf.mxu1 }
 0x57d   : > { %v3895_v21 = vpop.permute.xlu1 %3894  ;;  %v3897_v56 = vpop.permute.xlu0 %3896  ;;  %v7149_v52 = vld [vmem:[#allocation3 + $0x60] sm:$0xff]   ;;  %5663 = vst.msk [vmem:[%s8984_s30 + $0x20] sm:$0xff] %vm226_vm0, %v5631_v62  ;;  %v5634_v40 = vadd.f32 %v5602_v3, %v5496_v47  ;;  %v5488_v1 = vadd.f32 %v8975_v39, %v5487_v32  ;;  %v5608_v3 = vld [vmem:[%s7266_s24 + $0x68] sm:$0xff] }
 0x57e   : > { %3961 = vst.msk [vmem:[#allocation3 + $0x74] sm:$0xf] %vm1268_vm6, %v3895_v21  ;;  %3962 = vst.msk [vmem:[#allocation3 + $0x78] sm:$0xf] %vm1268_vm6, %v3897_v56  ;;  %7089 = vmatprep.mubr.msk.bf16.mxu1 %vm2726_vm13, %v7149_v52  ;;  %v5613_v52 = vld [vmem:[%s7266_s24 + $0x90] sm:$0xff] }
 0x57f   : > { %5666 = vst.msk [vmem:[%s8984_s30 + $0x38] sm:$0xff] %vm226_vm0, %v5634_v40  ;;  %v5632_v61 = vadd.f32 %v5600_v5, %v5488_v1  ;;  %v5611_v40 = vld [vmem:[%s7266_s24 + $0x80] sm:$0xff] }
 0x581   : > { %v3899_v45 = vpop.permute.xlu1 %3898  ;;  %v4149_v49 = vpop.permute.xlu0 %4148  ;;  %v7150_v9 = vld [vmem:[#allocation3 + $0x68] sm:$0xff]   ;;  %5664 = vst.msk [vmem:[%s8984_s30 + $0x28] sm:$0xff] %vm226_vm0, %v5632_v61 }
 0x582   : > { %3963 = vst.msk [vmem:[#allocation3 + $0x7c] sm:$0xf] %vm1268_vm6, %v3899_v45  ;;  %7090 = vmatmul.mubr.msk.bf16.gmra.mxu1 %vm2726_vm13, %v7150_v9 }
 0x583   : > { %4216 = vst.msk [vmem:[#allocation3 + $0x70] sm:$0xf] %vm1525_vm7, %v4149_v49  ;;  %v5614_v49 = vld [vmem:[%s7266_s24 + $0x98] sm:$0xff] }
 0x585   : > { %v4151_v16 = vpop.permute.xlu1 %4150  ;;  %v4153_v13 = vpop.permute.xlu0 %4152 }
 0x586   : > { %4217 = vst.msk [vmem:[#allocation3 + $0x74] sm:$0xf] %vm1525_vm7, %v4151_v16  ;;  %4218 = vst.msk [vmem:[#allocation3 + $0x78] sm:$0xf] %vm1525_vm7, %v4153_v13 }
 0x589   : > { %v4155_v23 = vpop.permute.xlu1 %4154  ;;  %v4405_v18 = vpop.permute.xlu0 %4404 }
 0x58a   : > { %4219 = vst.msk [vmem:[#allocation3 + $0x7c] sm:$0xf] %vm1525_vm7, %v4155_v23  ;;  %v5612_v23 = vld [vmem:[%s7266_s24 + $0x88] sm:$0xff] }
 0x58b   : > { %4472 = vst.msk [vmem:[#allocation3 + $0x70] sm:$0xf] %vm1782_vm8, %v4405_v18 }
 0x58d   : > { %v4407_v4 = vpop.permute.xlu1 %4406  ;;  %v4409_v26 = vpop.permute.xlu0 %4408 }
 0x58e   : > { %4473 = vst.msk [vmem:[#allocation3 + $0x74] sm:$0xf] %vm1782_vm8, %v4407_v4  ;;  %4474 = vst.msk [vmem:[#allocation3 + $0x78] sm:$0xf] %vm1782_vm8, %v4409_v26 }
 0x591   : > { %v4411_v19 = vpop.permute.xlu1 %4410  ;;  %v4661_v29 = vpop.permute.xlu0 %4660 }
 0x592   : > { %4475 = vst.msk [vmem:[#allocation3 + $0x7c] sm:$0xf] %vm1782_vm8, %v4411_v19 }
 0x593   : > { %4728 = vst.msk [vmem:[#allocation3 + $0x70] sm:$0xf] %vm2040_vm10, %v4661_v29  ;;  %v5617_v29 = vld [vmem:[%s7266_s24 + $0xb0] sm:$0xff] }
 0x595   : > { %v4663_v10 = vpop.permute.xlu1 %4662  ;;  %v4665_v6 = vpop.permute.xlu0 %4664 }
 0x596   : > { %4729 = vst.msk [vmem:[#allocation3 + $0x74] sm:$0xf] %vm2040_vm10, %v4663_v10  ;;  %4730 = vst.msk [vmem:[#allocation3 + $0x78] sm:$0xf] %vm2040_vm10, %v4665_v6 }
 0x599   : > { %v4667_v60 = vpop.permute.xlu1 %4666  ;;  %v4917_v48 = vpop.permute.xlu0 %4916 }
 0x59a   : > { %4731 = vst.msk [vmem:[#allocation3 + $0x7c] sm:$0xf] %vm2040_vm10, %v4667_v60  ;;  %v5615_v60 = vld [vmem:[%s7266_s24 + $0xa0] sm:$0xff] }
 0x59b   : > { %4984 = vst.msk [vmem:[#allocation3 + $0x70] sm:$0xf] %vm2297_vm11, %v4917_v48 }
 0x59d   : > { %v4919_v30 = vpop.permute.xlu1 %4918  ;;  %v4921_v54 = vpop.permute.xlu0 %4920 }
 0x59e   : > { %4985 = vst.msk [vmem:[#allocation3 + $0x74] sm:$0xf] %vm2297_vm11, %v4919_v30  ;;  %4986 = vst.msk [vmem:[#allocation3 + $0x78] sm:$0xf] %vm2297_vm11, %v4921_v54  ;;  %v7075_v2 = vpop.f32.mrf.mxu1 }
 0x59f   : > { %v5509_v24 = vadd.f32 %v7075_v2, %v8975_v39  ;;  %v5618_v2 = vld [vmem:[%s7266_s24 + $0xb8] sm:$0xff] }
 0x5a0   : > { %v5500_v14 = vpop.f32.mrf.mxu1 }
 0x5a1   : > { %v4923_v53 = vpop.permute.xlu1 %4922  ;;  %v5173_v63 = vpop.permute.xlu0 %5172  ;;  %v5637_v8 = vadd.f32 %v5605_v59, %v5509_v24  ;;  %v5501_v35 = vadd.f32 %v8975_v39, %v5500_v14 }
 0x5a2   : > { %4987 = vst.msk [vmem:[#allocation3 + $0x7c] sm:$0xf] %vm2297_vm11, %v4923_v53  ;;  %v7076_v0 = vpop.f32.mrf.mxu1 }
 0x5a3   : > { %5240 = vst.msk [vmem:[#allocation3 + $0x70] sm:$0xf] %vm2554_vm12, %v5173_v63  ;;  %v5635_v57 = vadd.f32 %v5603_v17, %v5501_v35  ;;  %v5512_v41 = vadd.f32 %v7076_v0, %v8975_v39  ;;  %v5616_v63 = vld [vmem:[%s7266_s24 + $0xa8] sm:$0xff]  ;;  %v5621_v0 = vld [vmem:[%s7266_s24 + $0xd0] sm:$0xff] }
 0x5a4   : > { %5669 = vst.msk [vmem:[%s8984_s30 + $0x50] sm:$0xff] %vm226_vm0, %v5637_v8  ;;  %v5503_v25 = vpop.f32.mrf.mxu1 }
 0x5a5   : > { %v5175_v38 = vpop.permute.xlu1 %5174  ;;  %v5177_v12 = vpop.permute.xlu0 %5176  ;;  %5667 = vst.msk [vmem:[%s8984_s30 + $0x40] sm:$0xff] %vm226_vm0, %v5635_v57  ;;  %v5638_v27 = vadd.f32 %v5606_v58, %v5512_v41  ;;  %v5504_v36 = vadd.f32 %v8975_v39, %v5503_v25  ;;  %v5619_v41 = vld [vmem:[%s7266_s24 + $0xc0] sm:$0xff] }
 0x5a6   : > { %5241 = vst.msk [vmem:[#allocation3 + $0x74] sm:$0xf] %vm2554_vm12, %v5175_v38  ;;  %5242 = vst.msk [vmem:[#allocation3 + $0x78] sm:$0xf] %vm2554_vm12, %v5177_v12 }
 0x5a7   : > { %5670 = vst.msk [vmem:[%s8984_s30 + $0x58] sm:$0xff] %vm226_vm0, %v5638_v27  ;;  %v5636_v31 = vadd.f32 %v5604_v7, %v5504_v36  ;;  %v5622_v7 = vld [vmem:[%s7266_s24 + $0xd8] sm:$0xff] }
 0x5a9   : > { %v5179_v22 = vpop.permute.xlu1 %5178  ;;  %5668 = vst.msk [vmem:[%s8984_s30 + $0x48] sm:$0xff] %vm226_vm0, %v5636_v31 }
 0x5aa   : > { %5243 = vst.msk [vmem:[#allocation3 + $0x7c] sm:$0xf] %vm2554_vm12, %v5179_v22  ;;  %v5620_v22 = vld [vmem:[%s7266_s24 + $0xc8] sm:$0xff] }
 0x5ad   : > { %v7151_v50 = vld [vmem:[#allocation3 + $0x70] sm:$0xff]  }
 0x5ae   : > { %7093 = vmatprep.mubr.msk.bf16.mxu1 %vm2726_vm13, %v7151_v50 }
 0x5b1   : > { %v7152_v11 = vld [vmem:[#allocation3 + $0x78] sm:$0xff]  }
 0x5b2   : > { %7094 = vmatmul.mubr.msk.bf16.gmra.mxu1 %vm2726_vm13, %v7152_v11 }
 0x5c6   : > { %v7079_v33 = vpop.f32.mrf.mxu1 }
 0x5c7   : > { %v5525_v51 = vadd.f32 %v7079_v33, %v8975_v39 }
 0x5c8   : > { %v5516_v34 = vpop.f32.mrf.mxu1 }
 0x5c9   : > { %v5641_v28 = vadd.f32 %v5609_v43, %v5525_v51  ;;  %v5517_v55 = vadd.f32 %v8975_v39, %v5516_v34  ;;  %v5625_v51 = vld [vmem:[%s7266_s24 + $0xf0] sm:$0xff] }
 0x5ca   : > { %v7080_v37 = vpop.f32.mrf.mxu1 }
 0x5cb   : > { %5673 = vst.msk [vmem:[%s8984_s30 + $0x70] sm:$0xff] %vm226_vm0, %v5641_v28  ;;  %v5639_v20 = vadd.f32 %v5607_v15, %v5517_v55  ;;  %v5528_v46 = vadd.f32 %v7080_v37, %v8975_v39  ;;  %v5623_v28 = vld [vmem:[%s7266_s24 + $0xe0] sm:$0xff] }
 0x5cc   : > { %v5519_v44 = vpop.f32.mrf.mxu1 }
 0x5cd   : > { %5671 = vst.msk [vmem:[%s8984_s30 + $0x60] sm:$0xff] %vm226_vm0, %v5639_v20  ;;  %v5642_v62 = vadd.f32 %v5610_v42, %v5528_v46  ;;  %v5520_v47 = vadd.f32 %v8975_v39, %v5519_v44  ;;  %v5626_v20 = vld [vmem:[%s7266_s24 + $0xf8] sm:$0xff] }
 0x5cf   : > { %5674 = vst.msk [vmem:[%s8984_s30 + $0x78] sm:$0xff] %vm226_vm0, %v5642_v62  ;;  %v5640_v21 = vadd.f32 %v5608_v3, %v5520_v47  ;;  %v5624_v62 = vld [vmem:[%s7266_s24 + $0xe8] sm:$0xff] }
 0x5d1   : > { %5672 = vst.msk [vmem:[%s8984_s30 + $0x68] sm:$0xff] %vm226_vm0, %v5640_v21 }
 0x5ee   : > { %v7083_v56 = vpop.f32.mrf.mxu1 }
 0x5ef   : > { %v5541_v32 = vadd.f32 %v7083_v56, %v8975_v39 }
 0x5f0   : > { %v5532_v5 = vpop.f32.mrf.mxu1 }
 0x5f1   : > { %v5645_v1 = vadd.f32 %v5613_v52, %v5541_v32  ;;  %v5533_v61 = vadd.f32 %v8975_v39, %v5532_v5 }
 0x5f2   : > { %v7084_v45 = vpop.f32.mrf.mxu1 }
 0x5f3   : > { %5677 = vst.msk [vmem:[%s8984_s30 + $0x90] sm:$0xff] %vm226_vm0, %v5645_v1  ;;  %v5643_v9 = vadd.f32 %v5611_v40, %v5533_v61  ;;  %v5544_v16 = vadd.f32 %v7084_v45, %v8975_v39 }
 0x5f4   : > { %v5535_v13 = vpop.f32.mrf.mxu1 }
 0x5f5   : > { %5675 = vst.msk [vmem:[%s8984_s30 + $0x80] sm:$0xff] %vm226_vm0, %v5643_v9  ;;  %v5646_v18 = vadd.f32 %v5614_v49, %v5544_v16  ;;  %v5536_v4 = vadd.f32 %v8975_v39, %v5535_v13 }
 0x5f7   : > { %5678 = vst.msk [vmem:[%s8984_s30 + $0x98] sm:$0xff] %vm226_vm0, %v5646_v18  ;;  %v5644_v26 = vadd.f32 %v5612_v23, %v5536_v4 }
 0x5f9   : > { %5676 = vst.msk [vmem:[%s8984_s30 + $0x88] sm:$0xff] %vm226_vm0, %v5644_v26 }
 0x616   : > { %v7087_v19 = vpop.f32.mrf.mxu1 }
 0x617   : > { %v5557_v10 = vadd.f32 %v7087_v19, %v8975_v39 }
 0x618   : > { %v5548_v6 = vpop.f32.mrf.mxu1 }
 0x619   : > { %v5649_v48 = vadd.f32 %v5617_v29, %v5557_v10  ;;  %v5549_v30 = vadd.f32 %v8975_v39, %v5548_v6 }
 0x61a   : > { %v7088_v54 = vpop.f32.mrf.mxu1 }
 0x61b   : > { %5681 = vst.msk [vmem:[%s8984_s30 + $0xb0] sm:$0xff] %vm226_vm0, %v5649_v48  ;;  %v5647_v59 = vadd.f32 %v5615_v60, %v5549_v30  ;;  %v5560_v24 = vadd.f32 %v7088_v54, %v8975_v39 }
 0x61c   : > { %v5551_v53 = vpop.f32.mrf.mxu1 }
 0x61d   : > { %5679 = vst.msk [vmem:[%s8984_s30 + $0xa0] sm:$0xff] %vm226_vm0, %v5647_v59  ;;  %v5650_v14 = vadd.f32 %v5618_v2, %v5560_v24  ;;  %v5552_v17 = vadd.f32 %v8975_v39, %v5551_v53 }
 0x61f   : > { %5682 = vst.msk [vmem:[%s8984_s30 + $0xb8] sm:$0xff] %vm226_vm0, %v5650_v14  ;;  %v5648_v8 = vadd.f32 %v5616_v63, %v5552_v17 }
 0x621   : > { %5680 = vst.msk [vmem:[%s8984_s30 + $0xa8] sm:$0xff] %vm226_vm0, %v5648_v8 }
 0x642   : > { %v7091_v35 = vpop.f32.mrf.mxu1 }
 0x643   : > { %v5573_v58 = vadd.f32 %v7091_v35, %v8975_v39 }
 0x644   : > { %v5564_v57 = vpop.f32.mrf.mxu1 }
 0x645   : > { %v5653_v38 = vadd.f32 %v5621_v0, %v5573_v58  ;;  %v5565_v12 = vadd.f32 %v8975_v39, %v5564_v57 }
 0x646   : > { %v7092_v25 = vpop.f32.mrf.mxu1 }
 0x647   : > { %5685 = vst.msk [vmem:[%s8984_s30 + $0xd0] sm:$0xff] %vm226_vm0, %v5653_v38  ;;  %v5651_v27 = vadd.f32 %v5619_v41, %v5565_v12  ;;  %v5576_v36 = vadd.f32 %v7092_v25, %v8975_v39 }
 0x648   : > { %v5567_v31 = vpop.f32.mrf.mxu1 }
 0x649   : > { %5683 = vst.msk [vmem:[%s8984_s30 + $0xc0] sm:$0xff] %vm226_vm0, %v5651_v27  ;;  %v5654_v50 = vadd.f32 %v5622_v7, %v5576_v36  ;;  %v5568_v11 = vadd.f32 %v8975_v39, %v5567_v31 }
 0x64b   : > { %5686 = vst.msk [vmem:[%s8984_s30 + $0xd8] sm:$0xff] %vm226_vm0, %v5654_v50  ;;  %v5652_v33 = vadd.f32 %v5620_v22, %v5568_v11 }
 0x64d   : > { %5684 = vst.msk [vmem:[%s8984_s30 + $0xc8] sm:$0xff] %vm226_vm0, %v5652_v33 }
 0x672   : > { %v7095_v43 = vpop.f32.mrf.mxu1 }
 0x673   : > { %v5589_v34 = vadd.f32 %v7095_v43, %v8975_v39 }
 0x674   : > { %v5580_v15 = vpop.f32.mrf.mxu1 }
 0x675   : > { %v5657_v55 = vadd.f32 %v5625_v51, %v5589_v34  ;;  %v5581_v37 = vadd.f32 %v8975_v39, %v5580_v15 }
 0x676   : > { %v7096_v42 = vpop.f32.mrf.mxu1 }
 0x677   : > { %5689 = vst.msk [vmem:[%s8984_s30 + $0xf0] sm:$0xff] %vm226_vm0, %v5657_v55  ;;  %v5655_v46 = vadd.f32 %v5623_v28, %v5581_v37  ;;  %v5592_v44 = vadd.f32 %v7096_v42, %v8975_v39 }
 0x678   : > { %v5583_v3 = vpop.f32.mrf.mxu1 }
 0x679   : > { %5687 = vst.msk [vmem:[%s8984_s30 + $0xe0] sm:$0xff] %vm226_vm0, %v5655_v46  ;;  %v5658_v47 = vadd.f32 %v5626_v20, %v5592_v44  ;;  %v5584_v21 = vadd.f32 %v8975_v39, %v5583_v3 }
 0x67b   : > { %5690 = vst.msk [vmem:[%s8984_s30 + $0xf8] sm:$0xff] %vm226_vm0, %v5658_v47  ;;  %v5656_v56 = vadd.f32 %v5624_v62, %v5584_v21 }
 0x67d   : > { %5688 = vst.msk [vmem:[%s8984_s30 + $0xe8] sm:$0xff] %vm226_vm0, %v5656_v56 }
 0x67e PF: > { %s15_s18 = sadd.s32 1, %s7159_s18  }
 0x67f   : > { %p12_p4 = scmp.ge.s32.totalorder %s15_s18, 4  }
 0x681   :  { %14 = sbr.rel (!%p12_p4) target bundleno = 1 (0x1), region = 73 }

</bundles_post_ra>
